<compile_context>
chip_gen: v7x
topology: tpu7x:2x2x1
jax: 0.10.0
libtpu: 0.0.40
codegen_flags: <defaults>
</compile_context>

<pallas_src>
import functools

import jax
import jax.numpy as jnp
from jax.experimental import pallas as pl
from jax.experimental.pallas import tpu as pltpu


# ------------------------------------------------------------------------
# helpers
# ------------------------------------------------------------------------
def _pick_tile(dim, cap, quantum):
    """Largest divisor of `dim` that is <= cap and a multiple of `quantum`;
    falls back to the full dim (always a legal Pallas block size)."""
    if dim <= cap:
        return dim
    for t in range(cap, 0, -1):
        if dim % t == 0 and t % quantum == 0:
            return t
    return dim


# ------------------------------------------------------------------------
# Kernel 1: nearest-neighbour 2x upsample (NCHW)
# ------------------------------------------------------------------------
def _upsample2x_kernel(x_ref, rdup_ref, e_ref, o_ref):
    # x_ref:    (TR, TW)        input row/col tile
    # rdup_ref: (2*TR, TR)      0/1 row-duplication matrix   (resident const)
    # e_ref:    (TW, 2*TW)      0/1 column-duplication matrix (resident const)
    # o_ref:    (2*TR, 2*TW)    lane- and sublane-dense output tile
    x = x_ref[...].astype(jnp.float32)
    xw = jnp.dot(x, e_ref[...],                 # duplicate columns
                 preferred_element_type=jnp.float32,
                 precision=jax.lax.Precision.HIGHEST)
    o = jnp.dot(rdup_ref[...], xw,              # duplicate rows
                preferred_element_type=jnp.float32,
                precision=jax.lax.Precision.HIGHEST)
    o_ref[...] = o.astype(o_ref.dtype)


def upsample_nearest_2x(x):
    """Nearest 2x upsample of an NCHW tensor, out[n,c,i,j] = x[n,c,i//2,j//2]."""
    n, c, h, w = x.shape
    r = n * c * h
    x2 = x.reshape(r, w)                        # free view of contiguous NCHW

    tr = _pick_tile(r, 512, 8)                  # row tile (sublane axis)
    tw = _pick_tile(w, 256, 128)                # col tile (lane axis)

    # One-hot duplication matrices (block-local, identical for every block).
    e = (jnp.arange(2 * tw)[None, :] // 2 ==
         jnp.arange(tw)[:, None]).astype(jnp.float32)          # (TW, 2TW)
    rdup = (jnp.arange(2 * tr)[:, None] // 2 ==
            jnp.arange(tr)[None, :]).astype(jnp.float32)       # (2TR, TR)

    out2 = pl.pallas_call(
        _upsample2x_kernel,
        out_shape=jax.ShapeDtypeStruct((2 * r, 2 * w), x.dtype),
        grid=(r // tr, w // tw),
        in_specs=[
            pl.BlockSpec((tr, tw), lambda i, j: (i, j)),
            pl.BlockSpec((2 * tr, tr), lambda i, j: (0, 0)),
            pl.BlockSpec((tw, 2 * tw), lambda i, j: (0, 0)),
        ],
        out_specs=pl.BlockSpec((2 * tr, 2 * tw), lambda i, j: (i, j)),
        compiler_params=pltpu.CompilerParams(
            dimension_semantics=("parallel", "parallel"),
            vmem_limit_bytes=32 * 1024 * 1024,
        ),
    )(x2, rdup, e)
    return out2.reshape(n, c, 2 * h, 2 * w)


# ------------------------------------------------------------------------
# Kernel 2: 3x3 / stride-1 / pad-1 convolution (NCHW, OIHW weights)
# ------------------------------------------------------------------------
def _conv3x3_kernel(x_ref, w_ref, b_ref, o_ref, *, width):
    # x_ref: (Cin, H*W)   one image, spatial flattened onto the lane axis
    # w_ref: (3, 3, Cout, Cin)
    # b_ref: (Cout, 1)
    # o_ref: (Cout, H*W)
    x = x_ref[...]
    cin, hw = x.shape
    cout = o_ref.shape[0]
    dt = x.dtype

    # Column index of each lane, used to mask the left/right image borders.
    col = jax.lax.broadcasted_iota(jnp.int32, (1, hw), 1) % width
    left_ok = (col >= 1).astype(dt)             # tap reads column w-1
    right_ok = (col <= width - 2).astype(dt)    # tap reads column w+1

    acc = jnp.zeros((cout, hw), jnp.float32)
    for ky in range(3):
        for kx in range(3):
            s = (ky - 1) * width + (kx - 1)     # flattened tap offset
            if s > 0:       # non-circular shift; zero-fill == top/bottom pad
                xs = jnp.concatenate(
                    [x[:, s:], jnp.zeros((cin, s), dt)], axis=1)
            elif s < 0:
                xs = jnp.concatenate(
                    [jnp.zeros((cin, -s), dt), x[:, :hw + s]], axis=1)
            else:
                xs = x
            if kx == 0:
                xs = xs * left_ok
            elif kx == 2:
                xs = xs * right_ok
            acc = acc + jnp.dot(w_ref[ky, kx], xs,
                                preferred_element_type=jnp.float32,
                                precision=jax.lax.Precision.HIGHEST)
    o_ref[...] = (acc + b_ref[...]).astype(o_ref.dtype)


def conv2d_3x3_same(x, weight, bias):
    """Conv2d(C, C, 3, stride=1, padding=1) on NCHW input (OIHW weights)."""
    n, c, h, w = x.shape
    cout = weight.shape[0]
    hw = h * w
    x2 = x.reshape(n, c, hw)                       # free view
    wk = jnp.transpose(weight, (2, 3, 0, 1))       # (3, 3, Cout, Cin)
    b2 = bias.reshape(cout, 1)

    # TODO(synk): tile H*W (with a 1-pixel halo) and Cout for feature maps too
    # large to keep one full (C, H*W) image plane resident in VMEM.
    out = pl.pallas_call(
        functools.partial(_conv3x3_kernel, width=w),
        out_shape=jax.ShapeDtypeStruct((n, cout, hw), x.dtype),
        grid=(n,),
        in_specs=[
            pl.BlockSpec((None, c, hw), lambda i: (i, 0, 0)),
            pl.BlockSpec((3, 3, cout, c), lambda i: (0, 0, 0, 0)),
            pl.BlockSpec((cout, 1), lambda i: (0, 0)),
        ],
        out_specs=pl.BlockSpec((None, cout, hw), lambda i: (i, 0, 0)),
        compiler_params=pltpu.CompilerParams(
            dimension_semantics=("parallel",),
            vmem_limit_bytes=32 * 1024 * 1024,
        ),
    )(x2, wk, b2)
    return out.reshape(n, cout, h, w)


# ------------------------------------------------------------------------
# Module-level forward (equivalent of Upsample.forward)
# ------------------------------------------------------------------------
def upsample_module(x, conv_weight=None, conv_bias=None):
    """dfvqgan Upsample forward; with_conv iff conv params are provided."""
    y = upsample_nearest_2x(x)
    if conv_weight is not None:
        y = conv2d_3x3_same(y, conv_weight, conv_bias)
    return y


if __name__ == "__main__":
    key = jax.random.PRNGKey(0)
    k_x, k_w, k_b = jax.random.split(key, 3)

    N, C, H, W = 2, 8, 16, 16
    x = jax.random.normal(k_x, (N, C, H, W), dtype=jnp.float32)

    # Conv2d(C, C, 3, padding=1) parameters (deterministic, torch-like scale).
    bound = 1.0 / (C * 9) ** 0.5
    conv_w = jax.random.uniform(k_w, (C, C, 3, 3), jnp.float32, -bound, bound)
    conv_b = jax.random.uniform(k_b, (C,), jnp.float32, -bound, bound)

    # with_conv=False path
    up = jax.block_until_ready(upsample_module(x))
    # with_conv=True path
    out = jax.block_until_ready(upsample_module(x, conv_w, conv_b))

    # References.
    up_ref = jnp.repeat(jnp.repeat(x, 2, axis=2), 2, axis=3)
    conv_ref = jax.lax.conv_general_dilated(
        up_ref, conv_w, window_strides=(1, 1), padding=((1, 1), (1, 1)),
        dimension_numbers=("NCHW", "OIHW", "NCHW"),
        precision=jax.lax.Precision.HIGHEST,
    ) + conv_b[None, :, None, None]

    assert up.shape == (N, C, 2 * H, 2 * W)
    assert out.shape == (N, C, 2 * H, 2 * W)
    assert jnp.allclose(up, up_ref, atol=1e-5, rtol=1e-5)
    assert jnp.allclose(out, conv_ref, atol=1e-4, rtol=1e-4)
    print("KERNEL_OK")
</pallas_src>

<mosaic_0001>
module attributes {stable_mosaic.version = 11 : i64} {
  func.func @_upsample2x_kernel(%arg0: i32, %arg1: i32, %arg2: memref<256x16xf32, #tpu.memory_space<vmem>>, %arg3: memref<512x256xf32, #tpu.memory_space<vmem>>, %arg4: memref<16x32xf32, #tpu.memory_space<vmem>>, %arg5: memref<512x32xf32, #tpu.memory_space<vmem>>) attributes {dimension_semantics = [#tpu.dimension_semantics<parallel>, #tpu.dimension_semantics<parallel>], iteration_bounds = array<i64: 1, 1>, scalar_prefetch = 0 : i64, scratch_operands = 0 : i64, tpu.core_type = #tpu.core_type<tc>, window_params = [{transform_indices = @transform_0, window_bounds = array<i64: 256, 16>}, {pipeline_mode = #tpu.pipeline_mode<synchronous>, transform_indices = @transform_1, window_bounds = array<i64: 512, 256>}, {pipeline_mode = #tpu.pipeline_mode<synchronous>, transform_indices = @transform_2, window_bounds = array<i64: 16, 32>}, {transform_indices = @transform_3, window_bounds = array<i64: 512, 32>}]} {
    %c0 = arith.constant 0 : index
    %c0_0 = arith.constant 0 : index
    %0 = vector.load %arg2[%c0, %c0_0] : memref<256x16xf32, #tpu.memory_space<vmem>>, vector<256x16xf32>
    %c0_1 = arith.constant 0 : index
    %c0_2 = arith.constant 0 : index
    %1 = vector.load %arg4[%c0_1, %c0_2] : memref<16x32xf32, #tpu.memory_space<vmem>>, vector<16x32xf32>
    %cst = arith.constant dense<0.000000e+00> : vector<256x32xf32>
    %2 = tpu.matmul %0, %1, %cst {dimension_numbers = #tpu.dot_dimension_numbers<[1], [0], [0], [1], [0, 0, 1, 1], [], []>, precision = #tpu.contract_precision<fp32>} : vector<256x16xf32>, vector<16x32xf32>, vector<256x32xf32> -> vector<256x32xf32>
    %c0_3 = arith.constant 0 : index
    %c0_4 = arith.constant 0 : index
    %3 = vector.load %arg3[%c0_3, %c0_4] : memref<512x256xf32, #tpu.memory_space<vmem>>, vector<512x256xf32>
    %cst_5 = arith.constant dense<0.000000e+00> : vector<512x32xf32>
    %4 = tpu.matmul %3, %2, %cst_5 {dimension_numbers = #tpu.dot_dimension_numbers<[1], [0], [0], [1], [0, 0, 1, 1], [], []>, precision = #tpu.contract_precision<fp32>} : vector<512x256xf32>, vector<256x32xf32>, vector<512x32xf32> -> vector<512x32xf32>
    %c0_6 = arith.constant 0 : index
    %c0_7 = arith.constant 0 : index
    %5 = vector.load %arg5[%c0_6, %c0_7] : memref<512x32xf32, #tpu.memory_space<vmem>>, vector<512x32xf32>
    tpu.vector_store %arg5[%c0_6, %c0_7], %4 {strides = array<i32>} : memref<512x32xf32, #tpu.memory_space<vmem>>, vector<512x32xf32>,
    return
  }
  func.func @transform_0(%arg0: i32, %arg1: i32) -> (i32, i32) {
    %c0_i32 = arith.constant 0 : i32
    return %arg0, %arg1 : i32, i32
  }
  func.func @transform_1(%arg0: i32, %arg1: i32) -> (i32, i32) {
    %c0_i32 = arith.constant 0 : i32
    %c0_i32_0 = arith.constant 0 : i32
    %c0_i32_1 = arith.constant 0 : i32
    return %c0_i32, %c0_i32_0 : i32, i32
  }
  func.func @transform_2(%arg0: i32, %arg1: i32) -> (i32, i32) {
    %c0_i32 = arith.constant 0 : i32
    %c0_i32_0 = arith.constant 0 : i32
    %c0_i32_1 = arith.constant 0 : i32
    return %c0_i32, %c0_i32_0 : i32, i32
  }
  func.func @transform_3(%arg0: i32, %arg1: i32) -> (i32, i32) {
    %c0_i32 = arith.constant 0 : i32
    return %arg0, %arg1 : i32, i32
  }
}

</mosaic_0001>

<bundles_post_ra>
// kernel: tpu_custom_call.1
= control target key start
LH: loop header
LB: loop body
LE: loop exit
PB: predicated region body
PF: predicated region fallthrough
CT: control target
= control target key end

     0   :  { %8 = vsyncpa [#allocation3], 0  ;;  %s8163_s12 = smov [#allocation2]   ;;  %s11833_s0 = inlined_call_operand.vmem [shape: f32[256,16], index: 0, kind: input, shape index: {}]   ;;  %s11834_s1 = inlined_call_operand.hbm [shape: f32[512,256], index: 1, kind: input, shape index: {}]   ;;  %s11835_s2 = inlined_call_operand.vmem [shape: f32[16,32], index: 2, kind: input, shape index: {}]   ;;  %s11836_s3 = inlined_call_operand.vmem [shape: f32[512,32], index: 3, kind: output, shape index: {}]  }
   0x1   :  { %s16_s13 = sshll.u32 %s8163_s12, 4  ;;  %s8139_s16 = scalar_lea.hbm %s11834_s1, 16384  ;;  %s17_s13 = int_to_ptr.vmem [resolvable:$true] %s16_s13 }
   0x2   :  { %p8140_p0 = scmp.ne.s32.totalorder %s11834_s1, %s8139_s16  ;;  %p8143_p1 = scmp.lt.u32.totalorder %s8139_s16, %s11834_s1 }
   0x4   :  { %p8145_p2 = pnand %p8143_p1, %p8140_p0 }
   0x6   :  { %8148 = shalt.err (!%p8145_p2)
}
   0x7   :  { %s8149_s21 = scalar_lea.vmem %s17_s13, 16384  ;;  %p8154_p4 = scmp.lt.s32.totalorder %s17_s13, %s17_s13 }
   0x8   :  { %p8150_p3 = scmp.ne.s32.totalorder %s17_s13, %s8149_s21  ;;  %p8155_p5 = scmp.lt.s32.totalorder %s8149_s21, %s8149_s21 }
   0xa   :  { %p8156_p6 = por %p8155_p5, %p8154_p4 }
   0xc   :  { %p8157_p7 = pnand %p8156_p6, %p8150_p3 }
   0xe   :  { %8160 = shalt.err (!%p8157_p7)
}
   0xf   :  { %s8164_s22 = smov 256   ;;  %s8165_s23 = smov 16  }
  0x10   :  { %22 = dma.hbm_to_vmem [thread:$0]  %s11834_s1, 16384, %s17_s13, [#allocation3], %s8164_s22, %s8164_s22, %s8165_s23  }
  0x11   :  { %8161 = dma.done.wait [#allocation3], 16384  }
  0x12   :  { %8162 = vsyncadd [#allocation3], 4294950912  ;;  %vm62_vm0 = vcmask 130048   ;;  %v60_v0 = vld [vmem:[%s11835_s2] sm:$0xff]  ;;  %v61_v1 = vld [vmem:[%s11835_s2 + $0x8] sm:$0xff]  ;;  %vm6469_vm1 = vcmask 261120  }
  0x13   :  { %v28_v2 = vld [vmem:[%s11833_s0] sm:$0xff]  ;;  %v160_v3 = vand.u32 4294901760, %v60_v0  ;;  %v163_v4 = vand.u32 4294901760, %v61_v1  ;;  %v29_v6 = vld [vmem:[%s11833_s0 + $0x8] sm:$0xff]  ;;  %v30_v7 = vld [vmem:[%s11833_s0 + $0x10] sm:$0xff] }
  0x14   :  { %v64_v5 = vsel %vm62_vm0, %v28_v2, 0  ;;  %v31_v8 = vld [vmem:[%s11833_s0 + $0x18] sm:$0xff]  ;;  %v67_v10 = vsel %vm62_vm0, %v29_v6, 0  ;;  %v70_v11 = vsel %vm62_vm0, %v30_v7, 0  ;;  %v32_v13 = vld [vmem:[%s11833_s0 + $0x20] sm:$0xff]  ;;  %v33_v18 = vld [vmem:[%s11833_s0 + $0x28] sm:$0xff] }
  0x15   :  { %v8218_v9 = vand.u32 4294901760, %v64_v5  ;;  %v73_v12 = vsel %vm62_vm0, %v31_v8, 0  ;;  %v8226_v14 = vpack.c.bf16 %v163_v4, %v160_v3  ;;  %v8228_v15 = vand.u32 4294901760, %v67_v10  ;;  %v34_v39 = vld [vmem:[%s11833_s0 + $0x30] sm:$0xff]  ;;  %v35_v48 = vld [vmem:[%s11833_s0 + $0x38] sm:$0xff]  ;;  %v36_v49 = vld [vmem:[%s11833_s0 + $0x40] sm:$0xff] }
  0x16   :  { %v8230_v16 = vsub.f32 %v60_v0, %v160_v3  ;;  %v8232_v17 = vsub.f32 %v61_v1, %v163_v4  ;;  %v8240_v20 = vand.u32 4294901760, %v70_v11  ;;  %v8242_v21 = vand.u32 4294901760, %v73_v12  ;;  %v37_v50 = vld [vmem:[%s11833_s0 + $0x48] sm:$0xff]  ;;  %v38_v55 = vld [vmem:[%s11833_s0 + $0x50] sm:$0xff]  ;;  %v39_v60 = vld [vmem:[%s11833_s0 + $0x58] sm:$0xff] }
  0x17   :  { %v8238_v19 = vsub.f32 %v64_v5, %v8218_v9  ;;  %v76_v22 = vsel %vm62_vm0, %v32_v13, 0  ;;  %7056 = vmatprep.subr.bf16.mxu0 %v8226_v14  ;;  %v8247_v23 = vsub.f32 %v67_v10, %v8228_v15  ;;  %v79_v30 = vsel %vm62_vm0, %v33_v18, 0  ;;  %v40_v61 = vld [vmem:[%s11833_s0 + $0x60] sm:$0xff] }
  0x18   :  { %v11855_v24 = vand.u32 4294901760, %v8230_v16  ;;  %v11854_v25 = vand.u32 4294901760, %v8232_v17  ;;  %v8251_v26 = vand.u32 4294901760, %v76_v22  ;;  %7058 = vmatpush3.bf16.msra.mxu0 %v8226_v14  ;;  %v8256_v28 = vsub.f32 %v70_v11, %v8240_v20  ;;  %v41_v11 = vld [vmem:[%s11833_s0 + $0x68] sm:$0xff] }
  0x19   :  { %v11853_v27 = vand.u32 4294901760, %v8238_v19  ;;  %v8259_v29 = vsub.f32 %v73_v12, %v8242_v21  ;;  %v11851_v31 = vand.u32 4294901760, %v8247_v23  ;;  %v8277_v38 = vand.u32 4294901760, %v79_v30 }
  0x1a   :  { %v550_v32 = vsub.f32 %v8230_v16, %v11855_v24  ;;  %v557_v33 = vsub.f32 %v8232_v17, %v11854_v25  ;;  %v8270_v34 = vsub.f32 %v76_v22, %v8251_v26  ;;  %v11849_v36 = vand.u32 4294901760, %v8256_v28  ;;  %v53_v25 = vld [vmem:[%s11833_s0 + $0xc8] sm:$0xff] }
  0x1b   :  { %v229_v35 = vsub.f32 %v8238_v19, %v11853_v27  ;;  %v11848_v37 = vand.u32 4294901760, %v8259_v29  ;;  %v239_v40 = vsub.f32 %v8247_v23, %v11851_v31  ;;  %v8293_v47 = vsub.f32 %v79_v30, %v8277_v38 }
  0x1c   :  { %v551_v41 = vand.u32 4294901760, %v550_v32  ;;  %v558_v42 = vand.u32 4294901760, %v557_v33  ;;  %v11846_v43 = vand.u32 4294901760, %v8270_v34  ;;  %v249_v45 = vsub.f32 %v8256_v28, %v11849_v36 }
  0x1d   :  { %v230_v44 = vand.u32 4294901760, %v229_v35  ;;  %v259_v46 = vsub.f32 %v8259_v29, %v11848_v37  ;;  %v240_v51 = vand.u32 4294901760, %v239_v40  ;;  %v82_v54 = vsel %vm62_vm0, %v34_v39, 0 }
  0x1e   :  { %v7059_v52 = vpack.c.bf16 %v558_v42, %v551_v41  ;;  %v269_v53 = vsub.f32 %v8270_v34, %v11846_v43  ;;  %v250_v56 = vand.u32 4294901760, %v249_v45  ;;  %v11845_v58 = vand.u32 4294901760, %v8293_v47 }
  0x1f   :  { %6747 = vmatprep.mubr.f32.mxu0 %v230_v44  ;;  %v260_v57 = vand.u32 4294901760, %v259_v46  ;;  %v8312_v59 = vand.u32 4294901760, %v82_v54  ;;  %v85_v63 = vsel %vm62_vm0, %v35_v48, 0  ;;  %v88_v0 = vsel %vm62_vm0, %v36_v49, 0  ;;  %v42_v49 = vld [vmem:[%s11833_s0 + $0x70] sm:$0xff] }
  0x20   :  { %6748 = vmatmul.mubr.f32.vlgmr.msra.gmra.mrb[0].mxu0 %v240_v51  ;;  %7060 = vmatprep.subr.bf16.mxu0 %v7059_v52  ;;  %v270_v62 = vand.u32 4294901760, %v269_v53  ;;  %v91_v1 = vsel %vm62_vm0, %v37_v50, 0  ;;  %v279_v2 = vsub.f32 %v8293_v47, %v11845_v58  ;;  %v8329_v4 = vand.u32 4294901760, %v85_v63 }
  0x21   :  { %7062 = vmatpush3.bf16.msra.mxu0 %v7059_v52  ;;  %6750 = vmatprep.mubr.f32.mxu0 %v250_v56  ;;  %v8327_v3 = vsub.f32 %v82_v54, %v8312_v59  ;;  %v8331_v5 = vand.u32 4294901760, %v88_v0  ;;  %v8333_v6 = vand.u32 4294901760, %v91_v1  ;;  %v94_v7 = vsel %vm62_vm0, %v38_v55, 0 }
  0x22   :  { %v97_v8 = vsel %vm62_vm0, %v39_v60, 0  ;;  %v100_v10 = vsel %vm62_vm0, %v40_v61, 0  ;;  %v280_v12 = vand.u32 4294901760, %v279_v2  ;;  %v8343_v18 = vsub.f32 %v85_v63, %v8329_v4  ;;  %v43_v60 = vld [vmem:[%s11833_s0 + $0x78] sm:$0xff]  ;;  %v44_v61 = vld [vmem:[%s11833_s0 + $0x80] sm:$0xff] }
  0x23   :  { %v11844_v13 = vand.u32 4294901760, %v8327_v3  ;;  %v8346_v22 = vsub.f32 %v88_v0, %v8331_v5  ;;  %v8349_v30 = vsub.f32 %v91_v1, %v8333_v6  ;;  %v8351_v32 = vand.u32 4294901760, %v94_v7 }
  0x24   :  { %6751 = vmatmul.mubr.f32.gmra.mrb[2].mxu0 %v260_v57  ;;  %v8353_v33 = vand.u32 4294901760, %v97_v8  ;;  %v8355_v35 = vand.u32 4294901760, %v100_v10  ;;  %v11842_v40 = vand.u32 4294901760, %v8343_v18  ;;  %v103_v42 = vsel %vm62_vm0, %v41_v11, 0 }
  0x25   :  { %12466 = vst [vmem:[#allocation5_spill] sm:$0xff] %v8349_v30  ;;  %6753 = vmatprep.mubr.f32.mxu0 %v270_v62  ;;  %v289_v39 = vsub.f32 %v8327_v3, %v11844_v13  ;;  %v11841_v41 = vand.u32 4294901760, %v8346_v22  ;;  %v11840_v44 = vand.u32 4294901760, %v8349_v30  ;;  %v8365_v45 = vsub.f32 %v94_v7, %v8351_v32 }
  0x26   :  { %v8368_v46 = vsub.f32 %v97_v8, %v8353_v33  ;;  %v8371_v48 = vsub.f32 %v100_v10, %v8355_v35  ;;  %v299_v51 = vsub.f32 %v8343_v18, %v11842_v40  ;;  %v8382_v53 = vand.u32 4294901760, %v103_v42  ;;  %v45_v10 = vld [vmem:[%s11833_s0 + $0x88] sm:$0xff] }
  0x27   :  { %12467 = vst [vmem:[#allocation6_spill] sm:$0xff] %v8365_v45  ;;  %v290_v50 = vand.u32 4294901760, %v289_v39  ;;  %v309_v52 = vsub.f32 %v8346_v22, %v11841_v41  ;;  %v319_v54 = vsub.f32 %v8349_v30, %v11840_v44  ;;  %v11839_v55 = vand.u32 4294901760, %v8365_v45  ;;  %v48_v41 = vld [vmem:[%s11833_s0 + $0xa0] sm:$0xff] }
  0x28   :  { %12468 = vst [vmem:[#allocation7_spill] sm:$0xff] %v8368_v46  ;;  %12469 = vst [vmem:[#allocation8_spill] sm:$0xff] %v8371_v48  ;;  %6754 = vmatmul.mubr.f32.gmra.mrb[4].mxu0 %v280_v12  ;;  %v11838_v56 = vand.u32 4294901760, %v8368_v46  ;;  %v11837_v57 = vand.u32 4294901760, %v8371_v48  ;;  %v300_v62 = vand.u32 4294901760, %v299_v51  ;;  %v8397_v0 = vsub.f32 %v103_v42, %v8382_v53 }
  0x29   :  { %6756 = vmatprep.mubr.f32.mxu0 %v290_v50  ;;  %v310_v63 = vand.u32 4294901760, %v309_v52  ;;  %v106_v1 = vsel %vm62_vm0, %v42_v49, 0  ;;  %v329_v2 = vsub.f32 %v8365_v45, %v11839_v55  ;;  %v109_v39 = vsel %vm62_vm0, %v43_v60, 0  ;;  %v46_v49 = vld [vmem:[%s11833_s0 + $0x90] sm:$0xff]  ;;  %v47_v50 = vld [vmem:[%s11833_s0 + $0x98] sm:$0xff] }
  0x2a   :  { %12470 = vst [vmem:[#allocation9_spill] sm:$0xff] %v8397_v0  ;;  %v339_v7 = vsub.f32 %v8368_v46, %v11838_v56  ;;  %v349_v8 = vsub.f32 %v8371_v48, %v11837_v57  ;;  %v11843_v11 = vand.u32 4294901760, %v8397_v0  ;;  %v8413_v12 = vand.u32 4294901760, %v106_v1 }
  0x2b   :  { %v112_v42 = vsel %vm62_vm0, %v44_v61, 0  ;;  %v320_v51 = vand.u32 4294901760, %v319_v54  ;;  %v330_v52 = vand.u32 4294901760, %v329_v2  ;;  %v8423_v56 = vand.u32 4294901760, %v109_v39 }
  0x2c   :  { %6757 = vmatmul.mubr.f32.gmra.mrb[6].mxu0 %v300_v62  ;;  %v340_v57 = vand.u32 4294901760, %v339_v7  ;;  %v350_v55 = vand.u32 4294901760, %v349_v8  ;;  %v8426_v60 = vsub.f32 %v106_v1, %v8413_v12  ;;  %v8428_v61 = vand.u32 4294901760, %v112_v42 }
  0x2d   :  { %6759 = vmatprep.mubr.f32.mxu0 %v310_v63  ;;  %v115_v44 = vsel %vm62_vm0, %v45_v10, 0  ;;  %v8435_v62 = vsub.f32 %v109_v39, %v8423_v56  ;;  %v118_v2 = vsel %vm62_vm0, %v46_v49, 0  ;;  %v121_v63 = vsel %vm62_vm0, %v47_v50, 0  ;;  %v49_v39 = vld [vmem:[%s11833_s0 + $0xa8] sm:$0xff] }
  0x2e   :  { %12471 = vst [vmem:[#allocation10_spill] sm:$0xff] %v8426_v60  ;;  %v8437_v54 = vand.u32 4294901760, %v115_v44  ;;  %v359_v1 = vsub.f32 %v8397_v0, %v11843_v11  ;;  %v11847_v7 = vand.u32 4294901760, %v8426_v60  ;;  %v8446_v8 = vsub.f32 %v112_v42, %v8428_v61 }
  0x2f   :  { %12472 = vst [vmem:[#allocation11_spill] sm:$0xff] %v8435_v62  ;;  %v8448_v10 = vand.u32 4294901760, %v118_v2  ;;  %v11850_v49 = vand.u32 4294901760, %v8435_v62  ;;  %v8457_v40 = vand.u32 4294901760, %v121_v63  ;;  %v124_v11 = vsel %vm62_vm0, %v48_v41, 0  ;;  %v50_v41 = vld [vmem:[%s11833_s0 + $0xb0] sm:$0xff] }
  0x30   :  { %12473 = vst [vmem:[#allocation12_spill] sm:$0xff] %v8446_v8  ;;  %6760 = vmatmul.mubr.f32.gmra.mrb[8].mxu0 %v320_v51  ;;  %v8455_v50 = vsub.f32 %v115_v44, %v8437_v54  ;;  %v369_v42 = vsub.f32 %v8426_v60, %v11847_v7  ;;  %v11852_v13 = vand.u32 4294901760, %v8446_v8  ;;  %v8467_v51 = vand.u32 4294901760, %v124_v11 }
  0x31   :  { %6762 = vmatprep.mubr.f32.mxu0 %v330_v52  ;;  %v8465_v58 = vsub.f32 %v118_v2, %v8448_v10  ;;  %v379_v44 = vsub.f32 %v8435_v62, %v11850_v49  ;;  %v127_v43 = vsel %vm62_vm0, %v49_v39, 0  ;;  %v360_v7 = vand.u32 4294901760, %v359_v1  ;;  %v51_v39 = vld [vmem:[%s11833_s0 + $0xb8] sm:$0xff]  ;;  %v52_v49 = vld [vmem:[%s11833_s0 + $0xc0] sm:$0xff] }
  0x32   :  { %12474 = vst [vmem:[#allocation13_spill] sm:$0xff] %v8455_v50  ;;  %v11860_v52 = vand.u32 4294901760, %v8455_v50  ;;  %v389_v2 = vsub.f32 %v8446_v8, %v11852_v13  ;;  %v8481_v37 = vsub.f32 %v121_v63, %v8457_v40  ;;  %v8483_v36 = vand.u32 4294901760, %v127_v43 }
  0x33   :  { %12475 = vst [vmem:[#allocation14_spill] sm:$0xff] %v8465_v58  ;;  %v8493_v31 = vsub.f32 %v124_v11, %v8467_v51  ;;  %v130_v63 = vsel %vm62_vm0, %v50_v41, 0  ;;  %v380_v13 = vand.u32 4294901760, %v379_v44  ;;  %v136_v11 = vsel %vm62_vm0, %v52_v49, 0  ;;  %v54_v44 = vld [vmem:[%s11833_s0 + $0xd0] sm:$0xff]  ;;  %v56_v49 = vld [vmem:[%s11833_s0 + $0xe0] sm:$0xff] }
  0x34   :  { %6763 = vmatmul.mubr.f32.gmra.mrb[10].mxu0 %v340_v57  ;;  %12476 = vst [vmem:[#allocation15_spill] sm:$0xff] %v8481_v37  ;;  %v370_v57 = vand.u32 4294901760, %v369_v42  ;;  %v8496_v27 = vand.u32 4294901760, %v130_v63  ;;  %v399_v24 = vsub.f32 %v8455_v50, %v11860_v52  ;;  %v133_v42 = vsel %vm62_vm0, %v51_v39, 0 }
  0x35   :  { %6765 = vmatprep.mubr.f32.mxu0 %v350_v55  ;;  %12477 = vst [vmem:[#allocation16_spill] sm:$0xff] %v8493_v31  ;;  %v8505_v55 = vsub.f32 %v127_v43, %v8483_v36  ;;  %v390_v41 = vand.u32 4294901760, %v389_v2  ;;  %v8516_v62 = vand.u32 4294901760, %v133_v42  ;;  %v12480_v43 = vand.u32 4294901760, %v8465_v58  ;;  %v55_v2 = vld [vmem:[%s11833_s0 + $0xd8] sm:$0xff] }
  0x36   :  { %v8514_v8 = vsub.f32 %v130_v63, %v8496_v27  ;;  %v8522_v52 = vand.u32 4294901760, %v136_v11  ;;  %v139_v50 = vsel %vm62_vm0, %v53_v25, 0  ;;  %v400_v25 = vand.u32 4294901760, %v399_v24  ;;  %v57_v24 = vld [vmem:[%s11833_s0 + $0xe8] sm:$0xff] }
  0x37   :  { %12478 = vst [vmem:[#allocation17_spill] sm:$0xff] %v8505_v55  ;;  %v409_v39 = vsub.f32 %v8465_v58, %v12480_v43  ;;  %v8532_v1 = vsub.f32 %v133_v42, %v8516_v62  ;;  %v8534_v43 = vand.u32 4294901760, %v139_v50  ;;  %v12486_v42 = vand.u32 4294901760, %v8493_v31 }
  0x38   :  { %6766 = vmatmul.mubr.f32.gmra.mrb[12].mxu0 %v360_v7  ;;  %12479 = vst [vmem:[#allocation18_spill] sm:$0xff] %v8514_v8  ;;  %12481 = vst [vmem:[#allocation19_spill] sm:$0xff] %v8522_v52  ;;  %v142_v7 = vsel %vm62_vm0, %v54_v44, 0  ;;  %v12484_v44 = vand.u32 4294901760, %v8481_v37  ;;  %v8543_v60 = vsub.f32 %v136_v11, %v8522_v52  ;;  %v145_v48 = vsel %vm62_vm0, %v55_v2, 0 }
  0x39   :  { %6768 = vmatprep.mubr.f32.mxu0 %v370_v57  ;;  %12482 = vst [vmem:[#allocation20_spill] sm:$0xff] %v8532_v1  ;;  %12483 = vst [vmem:[#allocation21_spill] sm:$0xff] %v8534_v43  ;;  %v410_v57 = vand.u32 4294901760, %v409_v39  ;;  %v429_v63 = vsub.f32 %v8493_v31, %v12486_v42  ;;  %v8548_v0 = vand.u32 4294901760, %v142_v7  ;;  %v8563_v31 = vsub.f32 %v139_v50, %v8534_v43 }
  0x3a   :  { %v419_v58 = vsub.f32 %v8481_v37, %v12484_v44  ;;  %12485 = vst [vmem:[#allocation22_spill] sm:$0xff] %v8543_v60  ;;  %v12488_v44 = vand.u32 4294901760, %v8505_v55  ;;  %v8569_v46 = vand.u32 4294901760, %v145_v48  ;;  %v151_v50 = vsel %vm62_vm0, %v57_v24, 0 }
  0x3b   :  { %12487 = vst [vmem:[#allocation23_spill] sm:$0xff] %v8548_v0  ;;  %12490 = vst [vmem:[#allocation24_spill] sm:$0xff] %v8563_v31  ;;  %v12493_v37 = vand.u32 4294901760, %v8532_v1 }
  0x3c   :  { %6769 = vmatmul.mubr.f32.gmra.mrb[14].mxu0 %v380_v13  ;;  %v148_v13 = vsel %vm62_vm0, %v56_v49, 0  ;;  %v439_v11 = vsub.f32 %v8505_v55, %v12488_v44  ;;  %v58_v49 = vld [vmem:[%s11833_s0 + $0xf0] sm:$0xff]  ;;  %v420_v2 = vand.u32 4294901760, %v419_v58  ;;  %12491 = vst [vmem:[#allocation25_spill] sm:$0xff] %v8569_v46  ;;  %v430_v44 = vand.u32 4294901760, %v429_v63 }
  0x3d   :  { %6771 = vmatprep.mubr.f32.mxu0 %v390_v41  ;;  %v12489_v41 = vand.u32 4294901760, %v8514_v8  ;;  %v8572_v55 = vsub.f32 %v142_v7, %v8548_v0  ;;  %v154_v42 = vsel %vm62_vm0, %v58_v49, 0  ;;  %v12494_v7 = vand.u32 4294901760, %v8543_v60 }
  0x3e   :  { %v440_v58 = vand.u32 4294901760, %v439_v11  ;;  %v8589_v24 = vsub.f32 %v145_v48, %v8569_v46  ;;  %v8591_v49 = vand.u32 4294901760, %v151_v50  ;;  %v7063_v11 = vpack.c.bf16 %v8232_v17, %v8230_v16 }
  0x3f   :  { %v449_v39 = vsub.f32 %v8514_v8, %v12489_v41  ;;  %v8574_v41 = vand.u32 4294901760, %v148_v13  ;;  %v469_v45 = vsub.f32 %v8543_v60, %v12494_v7  ;;  %v8599_v63 = vand.u32 4294901760, %v154_v42 }
  0x40   :  { %6772 = vmatmul.mubr.f32.gmra.mrb[16].mxu0 %v400_v25  ;;  %v59_v25 = vld [vmem:[%s11833_s0 + $0xf8] sm:$0xff]  ;;  %12495 = vst [vmem:[#allocation27_spill] sm:$0xff] %v8589_v24  ;;  %12496 = vst [vmem:[#allocation28_spill] sm:$0xff] %v8591_v49  ;;  %7064 = vmatprep.subr.bf16.mxu0 %v7063_v11  ;;  %v12498_v48 = vand.u32 4294901760, %v8563_v31  ;;  %v12500_v30 = vand.u32 4294901760, %v8572_v55 }
  0x41   :  { %6774 = vmatprep.mubr.f32.mxu0 %v410_v57  ;;  %12492 = vst [vmem:[#allocation26_spill] sm:$0xff] %v8574_v41  ;;  %v450_v8 = vand.u32 4294901760, %v449_v39  ;;  %v459_v57 = vsub.f32 %v8532_v1, %v12493_v37  ;;  %v8597_v37 = vsub.f32 %v148_v13, %v8574_v41  ;;  %12497 = vst [vmem:[#allocation29_spill] sm:$0xff] %v8599_v63  ;;  %v11891_v1 = vand.u32 4294901760, %v8589_v24 }
  0x42   :  { %v479_v60 = vsub.f32 %v8563_v31, %v12498_v48  ;;  %v470_v13 = vand.u32 4294901760, %v469_v45 }
  0x43   :  { %v460_v7 = vand.u32 4294901760, %v459_v57  ;;  %v11897_v57 = vand.u32 4294901760, %v8597_v37 }
  0x44   :  { %6775 = vmatmul.mubr.f32.gmra.mrb[18].mxu0 %v420_v2  ;;  %v157_v2 = vsel %vm62_vm0, %v59_v25, 0  ;;  %v489_v25 = vsub.f32 %v8572_v55, %v12500_v30  ;;  %v480_v48 = vand.u32 4294901760, %v479_v60 }
  0x45   :  { %6777 = vmatprep.mubr.f32.mxu0 %v430_v44  ;;  %v8607_v44 = vsub.f32 %v151_v50, %v8591_v49  ;;  %v8609_v39 = vand.u32 4294901760, %v157_v2  ;;  %v499_v50 = vsub.f32 %v8589_v24, %v11891_v1  ;;  %v509_v30 = vsub.f32 %v8597_v37, %v11897_v57  ;;  %v12518_v57 = vld [vmem:[#allocation22_spill] sm:$0xff] }
  0x46   :  { %v490_v45 = vand.u32 4294901760, %v489_v25 }
  0x47   :  { %12499 = vst [vmem:[#allocation30_spill] sm:$0xff] %v8609_v39  ;;  %v11896_v31 = vand.u32 4294901760, %v8607_v44  ;;  %v510_v24 = vand.u32 4294901760, %v509_v30  ;;  %v12505_v30 = vld [vmem:[#allocation7_spill] sm:$0xff] }
  0x48   :  { %6778 = vmatmul.mubr.f32.gmra.mrb[20].mxu0 %v440_v58  ;;  %v8616_v58 = vsub.f32 %v154_v42, %v8599_v63 }
  0x49   :  { %6780 = vmatprep.mubr.f32.mxu0 %v450_v8  ;;  %v8623_v8 = vsub.f32 %v157_v2, %v8609_v39  ;;  %v519_v60 = vsub.f32 %v8607_v44, %v11896_v31  ;;  %v12517_v31 = vld [vmem:[#allocation20_spill] sm:$0xff] }
  0x4a   :  { %v11895_v42 = vand.u32 4294901760, %v8616_v58 }
  0x4b   :  { %v11894_v1 = vand.u32 4294901760, %v8623_v8 }
  0x4c   :  { %6781 = vmatmul.mubr.f32.gmra.mrb[22].mxu0 %v460_v7  ;;  %v500_v7 = vand.u32 4294901760, %v499_v50  ;;  %v529_v2 = vsub.f32 %v8616_v58, %v11895_v42  ;;  %v12516_v42 = vld [vmem:[#allocation18_spill] sm:$0xff] }
  0x4d   :  { %6783 = vmatprep.mubr.f32.mxu0 %v470_v13  ;;  %v520_v13 = vand.u32 4294901760, %v519_v60  ;;  %v539_v25 = vsub.f32 %v8623_v8, %v11894_v1  ;;  %v12507_v60 = vld [vmem:[#allocation9_spill] sm:$0xff] }
  0x4e   :  { %v12515_v1 = vld [vmem:[#allocation17_spill] sm:$0xff] }
  0x4f   :  { %v540_v50 = vand.u32 4294901760, %v539_v25  ;;  %v12510_v25 = vld [vmem:[#allocation12_spill] sm:$0xff] }
  0x50   :  { %6784 = vmatmul.mubr.f32.gmra.mrb[24].mxu0 %v480_v48  ;;  %v530_v48 = vand.u32 4294901760, %v529_v2  ;;  %v12508_v2 = vld [vmem:[#allocation10_spill] sm:$0xff] }
  0x51   :  { %6786 = vmatprep.mubr.f32.mxu0 %v490_v45 }
  0x54   :  { %6787 = vmatmul.mubr.f32.gmra.mrb[26].mxu0 %v500_v7  ;;  %v12506_v7 = vld [vmem:[#allocation8_spill] sm:$0xff] }
  0x55   :  { %6789 = vmatprep.mubr.f32.mxu0 %v510_v24  ;;  %v12501_v24 = vand.u32 4294901760, %v8230_v16  ;;  %v12503_v16 = vld [vmem:[#allocation5_spill] sm:$0xff] }
  0x58   :  { %6790 = vmatmul.mubr.f32.gmra.mrb[28].mxu0 %v520_v13  ;;  %v12509_v13 = vld [vmem:[#allocation11_spill] sm:$0xff] }
  0x59   :  { %6792 = vmatprep.mubr.f32.mxu0 %v530_v48  ;;  %v12511_v48 = vld [vmem:[#allocation13_spill] sm:$0xff] }
  0x5c   :  { %6793 = vmatmul.mubr.f32.gmra.mrb[30].mxu0 %v540_v50  ;;  %v12512_v50 = vld [vmem:[#allocation14_spill] sm:$0xff] }
  0x5d   :  { %6799 = vmatprep.mubr.f32.mxu0 %v8218_v9 }
  0x60   :  { %6800 = vmatmul.mubr.f32.vlgmr.msra.gmra.mrb[0].mxu0 %v8228_v15 }
  0x61   :  { %7066 = vmatpush3.bf16.msra.mxu0 %v7063_v11  ;;  %6802 = vmatprep.mubr.f32.mxu0 %v8240_v20  ;;  %v12502_v11 = vand.u32 4294901760, %v8232_v17  ;;  %v12504_v17 = vld [vmem:[#allocation6_spill] sm:$0xff] }
  0x62   :  { %7068 = vmatprep.subr.bf16.mxu0 %v8226_v14 }
  0x63   :  { %v7071_v45 = vpack.c.bf16 %v12502_v11, %v12501_v24  ;;  %v12513_v24 = vld [vmem:[#allocation15_spill] sm:$0xff]  ;;  %v12514_v11 = vld [vmem:[#allocation16_spill] sm:$0xff] }
  0x64   :  { %6803 = vmatmul.mubr.f32.gmra.mrb[2].mxu0 %v8242_v21 }
  0x65   :  { %6805 = vmatprep.mubr.f32.mxu0 %v8251_v26 }
  0x68   :  { %6806 = vmatmul.mubr.f32.gmra.mrb[4].mxu0 %v8277_v38 }
  0x69   :  { %6808 = vmatprep.mubr.f32.mxu0 %v8312_v59 }
  0x6c   :  { %6809 = vmatmul.mubr.f32.gmra.mrb[6].mxu0 %v8329_v4 }
  0x6d   :  { %6811 = vmatprep.mubr.f32.mxu0 %v8331_v5 }
  0x70   :  { %6812 = vmatmul.mubr.f32.gmra.mrb[8].mxu0 %v8333_v6 }
  0x71   :  { %6814 = vmatprep.mubr.f32.mxu0 %v8351_v32 }
  0x74   :  { %6815 = vmatmul.mubr.f32.gmra.mrb[10].mxu0 %v8353_v33 }
  0x75   :  { %6817 = vmatprep.mubr.f32.mxu0 %v8355_v35 }
  0x78   :  { %6818 = vmatmul.mubr.f32.gmra.mrb[12].mxu0 %v8382_v53 }
  0x79   :  { %6820 = vmatprep.mubr.f32.mxu0 %v8413_v12 }
  0x7c   :  { %6821 = vmatmul.mubr.f32.gmra.mrb[14].mxu0 %v8423_v56 }
  0x7d   :  { %6823 = vmatprep.mubr.f32.mxu0 %v8428_v61 }
  0x80   :  { %6824 = vmatmul.mubr.f32.gmra.mrb[16].mxu0 %v8437_v54 }
  0x81   :  { %6826 = vmatprep.mubr.f32.mxu0 %v8448_v10 }
  0x84   :  { %6827 = vmatmul.mubr.f32.gmra.mrb[18].mxu0 %v8457_v40 }
  0x85   :  { %6829 = vmatprep.mubr.f32.mxu0 %v8467_v51 }
  0x88   :  { %6830 = vmatmul.mubr.f32.gmra.mrb[20].mxu0 %v8483_v36 }
  0x89   :  { %6832 = vmatprep.mubr.f32.mxu0 %v8496_v27 }
  0x8c   :  { %6833 = vmatmul.mubr.f32.gmra.mrb[22].mxu0 %v8516_v62 }
  0x8d   :  { %6835 = vmatprep.mubr.f32.mxu0 %v8522_v52  ;;  %v12526_v52 = vand.u32 4294901760, %v8293_v47 }
  0x90   :  { %6836 = vmatmul.mubr.f32.gmra.mrb[24].mxu0 %v8534_v43  ;;  %v12525_v43 = vand.u32 4294901760, %v8270_v34 }
  0x91   :  { %6838 = vmatprep.mubr.f32.mxu0 %v8548_v0  ;;  %v12524_v0 = vand.u32 4294901760, %v8259_v29 }
  0x94   :  { %6839 = vmatmul.mubr.f32.gmra.mrb[26].mxu0 %v8569_v46  ;;  %v12523_v46 = vand.u32 4294901760, %v8256_v28 }
  0x95   :  { %6841 = vmatprep.mubr.f32.mxu0 %v8574_v41  ;;  %v12522_v41 = vand.u32 4294901760, %v8247_v23 }
  0x98   :  { %6842 = vmatmul.mubr.f32.gmra.mrb[28].mxu0 %v8591_v49  ;;  %v12521_v49 = vand.u32 4294901760, %v8238_v19 }
  0x99   :  { %6844 = vmatprep.mubr.f32.mxu0 %v8599_v63  ;;  %v12520_v63 = vld [vmem:[#allocation27_spill] sm:$0xff] }
  0x9c   :  { %6845 = vmatmul.mubr.f32.gmra.mrb[30].mxu0 %v8609_v39  ;;  %v12519_v39 = vld [vmem:[#allocation24_spill] sm:$0xff] }
  0x9d   :  { %6851 = vmatprep.mubr.f32.mxu0 %v8238_v19  ;;  %v12527_v19 = vand.u32 4294901760, %v8327_v3 }
  0xa0   :  { %6852 = vmatmul.mubr.f32.vlgmr.msra.gmra.mrb[0].mxu0 %v8247_v23  ;;  %v12528_v23 = vand.u32 4294901760, %v8343_v18 }
  0xa1   :  { %7070 = vmatpush3.bf16.msra.mxu0 %v8226_v14  ;;  %6854 = vmatprep.mubr.f32.mxu0 %v8256_v28  ;;  %v12529_v28 = vand.u32 4294901760, %v8346_v22 }
  0xa2   :  { %7072 = vmatprep.subr.bf16.mxu0 %v7071_v45 }
  0xa4   :  { %6855 = vmatmul.mubr.f32.gmra.mrb[2].mxu0 %v8259_v29  ;;  %v12531_v29 = vand.u32 4294901760, %v12504_v17 }
  0xa5   :  { %6857 = vmatprep.mubr.f32.mxu0 %v8270_v34  ;;  %v12532_v34 = vand.u32 4294901760, %v12505_v30 }
  0xa8   :  { %6858 = vmatmul.mubr.f32.gmra.mrb[4].mxu0 %v8293_v47  ;;  %v12533_v47 = vand.u32 4294901760, %v12506_v7 }
  0xa9   :  { %6860 = vmatprep.mubr.f32.mxu0 %v8327_v3  ;;  %v12534_v3 = vand.u32 4294901760, %v12507_v60 }
  0xac   :  { %6861 = vmatmul.mubr.f32.gmra.mrb[6].mxu0 %v8343_v18  ;;  %v12535_v18 = vand.u32 4294901760, %v12508_v2 }
  0xad   :  { %6863 = vmatprep.mubr.f32.mxu0 %v8346_v22  ;;  %v12536_v22 = vand.u32 4294901760, %v12509_v13 }
  0xb0   :  { %6864 = vmatmul.mubr.f32.gmra.mrb[8].mxu0 %v12503_v16 }
  0xb1   :  { %6866 = vmatprep.mubr.f32.mxu0 %v12504_v17  ;;  %v12544_v17 = vand.u32 4294901760, %v12517_v31 }
  0xb4   :  { %6867 = vmatmul.mubr.f32.gmra.mrb[10].mxu0 %v12505_v30  ;;  %v12545_v30 = vand.u32 4294901760, %v12518_v57 }
  0xb5   :  { %6869 = vmatprep.mubr.f32.mxu0 %v12506_v7  ;;  %v12546_v7 = vand.u32 4294901760, %v12519_v39 }
  0xb8   :  { %6870 = vmatmul.mubr.f32.gmra.mrb[12].mxu0 %v12507_v60  ;;  %v12547_v60 = vand.u32 4294901760, %v8572_v55 }
  0xb9   :  { %6872 = vmatprep.mubr.f32.mxu0 %v12508_v2  ;;  %v12548_v2 = vand.u32 4294901760, %v12520_v63 }
  0xbc   :  { %6873 = vmatmul.mubr.f32.gmra.mrb[14].mxu0 %v12509_v13 }
  0xbd   :  { %6875 = vmatprep.mubr.f32.mxu0 %v12510_v25 }
  0xc0   :  { %6876 = vmatmul.mubr.f32.gmra.mrb[16].mxu0 %v12511_v48 }
  0xc1   :  { %6878 = vmatprep.mubr.f32.mxu0 %v12512_v50 }
  0xc4   :  { %6879 = vmatmul.mubr.f32.gmra.mrb[18].mxu0 %v12513_v24 }
  0xc5   :  { %6881 = vmatprep.mubr.f32.mxu0 %v12514_v11 }
  0xc8   :  { %6882 = vmatmul.mubr.f32.gmra.mrb[20].mxu0 %v12515_v1 }
  0xc9   :  { %6884 = vmatprep.mubr.f32.mxu0 %v12516_v42 }
  0xcc   :  { %6885 = vmatmul.mubr.f32.gmra.mrb[22].mxu0 %v12517_v31  ;;  %v12551_v31 = vand.u32 4294901760, %v8616_v58 }
  0xcd   :  { %6887 = vmatprep.mubr.f32.mxu0 %v12518_v57  ;;  %v12552_v57 = vand.u32 4294901760, %v8623_v8 }
  0xd0   :  { %6888 = vmatmul.mubr.f32.gmra.mrb[24].mxu0 %v12519_v39  ;;  %v12556_v39 = vld [vmem:[#allocation25_spill] sm:$0xff] }
  0xd1   :  { %6890 = vmatprep.mubr.f32.mxu0 %v8572_v55  ;;  %v12554_v55 = vld [vmem:[#allocation21_spill] sm:$0xff] }
  0xd4   :  { %6891 = vmatmul.mubr.f32.gmra.mrb[26].mxu0 %v12520_v63  ;;  %v12555_v63 = vld [vmem:[#allocation23_spill] sm:$0xff] }
  0xd5   :  { %6893 = vmatprep.mubr.f32.mxu0 %v8597_v37 }
  0xd8   :  { %6894 = vmatmul.mubr.f32.gmra.mrb[28].mxu0 %v8607_v44 }
  0xd9   :  { %6896 = vmatprep.mubr.f32.mxu0 %v8616_v58  ;;  %v12559_v58 = vld [vmem:[#allocation29_spill] sm:$0xff] }
  0xdc   :  { %6897 = vmatmul.mubr.f32.gmra.mrb[30].mxu0 %v8623_v8  ;;  %v12560_v8 = vld [vmem:[#allocation30_spill] sm:$0xff] }
  0xdd   :  { %6903 = vmatprep.mubr.f32.mxu0 %v12521_v49  ;;  %v12541_v49 = vand.u32 4294901760, %v12514_v11 }
  0xe0   :  { %6904 = vmatmul.mubr.f32.vlgmr.msra.gmra.mrb[0].mxu0 %v12522_v41  ;;  %v12540_v41 = vand.u32 4294901760, %v12513_v24 }
  0xe1   :  { %7074 = vmatpush3.bf16.msra.mxu0 %v7071_v45  ;;  %6906 = vmatprep.mubr.f32.mxu0 %v12523_v46  ;;  %v12530_v46 = vand.u32 4294901760, %v12503_v16  ;;  %v12542_v45 = vand.u32 4294901760, %v12515_v1  ;;  %v12543_v16 = vand.u32 4294901760, %v12516_v42  ;;  %v12549_v1 = vand.u32 4294901760, %v8597_v37  ;;  %v12557_v37 = vld [vmem:[#allocation26_spill] sm:$0xff] }
  0xe2   :  { %7076 = vmatprep.subr.bf16.mxu0 %v8226_v14  ;;  %v12550_v42 = vand.u32 4294901760, %v8607_v44  ;;  %v12558_v44 = vld [vmem:[#allocation28_spill] sm:$0xff] }
  0xe4   :  { %6907 = vmatmul.mubr.f32.gmra.mrb[2].mxu0 %v12524_v0  ;;  %v12537_v0 = vand.u32 4294901760, %v12510_v25 }
  0xe5   :  { %6909 = vmatprep.mubr.f32.mxu0 %v12525_v43  ;;  %v12539_v43 = vand.u32 4294901760, %v12512_v50 }
  0xe8   :  { %6910 = vmatmul.mubr.f32.gmra.mrb[4].mxu0 %v12526_v52  ;;  %v12538_v52 = vand.u32 4294901760, %v12511_v48 }
  0xe9   :  { %6912 = vmatprep.mubr.f32.mxu0 %v12527_v19 }
  0xec   :  { %6913 = vmatmul.mubr.f32.gmra.mrb[6].mxu0 %v12528_v23 }
  0xed   :  { %6915 = vmatprep.mubr.f32.mxu0 %v12529_v28 }
  0xf0   :  { %6916 = vmatmul.mubr.f32.gmra.mrb[8].mxu0 %v12530_v46 }
  0xf1   :  { %6918 = vmatprep.mubr.f32.mxu0 %v12531_v29 }
  0xf4   :  { %6919 = vmatmul.mubr.f32.gmra.mrb[10].mxu0 %v12532_v34 }
  0xf5   :  { %6921 = vmatprep.mubr.f32.mxu0 %v12533_v47 }
  0xf8   :  { %6922 = vmatmul.mubr.f32.gmra.mrb[12].mxu0 %v12534_v3 }
  0xf9   :  { %6924 = vmatprep.mubr.f32.mxu0 %v12535_v18 }
  0xfc   :  { %6925 = vmatmul.mubr.f32.gmra.mrb[14].mxu0 %v12536_v22 }
  0xfd   :  { %6927 = vmatprep.mubr.f32.mxu0 %v12537_v0 }
 0x100   :  { %6928 = vmatmul.mubr.f32.gmra.mrb[16].mxu0 %v12538_v52 }
 0x101   :  { %6930 = vmatprep.mubr.f32.mxu0 %v12539_v43 }
 0x104   :  { %6931 = vmatmul.mubr.f32.gmra.mrb[18].mxu0 %v12540_v41 }
 0x105   :  { %6933 = vmatprep.mubr.f32.mxu0 %v12541_v49 }
 0x108   :  { %6934 = vmatmul.mubr.f32.gmra.mrb[20].mxu0 %v12542_v45 }
 0x109   :  { %6936 = vmatprep.mubr.f32.mxu0 %v12543_v16 }
 0x10c   :  { %6937 = vmatmul.mubr.f32.gmra.mrb[22].mxu0 %v12544_v17 }
 0x10d   :  { %6939 = vmatprep.mubr.f32.mxu0 %v12545_v30 }
 0x110   :  { %6940 = vmatmul.mubr.f32.gmra.mrb[24].mxu0 %v12546_v7 }
 0x111   :  { %6942 = vmatprep.mubr.f32.mxu0 %v12547_v60 }
 0x114   :  { %6943 = vmatmul.mubr.f32.gmra.mrb[26].mxu0 %v12548_v2 }
 0x115   :  { %6945 = vmatprep.mubr.f32.mxu0 %v12549_v1 }
 0x118   :  { %6946 = vmatmul.mubr.f32.gmra.mrb[28].mxu0 %v12550_v42 }
 0x119   :  { %6948 = vmatprep.mubr.f32.mxu0 %v12551_v31 }
 0x11c   :  { %6949 = vmatmul.mubr.f32.gmra.mrb[30].mxu0 %v12552_v57 }
 0x11d   :  { %6955 = vmatprep.mubr.f32.mxu0 %v8218_v9 }
 0x120   :  { %6956 = vmatmul.mubr.f32.vlgmr.msra.gmra.mrb[0].mxu0 %v8228_v15 }
 0x121   :  { %7078 = vmatpush3.bf16.msra.mxu0 %v8226_v14  ;;  %6958 = vmatprep.mubr.f32.mxu0 %v8240_v20  ;;  %v12553_v14 = vld [vmem:[#allocation19_spill] sm:$0xff] }
 0x124   :  { %6959 = vmatmul.mubr.f32.gmra.mrb[2].mxu0 %v8242_v21 }
 0x125   :  { %6961 = vmatprep.mubr.f32.mxu0 %v8251_v26 }
 0x128   :  { %6962 = vmatmul.mubr.f32.gmra.mrb[4].mxu0 %v8277_v38 }
 0x129   :  { %6964 = vmatprep.mubr.f32.mxu0 %v8312_v59 }
 0x12c   :  { %6965 = vmatmul.mubr.f32.gmra.mrb[6].mxu0 %v8329_v4 }
 0x12d   :  { %6967 = vmatprep.mubr.f32.mxu0 %v8331_v5 }
 0x130   :  { %6968 = vmatmul.mubr.f32.gmra.mrb[8].mxu0 %v8333_v6 }
 0x131   :  { %6970 = vmatprep.mubr.f32.mxu0 %v8351_v32 }
 0x134   :  { %6971 = vmatmul.mubr.f32.gmra.mrb[10].mxu0 %v8353_v33 }
 0x135   :  { %6973 = vmatprep.mubr.f32.mxu0 %v8355_v35 }
 0x138   :  { %6974 = vmatmul.mubr.f32.gmra.mrb[12].mxu0 %v8382_v53 }
 0x139   :  { %6976 = vmatprep.mubr.f32.mxu0 %v8413_v12 }
 0x13c   :  { %6977 = vmatmul.mubr.f32.gmra.mrb[14].mxu0 %v8423_v56 }
 0x13d   :  { %6979 = vmatprep.mubr.f32.mxu0 %v8428_v61 }
 0x140   :  { %6980 = vmatmul.mubr.f32.gmra.mrb[16].mxu0 %v8437_v54 }
 0x141   :  { %6982 = vmatprep.mubr.f32.mxu0 %v8448_v10 }
 0x144   :  { %6983 = vmatmul.mubr.f32.gmra.mrb[18].mxu0 %v8457_v40 }
 0x145   :  { %6985 = vmatprep.mubr.f32.mxu0 %v8467_v51 }
 0x148   :  { %6986 = vmatmul.mubr.f32.gmra.mrb[20].mxu0 %v8483_v36 }
 0x149   :  { %6988 = vmatprep.mubr.f32.mxu0 %v8496_v27 }
 0x14c   :  { %6989 = vmatmul.mubr.f32.gmra.mrb[22].mxu0 %v8516_v62 }
 0x14d   :  { %6991 = vmatprep.mubr.f32.mxu0 %v12553_v14 }
 0x150   :  { %6992 = vmatmul.mubr.f32.gmra.mrb[24].mxu0 %v12554_v55 }
 0x151   :  { %6994 = vmatprep.mubr.f32.mxu0 %v12555_v63 }
 0x154   :  { %6995 = vmatmul.mubr.f32.gmra.mrb[26].mxu0 %v12556_v39 }
 0x155   :  { %6997 = vmatprep.mubr.f32.mxu0 %v12557_v37 }
 0x158   :  { %6998 = vmatmul.mubr.f32.gmra.mrb[28].mxu0 %v12558_v44 }
 0x159   :  { %7000 = vmatprep.mubr.f32.mxu0 %v12559_v58 }
 0x15c   :  { %7001 = vmatmul.mubr.f32.gmra.mrb[30].mxu0 %v12560_v8 }
 0x15d   :  { %7007 = vmatprep.mubr.f32.mxu0 %v8218_v9  ;;  %v11936_v9 = vmov 0.0|0.0  }
 0x15e   :  { %7079 = vmatprep.subr.bf16.mxu0 %v11936_v9  ;;  %7367 = vmatprep.subr.bf16.mxu1 %v11936_v9 }
 0x160   :  { %7008 = vmatmul.mubr.f32.vlgmr.msra.gmra.mrb[0].mxu0 %v8228_v15  ;;  %v1952_v15 = vld [vmem:[#allocation2 + $0x8] sm:$0xff] }
 0x161   :  { %7010 = vmatprep.mubr.f32.mxu0 %v8240_v20  ;;  %v8841_v20 = vand.u32 4294901760, %v1952_v15 }
 0x163   :  { %12561 = vst [vmem:[#allocation5_spill] sm:$0xff] %v8841_v20 }
 0x164   :  { %7011 = vmatmul.mubr.f32.gmra.mrb[2].mxu0 %v8242_v21  ;;  %v8844_v21 = vsub.f32 %v1952_v15, %v8841_v20 }
 0x165   :  { %7013 = vmatprep.mubr.f32.mxu0 %v8251_v26 }
 0x166   :  { %12562 = vst [vmem:[#allocation6_spill] sm:$0xff] %v8844_v21  ;;  %v11929_v26 = vand.u32 4294901760, %v8844_v21 }
 0x168   :  { %7014 = vmatmul.mubr.f32.gmra.mrb[4].mxu0 %v8277_v38 }
 0x169   :  { %7016 = vmatprep.mubr.f32.mxu0 %v8312_v59 }
 0x16c   :  { %7017 = vmatmul.mubr.f32.gmra.mrb[6].mxu0 %v8329_v4 }
 0x16d   :  { %7019 = vmatprep.mubr.f32.mxu0 %v8331_v5 }
 0x170   :  { %7020 = vmatmul.mubr.f32.gmra.mrb[8].mxu0 %v8333_v6 }
 0x171   :  { %7022 = vmatprep.mubr.f32.mxu0 %v8351_v32 }
 0x174   :  { %7023 = vmatmul.mubr.f32.gmra.mrb[10].mxu0 %v8353_v33 }
 0x175   :  { %7025 = vmatprep.mubr.f32.mxu0 %v8355_v35 }
 0x178   :  { %7026 = vmatmul.mubr.f32.gmra.mrb[12].mxu0 %v8382_v53 }
 0x179   :  { %7028 = vmatprep.mubr.f32.mxu0 %v8413_v12 }
 0x17c   :  { %7029 = vmatmul.mubr.f32.gmra.mrb[14].mxu0 %v8423_v56 }
 0x17d   :  { %7031 = vmatprep.mubr.f32.mxu0 %v8428_v61 }
 0x180   :  { %7032 = vmatmul.mubr.f32.gmra.mrb[16].mxu0 %v8437_v54 }
 0x181   :  { %7034 = vmatprep.mubr.f32.mxu0 %v8448_v10 }
 0x184   :  { %7035 = vmatmul.mubr.f32.gmra.mrb[18].mxu0 %v8457_v40 }
 0x185   :  { %7037 = vmatprep.mubr.f32.mxu0 %v8467_v51 }
 0x188   :  { %7038 = vmatmul.mubr.f32.gmra.mrb[20].mxu0 %v8483_v36  ;;  %v1998_v36 = vld [vmem:[#allocation2 + $0x178] sm:$0xff] }
 0x189   :  { %7040 = vmatprep.mubr.f32.mxu0 %v8496_v27  ;;  %v2178_v27 = vsub.f32 %v8844_v21, %v11929_v26  ;;  %v8850_v59 = vand.u32 4294901760, %v1998_v36 }
 0x18b   :  { %v2179_v38 = vand.u32 4294901760, %v2178_v27  ;;  %12563 = vst [vmem:[#allocation7_spill] sm:$0xff] %v8850_v59  ;;  %v8853_v4 = vsub.f32 %v1998_v36, %v8850_v59 }
 0x18c   :  { %7041 = vmatmul.mubr.f32.gmra.mrb[22].mxu0 %v8516_v62 }
 0x18d   :  { %7043 = vmatprep.mubr.f32.mxu0 %v12553_v14  ;;  %12564 = vst [vmem:[#allocation8_spill] sm:$0xff] %v8853_v4  ;;  %4146 = vmatprep.mubr.f32.mxu1 %v8853_v4 }
 0x190   :  { %7044 = vmatmul.mubr.f32.gmra.mrb[24].mxu0 %v12554_v55 }
 0x191   :  { %7046 = vmatprep.mubr.f32.mxu0 %v12555_v63 }
 0x194   :  { %7047 = vmatmul.mubr.f32.gmra.mrb[26].mxu0 %v12556_v39  ;;  %v1951_v39 = vld [vmem:[#allocation2] sm:$0xff] }
 0x195   :  { %7049 = vmatprep.mubr.f32.mxu0 %v12557_v37 }
 0x198   :  { %7050 = vmatmul.mubr.f32.gmra.mrb[28].mxu0 %v12558_v44 }
 0x199   :  { %7052 = vmatprep.mubr.f32.mxu0 %v12559_v58 }
 0x19c   :  { %7053 = vmatmul.mubr.f32.gmra.mrb[30].mxu0 %v12560_v8 }
 0x19d   :  { %2180 = vmatprep.mubr.f32.mxu0 %v2179_v38 }
 0x233   :  { %v7009_v5 = vpop.f32.mrb[0].mxu0 }
 0x234   :  { %v2083_v6 = vand.u32 4294901760, %v7009_v5  ;;  %v1761_v32 = vpop.f32.mrb[1].mxu0 }
 0x235   :  { %v2080_v33 = vand.u32 4294901760, %v1761_v32 }
 0x236   :  { %v8856_v35 = vsub.f32 %v7009_v5, %v2083_v6 }
 0x237   :  { %v8858_v40 = vpack.c.bf16 %v2083_v6, %v2080_v33  ;;  %v8860_v53 = vsub.f32 %v1761_v32, %v2080_v33  ;;  %v7012_v56 = vpop.f32.mrb[2].mxu0  ;;  %v8945_v33 = vand.u32 4294901760, %v1951_v39 }
 0x238   :  { %12565 = vst [vmem:[#allocation9_spill] sm:$0xff] %v8856_v35  ;;  %v11926_v12 = vand.u32 4294901760, %v8856_v35  ;;  %v2089_v61 = vand.u32 4294901760, %v7012_v56  ;;  %v1773_v62 = vpop.f32.mrb[3].mxu0 }
 0x239   :  { %12566 = vst [vmem:[#allocation10_spill] sm:$0xff] %v8858_v40  ;;  %12567 = vst [vmem:[#allocation11_spill] sm:$0xff] %v8860_v53  ;;  %v11927_v54 = vand.u32 4294901760, %v8860_v53  ;;  %v2086_v10 = vand.u32 4294901760, %v1773_v62  ;;  %7081 = vmatpush1.bf16.msra.mxu0 %v8858_v40  ;;  %v8867_v51 = vpack.c.bf16 %v8856_v35, %v8860_v53 }
 0x23a   :  { %v3147_v13 = vsub.f32 %v8856_v35, %v11926_v12  ;;  %v8872_v25 = vsub.f32 %v7012_v56, %v2089_v61  ;;  %7082 = vmatprep.subr.bf16.mxu0 %v11936_v9  ;;  %12582 = vst [vmem:[#allocation25_spill] sm:$0xff] %v8945_v33 }
 0x23b   :  { %12568 = vst [vmem:[#allocation12_spill] sm:$0xff] %v8867_v51  ;;  %v3140_v48 = vsub.f32 %v8860_v53, %v11927_v54  ;;  %v8878_v50 = vpack.c.bf16 %v2089_v61, %v2086_v10  ;;  %v8880_v24 = vsub.f32 %v1773_v62, %v2086_v10  ;;  %v7015_v11 = vpop.f32.mrb[4].mxu0  ;;  %7383 = vmatpush1.bf16.msra.mxu1 %v8867_v51 }
 0x23c   :  { %12569 = vst [vmem:[#allocation13_spill] sm:$0xff] %v8872_v25  ;;  %v3148_v19 = vand.u32 4294901760, %v3147_v13  ;;  %v11922_v23 = vand.u32 4294901760, %v8872_v25  ;;  %v2095_v28 = vand.u32 4294901760, %v7015_v11  ;;  %v1785_v46 = vpop.f32.mrb[5].mxu0  ;;  %7368 = vmatprep.subr.bf16.mxu1 %v11936_v9 }
 0x23d   :  { %12570 = vst [vmem:[#allocation14_spill] sm:$0xff] %v8878_v50  ;;  %12571 = vst [vmem:[#allocation15_spill] sm:$0xff] %v8880_v24  ;;  %v3141_v29 = vand.u32 4294901760, %v3140_v48  ;;  %v11924_v34 = vand.u32 4294901760, %v8880_v24  ;;  %v2092_v47 = vand.u32 4294901760, %v1785_v46  ;;  %7084 = vmatpush1.bf16.msra.mxu0 %v8878_v50  ;;  %v8889_v3 = vpack.c.bf16 %v8872_v25, %v8880_v24 }
 0x23e   :  { %v3161_v18 = vsub.f32 %v8872_v25, %v11922_v23  ;;  %v8894_v22 = vsub.f32 %v7015_v11, %v2095_v28  ;;  %7085 = vmatprep.subr.bf16.mxu0 %v11936_v9 }
 0x23f   :  { %12572 = vst [vmem:[#allocation16_spill] sm:$0xff] %v8889_v3  ;;  %v3154_v0 = vsub.f32 %v8880_v24, %v11924_v34  ;;  %v8900_v52 = vpack.c.bf16 %v2095_v28, %v2092_v47  ;;  %v8902_v43 = vsub.f32 %v1785_v46, %v2092_v47  ;;  %v7018_v41 = vpop.f32.mrb[6].mxu0  ;;  %7384 = vmatpush1.bf16.msra.mxu1 %v8889_v3  ;;  %v12607_v3 = vmov 0.0|0.0  }
 0x240   :  { %12573 = vst [vmem:[#allocation17_spill] sm:$0xff] %v8894_v22  ;;  %v8905_v49 = vpack.c.bf16 %v3148_v19, %v3141_v29  ;;  %v3162_v45 = vand.u32 4294901760, %v3161_v18  ;;  %v11919_v16 = vand.u32 4294901760, %v8894_v22  ;;  %v2101_v17 = vand.u32 4294901760, %v7018_v41  ;;  %v1797_v30 = vpop.f32.mrb[7].mxu0  ;;  %7369 = vmatprep.subr.bf16.mxu1 %v11936_v9 }
 0x241   :  { %12574 = vst [vmem:[#allocation18_spill] sm:$0xff] %v8900_v52  ;;  %12575 = vst [vmem:[#allocation20_spill] sm:$0xff] %v8902_v43  ;;  %v3155_v7 = vand.u32 4294901760, %v3154_v0  ;;  %v11921_v60 = vand.u32 4294901760, %v8902_v43  ;;  %v2098_v2 = vand.u32 4294901760, %v1797_v30  ;;  %7087 = vmatpush1.bf16.msra.mxu0 %v8900_v52  ;;  %v8913_v1 = vpack.c.bf16 %v8894_v22, %v8902_v43  ;;  %v1954_v0 = vld [vmem:[#allocation2 + $0x18] sm:$0xff] }
 0x242   :  { %v3175_v42 = vsub.f32 %v8894_v22, %v11919_v16  ;;  %v8918_v31 = vsub.f32 %v7018_v41, %v2101_v17  ;;  %7088 = vmatprep.subr.bf16.mxu0 %v11936_v9 }
 0x243   :  { %12576 = vst [vmem:[#allocation22_spill] sm:$0xff] %v8913_v1  ;;  %v3168_v57 = vsub.f32 %v8902_v43, %v11921_v60  ;;  %v8924_v14 = vpack.c.bf16 %v2101_v17, %v2098_v2  ;;  %v8926_v55 = vsub.f32 %v1797_v30, %v2098_v2  ;;  %v7021_v63 = vpop.f32.mrb[8].mxu0  ;;  %7385 = vmatpush1.bf16.msra.mxu1 %v8913_v1 }
 0x244   :  { %12577 = vst [vmem:[#allocation24_spill] sm:$0xff] %v8918_v31  ;;  %v8929_v37 = vpack.c.bf16 %v3162_v45, %v3155_v7  ;;  %v3176_v44 = vand.u32 4294901760, %v3175_v42  ;;  %v11917_v58 = vand.u32 4294901760, %v8918_v31  ;;  %v2107_v8 = vand.u32 4294901760, %v7021_v63  ;;  %v1809_v15 = vpop.f32.mrb[9].mxu0  ;;  %7370 = vmatprep.subr.bf16.mxu1 %v11936_v9 }
 0x245   :  { %12578 = vst [vmem:[#allocation27_spill] sm:$0xff] %v8924_v14  ;;  %12579 = vst [vmem:[#allocation19_spill] sm:$0xff] %v8926_v55  ;;  %v3169_v27 = vand.u32 4294901760, %v3168_v57  ;;  %v11918_v36 = vand.u32 4294901760, %v8926_v55  ;;  %v2104_v38 = vand.u32 4294901760, %v1809_v15  ;;  %7090 = vmatpush1.bf16.msra.mxu0 %v8924_v14  ;;  %v8937_v5 = vpack.c.bf16 %v8918_v31, %v8926_v55  ;;  %v1953_v57 = vld [vmem:[#allocation2 + $0x10] sm:$0xff] }
 0x246   :  { %v3189_v6 = vsub.f32 %v8918_v31, %v11917_v58  ;;  %v8942_v32 = vsub.f32 %v7021_v63, %v2107_v8  ;;  %7091 = vmatprep.subr.bf16.mxu0 %v11936_v9  ;;  %v8972_v17 = vsub.f32 %v1951_v39, %v8945_v33 }
 0x247   :  { %12580 = vst [vmem:[#allocation21_spill] sm:$0xff] %v8937_v5  ;;  %v3182_v56 = vsub.f32 %v8926_v55, %v11918_v36  ;;  %v8950_v61 = vpack.c.bf16 %v2107_v8, %v2104_v38  ;;  %v8952_v62 = vsub.f32 %v1809_v15, %v2104_v38  ;;  %v7024_v10 = vpop.f32.mrb[10].mxu0  ;;  %7386 = vmatpush1.bf16.msra.mxu1 %v8937_v5 }
 0x248   :  { %12581 = vst [vmem:[#allocation23_spill] sm:$0xff] %v8942_v32  ;;  %v8955_v13 = vpack.c.bf16 %v3176_v44, %v3169_v27  ;;  %v3190_v48 = vand.u32 4294901760, %v3189_v6  ;;  %v11914_v11 = vand.u32 4294901760, %v8942_v32  ;;  %v2113_v19 = vand.u32 4294901760, %v7024_v10  ;;  %v1821_v28 = vpop.f32.mrb[11].mxu0  ;;  %7371 = vmatprep.subr.bf16.mxu1 %v11936_v9  ;;  %12587 = vst [vmem:[#allocation31_spill] sm:$0xff] %v8972_v17 }
 0x249   :  { %12583 = vst [vmem:[#allocation26_spill] sm:$0xff] %v8950_v61  ;;  %12584 = vst [vmem:[#allocation28_spill] sm:$0xff] %v8952_v62  ;;  %v3183_v46 = vand.u32 4294901760, %v3182_v56  ;;  %v11916_v29 = vand.u32 4294901760, %v8952_v62  ;;  %v2110_v47 = vand.u32 4294901760, %v1821_v28  ;;  %7093 = vmatpush1.bf16.msra.mxu0 %v8950_v61  ;;  %v8963_v18 = vpack.c.bf16 %v8942_v32, %v8952_v62 }
 0x24a   :  { %v3203_v41 = vsub.f32 %v8942_v32, %v11914_v11  ;;  %v8968_v45 = vsub.f32 %v7024_v10, %v2113_v19  ;;  %7094 = vmatprep.subr.bf16.mxu0 %v11936_v9  ;;  %v8986_v27 = vand.u32 4294901760, %v1954_v0 }
 0x24b   :  { %12585 = vst [vmem:[#allocation29_spill] sm:$0xff] %v8963_v18  ;;  %v3196_v30 = vsub.f32 %v8952_v62, %v11916_v29  ;;  %v8977_v7 = vpack.c.bf16 %v2113_v19, %v2110_v47  ;;  %v8979_v2 = vsub.f32 %v1821_v28, %v2110_v47  ;;  %v7027_v42 = vpop.f32.mrb[12].mxu0  ;;  %7387 = vmatpush1.bf16.msra.mxu1 %v8963_v18  ;;  %v11925_v28 = vand.u32 4294901760, %v8972_v17 }
 0x24c   :  { %12586 = vst [vmem:[#allocation30_spill] sm:$0xff] %v8968_v45  ;;  %v8982_v63 = vpack.c.bf16 %v3190_v48, %v3183_v46  ;;  %v3204_v44 = vand.u32 4294901760, %v3203_v41  ;;  %v11915_v8 = vand.u32 4294901760, %v8968_v45  ;;  %v2119_v15 = vand.u32 4294901760, %v7027_v42  ;;  %v1833_v39 = vpop.f32.mrb[13].mxu0  ;;  %7372 = vmatprep.subr.bf16.mxu1 %v11936_v9  ;;  %12590 = vst [vmem:[#allocation34_spill] sm:$0xff] %v8986_v27 }
 0x24d   :  { %12588 = vst [vmem:[#allocation32_spill] sm:$0xff] %v8977_v7  ;;  %12589 = vst [vmem:[#allocation33_spill] sm:$0xff] %v8979_v2  ;;  %v3197_v38 = vand.u32 4294901760, %v3196_v30  ;;  %v11920_v6 = vand.u32 4294901760, %v8979_v2  ;;  %v2116_v56 = vand.u32 4294901760, %v1833_v39  ;;  %7096 = vmatpush1.bf16.msra.mxu0 %v8977_v7  ;;  %v8992_v10 = vpack.c.bf16 %v8968_v45, %v8979_v2 }
 0x24e   :  { %v3217_v48 = vsub.f32 %v8968_v45, %v11915_v8  ;;  %v8997_v19 = vsub.f32 %v7027_v42, %v2119_v15  ;;  %7097 = vmatprep.subr.bf16.mxu0 %v11936_v9  ;;  %v9001_v46 = vand.u32 4294901760, %v1953_v57  ;;  %v9016_v16 = vsub.f32 %v1954_v0, %v8986_v27 }
 0x24f   :  { %12591 = vst [vmem:[#allocation35_spill] sm:$0xff] %v8992_v10  ;;  %v3210_v47 = vsub.f32 %v8979_v2, %v11920_v6  ;;  %v9006_v41 = vpack.c.bf16 %v2119_v15, %v2116_v56  ;;  %v9008_v30 = vsub.f32 %v1833_v39, %v2116_v56  ;;  %v7030_v11 = vpop.f32.mrb[14].mxu0  ;;  %7388 = vmatpush1.bf16.msra.mxu1 %v8992_v10 }
 0x250   :  { %12592 = vst [vmem:[#allocation36_spill] sm:$0xff] %v8997_v19  ;;  %12593 = vst [vmem:[#allocation37_spill] sm:$0xff] %v9001_v46  ;;  %v9011_v8 = vpack.c.bf16 %v3204_v44, %v3197_v38  ;;  %v3218_v42 = vand.u32 4294901760, %v3217_v48  ;;  %v11923_v29 = vand.u32 4294901760, %v8997_v19  ;;  %v2125_v58 = vand.u32 4294901760, %v7030_v11  ;;  %v1845_v36 = vpop.f32.mrb[15].mxu0  ;;  %7373 = vmatprep.subr.bf16.mxu1 %v11936_v9 }
 0x251   :  { %12594 = vst [vmem:[#allocation38_spill] sm:$0xff] %v9006_v41  ;;  %12595 = vst [vmem:[#allocation39_spill] sm:$0xff] %v9008_v30  ;;  %v3211_v6 = vand.u32 4294901760, %v3210_v47  ;;  %v11928_v15 = vand.u32 4294901760, %v9008_v30  ;;  %v2122_v39 = vand.u32 4294901760, %v1845_v36  ;;  %7099 = vmatpush1.bf16.msra.mxu0 %v9006_v41  ;;  %v9022_v44 = vpack.c.bf16 %v8997_v19, %v9008_v30 }
 0x252   :  { %12596 = vst [vmem:[#allocation40_spill] sm:$0xff] %v9016_v16  ;;  %v3231_v38 = vsub.f32 %v8997_v19, %v11923_v29  ;;  %v9027_v56 = vsub.f32 %v7030_v11, %v2125_v58  ;;  %7100 = vmatprep.subr.bf16.mxu0 %v11936_v9  ;;  %v9033_v0 = vsub.f32 %v8972_v17, %v11925_v28  ;;  %v9046_v29 = vld [vmem:[#allocation2 + $0x28] sm:$0xff] }
 0x253   :  { %12597 = vst [vmem:[#allocation41_spill] sm:$0xff] %v9022_v44  ;;  %v9036_v48 = vsub.f32 %v1953_v57, %v9001_v46  ;;  %v3224_v47 = vsub.f32 %v9008_v30, %v11928_v15  ;;  %v9041_v60 = vpack.c.bf16 %v2125_v58, %v2122_v39  ;;  %v9043_v23 = vsub.f32 %v1845_v36, %v2122_v39  ;;  %v7033_v11 = vpop.f32.mrb[16].mxu0 }
 0x254   :  { %12598 = vst [vmem:[#allocation42_spill] sm:$0xff] %v9027_v56  ;;  %7389 = vmatpush1.bf16.msra.mxu1 %v9022_v44  ;;  %v9048_v34 = vpack.c.bf16 %v3218_v42, %v3211_v6  ;;  %v3232_v28 = vand.u32 4294901760, %v3231_v38  ;;  %v11935_v12 = vand.u32 4294901760, %v9027_v56  ;;  %v2131_v57 = vand.u32 4294901760, %v7033_v11  ;;  %v1857_v54 = vpop.f32.mrb[17].mxu0  ;;  %v1997_v6 = vld [vmem:[#allocation2 + $0x170] sm:$0xff] }
 0x255   :  { %12599 = vst [vmem:[#allocation43_spill] sm:$0xff] %v9036_v48  ;;  %12600 = vst [vmem:[#allocation44_spill] sm:$0xff] %v9041_v60  ;;  %7374 = vmatprep.subr.bf16.mxu1 %v11936_v9  ;;  %v3225_v58 = vand.u32 4294901760, %v3224_v47  ;;  %v11943_v36 = vand.u32 4294901760, %v9043_v23  ;;  %v2128_v39 = vand.u32 4294901760, %v1857_v54  ;;  %7102 = vmatpush1.bf16.msra.mxu0 %v9041_v60  ;;  %v9057_v26 = vpack.c.bf16 %v9027_v56, %v9043_v23 }
 0x256   :  { %12601 = vst [vmem:[#allocation45_spill] sm:$0xff] %v9043_v23  ;;  %v3245_v42 = vsub.f32 %v9027_v56, %v11935_v12  ;;  %v9062_v38 = vsub.f32 %v7033_v11, %v2131_v57  ;;  %7103 = vmatprep.subr.bf16.mxu0 %v11936_v9  ;;  %v9067_v15 = vand.u32 4294901760, %v9046_v29  ;;  %v1955_v11 = vld [vmem:[#allocation2 + $0x20] sm:$0xff]  ;;  %v9081_v46 = vand.u32 4294901760, %v1997_v6 }
 0x257   :  { %12602 = vst [vmem:[#allocation46_spill] sm:$0xff] %v9057_v26  ;;  %v3238_v59 = vsub.f32 %v9043_v23, %v11943_v36  ;;  %v9072_v44 = vpack.c.bf16 %v2131_v57, %v2128_v39  ;;  %v9074_v10 = vsub.f32 %v1857_v54, %v2128_v39  ;;  %v7036_v18 = vpop.f32.mrb[18].mxu0  ;;  %v9077_v12 = vpack.c.bf16 %v3232_v28, %v3225_v58 }
 0x258   :  { %12603 = vst [vmem:[#allocation47_spill] sm:$0xff] %v9062_v38  ;;  %12604 = vst [vmem:[#allocation48_spill] sm:$0xff] %v9067_v15  ;;  %7390 = vmatpush1.bf16.msra.mxu1 %v9057_v26  ;;  %v3246_v9 = vand.u32 4294901760, %v3245_v42  ;;  %v11950_v47 = vand.u32 4294901760, %v9062_v38  ;;  %v2137_v5 = vand.u32 4294901760, %v7036_v18  ;;  %v1869_v1 = vpop.f32.mrb[19].mxu0 }
 0x259   :  { %12605 = vst [vmem:[#allocation49_spill] sm:$0xff] %v9072_v44  ;;  %12606 = vst [vmem:[#allocation50_spill] sm:$0xff] %v9074_v10  ;;  %7375 = vmatprep.subr.bf16.mxu1 %v12607_v3  ;;  %v3239_v36 = vand.u32 4294901760, %v3238_v59  ;;  %v11955_v57 = vand.u32 4294901760, %v9074_v10  ;;  %v2134_v54 = vand.u32 4294901760, %v1869_v1  ;;  %7105 = vmatpush1.bf16.msra.mxu0 %v9072_v44  ;;  %v9087_v39 = vpack.c.bf16 %v9062_v38, %v9074_v10 }
 0x25a   :  { %12608 = vst [vmem:[#allocation51_spill] sm:$0xff] %v9081_v46  ;;  %v3259_v28 = vsub.f32 %v9062_v38, %v11950_v47  ;;  %v9092_v58 = vsub.f32 %v7036_v18, %v2137_v5  ;;  %7106 = vmatprep.subr.bf16.mxu0 %v12607_v3  ;;  %v9096_v59 = vand.u32 4294901760, %v1955_v11  ;;  %v12614_v56 = vand.u32 4294901760, %v9016_v16 }
 0x25b   :  { %12609 = vst [vmem:[#allocation52_spill] sm:$0xff] %v9087_v39  ;;  %v3252_v26 = vsub.f32 %v9074_v10, %v11955_v57  ;;  %v9101_v27 = vpack.c.bf16 %v2137_v5, %v2134_v54  ;;  %v9103_v51 = vsub.f32 %v1869_v1, %v2134_v54  ;;  %v7039_v33 = vpop.f32.mrb[20].mxu0  ;;  %v9106_v47 = vpack.c.bf16 %v3246_v9, %v3239_v36 }
 0x25c   :  { %12610 = vst [vmem:[#allocation53_spill] sm:$0xff] %v9092_v58  ;;  %12611 = vst [vmem:[#allocation54_spill] sm:$0xff] %v9096_v59  ;;  %7391 = vmatpush1.bf16.msra.mxu1 %v9087_v39  ;;  %v3260_v18 = vand.u32 4294901760, %v3259_v28  ;;  %v11959_v20 = vand.u32 4294901760, %v9092_v58  ;;  %v2143_v38 = vand.u32 4294901760, %v7039_v33  ;;  %v1881_v42 = vpop.f32.mrb[21].mxu0  ;;  %v9113_v57 = vsub.f32 %v9016_v16, %v12614_v56 }
 0x25d   :  { %12612 = vst [vmem:[#allocation55_spill] sm:$0xff] %v9101_v27  ;;  %12613 = vst [vmem:[#allocation56_spill] sm:$0xff] %v9103_v51  ;;  %7376 = vmatprep.subr.bf16.mxu1 %v12607_v3  ;;  %v3253_v5 = vand.u32 4294901760, %v3252_v26  ;;  %v11964_v1 = vand.u32 4294901760, %v9103_v51  ;;  %v2140_v54 = vand.u32 4294901760, %v1881_v42  ;;  %7108 = vmatpush1.bf16.msra.mxu0 %v9101_v27  ;;  %v9119_v9 = vpack.c.bf16 %v9092_v58, %v9103_v51 }
 0x25e   :  { %v3273_v36 = vsub.f32 %v9092_v58, %v11959_v20  ;;  %v9124_v28 = vsub.f32 %v7039_v33, %v2143_v38  ;;  %7109 = vmatprep.subr.bf16.mxu0 %v12607_v3  ;;  %v9128_v56 = vsub.f32 %v1997_v6, %v9081_v46  ;;  %v9132_v26 = vsub.f32 %v9046_v29, %v9067_v15 }
 0x25f   :  { %12615 = vst [vmem:[#allocation57_spill] sm:$0xff] %v9119_v9  ;;  %v3266_v39 = vsub.f32 %v9103_v51, %v11964_v1  ;;  %v9137_v10 = vpack.c.bf16 %v2143_v38, %v2140_v54  ;;  %v9139_v23 = vsub.f32 %v1881_v42, %v2140_v54  ;;  %v7042_v20 = vpop.f32.mrb[22].mxu0  ;;  %v9142_v33 = vpack.c.bf16 %v3260_v18, %v3253_v5  ;;  %v9157_v5 = vld [vmem:[#allocation2 + $0x188] sm:$0xff] }
 0x260   :  { %12616 = vst [vmem:[#allocation58_spill] sm:$0xff] %v9124_v28  ;;  %12617 = vst [vmem:[#allocation59_spill] sm:$0xff] %v9128_v56  ;;  %7392 = vmatpush1.bf16.msra.mxu1 %v9119_v9  ;;  %v3274_v58 = vand.u32 4294901760, %v3273_v36  ;;  %v11971_v6 = vand.u32 4294901760, %v9124_v28  ;;  %v2149_v46 = vand.u32 4294901760, %v7042_v20  ;;  %v1893_v19 = vpop.f32.mrb[23].mxu0 }
 0x261   :  { %12618 = vst [vmem:[#allocation60_spill] sm:$0xff] %v9132_v26  ;;  %12619 = vst [vmem:[#allocation61_spill] sm:$0xff] %v9137_v10  ;;  %7377 = vmatprep.subr.bf16.mxu1 %v12607_v3  ;;  %v12621_v29 = vand.u32 4294901760, %v9036_v48  ;;  %v3267_v38 = vand.u32 4294901760, %v3266_v39  ;;  %v11975_v42 = vand.u32 4294901760, %v9139_v23  ;;  %v2146_v54 = vand.u32 4294901760, %v1893_v19  ;;  %7111 = vmatpush1.bf16.msra.mxu0 %v9137_v10 }
 0x262   :  { %12620 = vst [vmem:[#allocation62_spill] sm:$0xff] %v9139_v23  ;;  %v9155_v18 = vpack.c.bf16 %v9124_v28, %v9139_v23  ;;  %v3287_v36 = vsub.f32 %v9124_v28, %v11971_v6  ;;  %v9162_v9 = vsub.f32 %v7042_v20, %v2149_v46  ;;  %7112 = vmatprep.subr.bf16.mxu0 %v12607_v3  ;;  %v9177_v20 = vld [vmem:[#allocation2 + $0x38] sm:$0xff] }
 0x263   :  { %v9149_v1 = vsub.f32 %v9036_v48, %v12621_v29  ;;  %v9167_v29 = vsub.f32 %v1955_v11, %v9096_v59  ;;  %v3280_v15 = vsub.f32 %v9139_v23, %v11975_v42  ;;  %v9172_v51 = vpack.c.bf16 %v2149_v46, %v2146_v54  ;;  %v7045_v45 = vpop.f32.mrb[24].mxu0 }
 0x264   :  { %12622 = vst [vmem:[#allocation63_spill] sm:$0xff] %v9155_v18  ;;  %12623 = vst [vmem:[#allocation64_spill] sm:$0xff] %v9162_v9  ;;  %v9174_v30 = vsub.f32 %v1893_v19, %v2146_v54  ;;  %7393 = vmatpush1.bf16.msra.mxu1 %v9155_v18  ;;  %v9179_v6 = vpack.c.bf16 %v3274_v58, %v3267_v38  ;;  %v3288_v28 = vand.u32 4294901760, %v3287_v36  ;;  %v11981_v39 = vand.u32 4294901760, %v9162_v9  ;;  %v1905_v59 = vpop.f32.mrb[25].mxu0 }
 0x265   :  { %12624 = vst [vmem:[#allocation65_spill] sm:$0xff] %v9167_v29  ;;  %12625 = vst [vmem:[#allocation66_spill] sm:$0xff] %v9172_v51  ;;  %v2155_v11 = vand.u32 4294901760, %v7045_v45  ;;  %7378 = vmatprep.subr.bf16.mxu1 %v12607_v3  ;;  %v9184_v42 = vand.u32 4294901760, %v9157_v5  ;;  %v3281_v46 = vand.u32 4294901760, %v3280_v15  ;;  %v2152_v54 = vand.u32 4294901760, %v1905_v59  ;;  %7114 = vmatpush1.bf16.msra.mxu0 %v9172_v51 }
 0x266   :  { %12626 = vst [vmem:[#allocation67_spill] sm:$0xff] %v9174_v30  ;;  %v11985_v19 = vand.u32 4294901760, %v9174_v30  ;;  %v9190_v58 = vpack.c.bf16 %v9162_v9, %v9174_v30  ;;  %v3301_v38 = vsub.f32 %v9162_v9, %v11981_v39  ;;  %7115 = vmatprep.subr.bf16.mxu0 %v12607_v3  ;;  %v9200_v15 = vand.u32 4294901760, %v9177_v20 }
 0x267   :  { %12627 = vst [vmem:[#allocation68_spill] sm:$0xff] %v9184_v42  ;;  %v9195_v36 = vsub.f32 %v7045_v45, %v2155_v11  ;;  %v9205_v2 = vpack.c.bf16 %v2155_v11, %v2152_v54  ;;  %v9207_v32 = vsub.f32 %v1905_v59, %v2152_v54  ;;  %v7048_v62 = vpop.f32.mrb[26].mxu0  ;;  %v9210_v45 = vld [vmem:[#allocation2 + $0x180] sm:$0xff]  ;;  %v9212_v39 = vpack.c.bf16 %v3288_v28, %v3281_v46  ;;  %v1957_v28 = vld [vmem:[#allocation2 + $0x30] sm:$0xff] }
 0x268   :  { %12628 = vst [vmem:[#allocation69_spill] sm:$0xff] %v9190_v58  ;;  %12630 = vst [vmem:[#allocation71_spill] sm:$0xff] %v9200_v15  ;;  %v3294_v23 = vsub.f32 %v9174_v30, %v11985_v19  ;;  %7394 = vmatpush1.bf16.msra.mxu1 %v9190_v58  ;;  %v3302_v9 = vand.u32 4294901760, %v3301_v38  ;;  %v2161_v31 = vand.u32 4294901760, %v7048_v62  ;;  %v1917_v55 = vpop.f32.mrb[27].mxu0  ;;  %v9245_v19 = vand.u32 4294901760, %v1957_v28 }
 0x269   :  { %12629 = vst [vmem:[#allocation70_spill] sm:$0xff] %v9195_v36  ;;  %12631 = vst [vmem:[#allocation72_spill] sm:$0xff] %v9205_v2  ;;  %v11992_v18 = vand.u32 4294901760, %v9195_v36  ;;  %7379 = vmatprep.subr.bf16.mxu1 %v12607_v3  ;;  %v11998_v59 = vand.u32 4294901760, %v9207_v32  ;;  %v2158_v54 = vand.u32 4294901760, %v1917_v55  ;;  %7117 = vmatpush1.bf16.msra.mxu0 %v9205_v2  ;;  %v9221_v58 = vpack.c.bf16 %v9195_v36, %v9207_v32 }
 0x26a   :  { %12632 = vst [vmem:[#allocation73_spill] sm:$0xff] %v9207_v32  ;;  %v3295_v11 = vand.u32 4294901760, %v3294_v23  ;;  %v9226_v38 = vsub.f32 %v7048_v62, %v2161_v31  ;;  %7118 = vmatprep.subr.bf16.mxu0 %v12607_v3  ;;  %v9230_v23 = vand.u32 4294901760, %v9210_v45  ;;  %12638 = vst [vmem:[#allocation79_spill] sm:$0xff] %v9245_v19 }
 0x26b   :  { %12633 = vst [vmem:[#allocation74_spill] sm:$0xff] %v9221_v58  ;;  %v3315_v46 = vsub.f32 %v9195_v36, %v11992_v18  ;;  %v3308_v30 = vsub.f32 %v9207_v32, %v11998_v59  ;;  %v9236_v22 = vpack.c.bf16 %v2161_v31, %v2158_v54  ;;  %v9238_v43 = vsub.f32 %v1917_v55, %v2158_v54  ;;  %v7051_v48 = vpop.f32.mrb[28].mxu0 }
 0x26c   :  { %12634 = vst [vmem:[#allocation75_spill] sm:$0xff] %v9226_v38  ;;  %12635 = vst [vmem:[#allocation76_spill] sm:$0xff] %v9230_v23  ;;  %7395 = vmatpush1.bf16.msra.mxu1 %v9221_v58  ;;  %v9241_v62 = vpack.c.bf16 %v3302_v9, %v3295_v11  ;;  %v12003_v36 = vand.u32 4294901760, %v9226_v38  ;;  %v2167_v25 = vand.u32 4294901760, %v7051_v48  ;;  %v1929_v24 = vpop.f32.mrb[29].mxu0  ;;  %v1960_v9 = vld [vmem:[#allocation2 + $0x48] sm:$0xff]  ;;  %v9266_v31 = vsub.f32 %v9177_v20, %v9200_v15 }
 0x26d   :  { %12636 = vst [vmem:[#allocation77_spill] sm:$0xff] %v9236_v22  ;;  %12637 = vst [vmem:[#allocation78_spill] sm:$0xff] %v9238_v43  ;;  %v3316_v18 = vand.u32 4294901760, %v3315_v46  ;;  %7380 = vmatprep.subr.bf16.mxu1 %v12607_v3  ;;  %v3309_v16 = vand.u32 4294901760, %v3308_v30  ;;  %v2164_v59 = vand.u32 4294901760, %v1929_v24  ;;  %7120 = vmatpush1.bf16.msra.mxu0 %v9236_v22  ;;  %v9251_v55 = vpack.c.bf16 %v9226_v38, %v9238_v43 }
 0x26e   :  { %v3329_v11 = vsub.f32 %v9226_v38, %v12003_v36  ;;  %v9256_v54 = vsub.f32 %v7051_v48, %v2167_v25  ;;  %7121 = vmatprep.subr.bf16.mxu0 %v12607_v3  ;;  %v12641_v30 = vand.u32 4294901760, %v9132_v26  ;;  %12642 = vst [vmem:[#allocation82_spill] sm:$0xff] %v9266_v31  ;;  %v12643_v58 = vand.u32 4294901760, %v9238_v43 }
 0x26f   :  { %12639 = vst [vmem:[#allocation80_spill] sm:$0xff] %v9251_v55  ;;  %v9271_v17 = vpack.c.bf16 %v2167_v25, %v2164_v59  ;;  %v9273_v36 = vsub.f32 %v1929_v24, %v2164_v59  ;;  %v7054_v48 = vpop.f32.mrb[30].mxu0  ;;  %v9276_v38 = vpack.c.bf16 %v3316_v18, %v3309_v16  ;;  %v9280_v20 = vand.u32 4294901760, %v1960_v9  ;;  %v1959_v16 = vld [vmem:[#allocation2 + $0x40] sm:$0xff]  ;;  %v1962_v25 = vld [vmem:[#allocation2 + $0x58] sm:$0xff] }
 0x270   :  { %12640 = vst [vmem:[#allocation81_spill] sm:$0xff] %v9256_v54  ;;  %v9262_v46 = vsub.f32 %v9132_v26, %v12641_v30  ;;  %v3322_v32 = vsub.f32 %v9238_v43, %v12643_v58  ;;  %7396 = vmatpush1.bf16.msra.mxu1 %v9251_v55  ;;  %v3330_v35 = vand.u32 4294901760, %v3329_v11  ;;  %v12017_v30 = vand.u32 4294901760, %v9256_v54  ;;  %v1941_v53 = vpop.f32.mrb[31].mxu0 }
 0x271   :  { %12644 = vst [vmem:[#allocation83_spill] sm:$0xff] %v9271_v17  ;;  %12645 = vst [vmem:[#allocation84_spill] sm:$0xff] %v9273_v36  ;;  %v2173_v26 = vand.u32 4294901760, %v7054_v48  ;;  %7381 = vmatprep.subr.bf16.mxu1 %v12607_v3  ;;  %v2170_v58 = vand.u32 4294901760, %v1941_v53  ;;  %7123 = vmatpush1.bf16.msra.mxu0 %v9271_v17  ;;  %v9286_v24 = vpack.c.bf16 %v9256_v54, %v9273_v36  ;;  %v12650_v55 = vand.u32 4294901760, %v9273_v36 }
 0x272   :  { %12646 = vst [vmem:[#allocation85_spill] sm:$0xff] %v9280_v20  ;;  %v3323_v15 = vand.u32 4294901760, %v3322_v32  ;;  %v3343_v18 = vsub.f32 %v9256_v54, %v12017_v30  ;;  %7124 = vmatprep.subr.bf16.mxu0 %v12607_v3  ;;  %v9296_v11 = vsub.f32 %v1957_v28, %v9245_v19  ;;  %v2002_v28 = vld [vmem:[#allocation2 + $0x198] sm:$0xff]  ;;  %v9311_v32 = vsub.f32 %v1960_v9, %v9280_v20 }
 0x273   :  { %12647 = vst [vmem:[#allocation86_spill] sm:$0xff] %v9286_v24  ;;  %v9291_v59 = vsub.f32 %v7054_v48, %v2173_v26  ;;  %v3336_v43 = vsub.f32 %v9273_v36, %v12650_v55  ;;  %v9301_v21 = vpack.c.bf16 %v2173_v26, %v2170_v58  ;;  %v9303_v4 = vsub.f32 %v1941_v53, %v2170_v58 }
 0x274   :  { %12649 = vst [vmem:[#allocation88_spill] sm:$0xff] %v9296_v11  ;;  %7397 = vmatpush1.bf16.msra.mxu1 %v9286_v24  ;;  %v9306_v48 = vpack.c.bf16 %v3330_v35, %v3323_v15  ;;  %v3344_v30 = vand.u32 4294901760, %v3343_v18  ;;  %12653 = vst [vmem:[#allocation91_spill] sm:$0xff] %v9311_v32  ;;  %v9313_v19 = vand.u32 4294901760, %v1959_v16  ;;  %v9321_v53 = vand.u32 4294901760, %v1962_v25  ;;  %v1961_v15 = vld [vmem:[#allocation2 + $0x50] sm:$0xff] }
 0x275   :  { %12648 = vst [vmem:[#allocation87_spill] sm:$0xff] %v9291_v59  ;;  %12651 = vst [vmem:[#allocation89_spill] sm:$0xff] %v9301_v21  ;;  %v12025_v54 = vand.u32 4294901760, %v9291_v59  ;;  %7382 = vmatprep.subr.bf16.mxu1 %v12607_v3  ;;  %v3337_v55 = vand.u32 4294901760, %v3336_v43  ;;  %7126 = vmatpush1.bf16.msra.mxu0 %v9301_v21  ;;  %v9319_v35 = vpack.c.bf16 %v9291_v59, %v9303_v4  ;;  %v2209_v9 = vand.u32 4294901760, %v9262_v46  ;;  %v1964_v24 = vld [vmem:[#allocation2 + $0x68] sm:$0xff] }
 0x276   :  { %12652 = vst [vmem:[#allocation90_spill] sm:$0xff] %v9303_v4  ;;  %12654 = vst [vmem:[#allocation92_spill] sm:$0xff] %v9313_v19  ;;  %7127 = vmatprep.subr.bf16.mxu0 %v12607_v3  ;;  %v9329_v43 = vsub.f32 %v9157_v5, %v9184_v42  ;;  %v12658_v18 = vand.u32 4294901760, %v9167_v29  ;;  %v12659_v20 = vand.u32 4294901760, %v9303_v4  ;;  %v12044_v21 = vand.u32 4294901760, %v9296_v11 }
 0x277   :  { %12655 = vst [vmem:[#allocation93_spill] sm:$0xff] %v9319_v35  ;;  %12656 = vst [vmem:[#allocation94_spill] sm:$0xff] %v9321_v53  ;;  %v3357_v58 = vsub.f32 %v9291_v59, %v12025_v54  ;;  %v9339_v54 = vand.u32 4294901760, %v2002_v28  ;;  %v2001_v59 = vld [vmem:[#allocation2 + $0x190] sm:$0xff]  ;;  %v9342_v5 = vpack.c.bf16 %v3344_v30, %v3337_v55  ;;  %v12661_v46 = vand.u32 4294901760, %v9033_v0  ;;  %v2003_v0 = vld [vmem:[#allocation2 + $0x1a0] sm:$0xff] }
 0x278   :  { %12657 = vst [vmem:[#allocation95_spill] sm:$0xff] %v9329_v43  ;;  %v2214_v26 = vsub.f32 %v9167_v29, %v12658_v18  ;;  %v3350_v36 = vsub.f32 %v9303_v4, %v12659_v20  ;;  %7398 = vmatpush1.bf16.msra.mxu1 %v9319_v35  ;;  %v12662_v18 = vand.u32 4294901760, %v9266_v31  ;;  %v2004_v20 = vld [vmem:[#allocation2 + $0x1a8] sm:$0xff]  ;;  %v9351_v35 = vsub.f32 %v1959_v16, %v9313_v19 }
 0x279   :  { %12660 = vst [vmem:[#allocation96_spill] sm:$0xff] %v9339_v54  ;;  %v3358_v42 = vand.u32 4294901760, %v3357_v58  ;;  %2186 = vmatmul.mubr.f32.vlgmr.msra.gmra.mrb[32].mxu0 %v12661_v46  ;;  %7223 = vmatprep.subr.bf16.mxu1 %v12607_v3  ;;  %v9353_v4 = vand.u32 4294901760, %v1961_v15  ;;  %v12665_v30 = vand.u32 4294901760, %v9113_v57  ;;  %v9360_v55 = vsub.f32 %v1962_v25, %v9321_v53  ;;  %v1963_v46 = vld [vmem:[#allocation2 + $0x60] sm:$0xff]  ;;  %v1966_v57 = vld [vmem:[#allocation2 + $0x78] sm:$0xff] }
 0x27a   :  { %v2223_v29 = vsub.f32 %v9266_v31, %v12662_v18  ;;  %12663 = vst [vmem:[#allocation97_spill] sm:$0xff] %v9351_v35  ;;  %v3351_v17 = vand.u32 4294901760, %v3350_v36  ;;  %7129 = vmatpush1.bf16.msra.mxu0 %v8905_v49  ;;  %v9362_v58 = vand.u32 4294901760, %v1964_v24  ;;  %v9368_v36 = vsub.f32 %v9210_v45, %v9230_v23  ;;  %v2006_v53 = vld [vmem:[#allocation2 + $0x1b8] sm:$0xff]  ;;  %v1968_v23 = vld [vmem:[#allocation2 + $0x88] sm:$0xff] }
 0x27b   :  { %12664 = vst [vmem:[#allocation98_spill] sm:$0xff] %v9353_v4  ;;  %2195 = vmatprep.mubr.f32.mxu0 %v12665_v30  ;;  %12666 = vst [vmem:[#allocation99_spill] sm:$0xff] %v9360_v55  ;;  %4149 = vmatmul.mubr.f32.vlgmr.msra.gmra.mrb[0].mxu1 %v9128_v56  ;;  %v2215_v49 = vand.u32 4294901760, %v2214_v26  ;;  %v9370_v16 = vand.u32 4294901760, %v2001_v59  ;;  %v9375_v25 = vsub.f32 %v2002_v28, %v9339_v54  ;;  %v9380_v30 = vand.u32 4294901760, %v2004_v20 }
 0x27c   :  { %12667 = vst [vmem:[#allocation100_spill] sm:$0xff] %v9362_v58  ;;  %7130 = vmatprep.subr.bf16.mxu0 %v12607_v3  ;;  %12668 = vst [vmem:[#allocation101_spill] sm:$0xff] %v9368_v36  ;;  %7225 = vmatpush1.bf16.msra.mxu1 %v8858_v40  ;;  %v2229_v18 = vsub.f32 %v9296_v11, %v12044_v21  ;;  %v9382_v45 = vpack.c.bf16 %v3358_v42, %v3351_v17  ;;  %v12672_v26 = vand.u32 4294901760, %v9149_v1  ;;  %v1965_v21 = vld [vmem:[#allocation2 + $0x70] sm:$0xff] }
 0x27d   :  { %12669 = vst [vmem:[#allocation102_spill] sm:$0xff] %v9370_v16  ;;  %4155 = vmatprep.mubr.f32.mxu1 %v9329_v43  ;;  %12670 = vst [vmem:[#allocation103_spill] sm:$0xff] %v9375_v25  ;;  %7226 = vmatprep.subr.bf16.mxu1 %v12607_v3  ;;  %v2224_v40 = vand.u32 4294901760, %v2223_v29  ;;  %v9389_v28 = vsub.f32 %v1961_v15, %v9353_v4  ;;  %v9391_v54 = vand.u32 4294901760, %v1963_v46  ;;  %v12675_v17 = vand.u32 4294901760, %v9311_v32  ;;  %v2005_v42 = vld [vmem:[#allocation2 + $0x1b0] sm:$0xff] }
 0x27e   :  { %12671 = vst [vmem:[#allocation104_spill] sm:$0xff] %v9380_v30  ;;  %2201 = vmatmul.mubr.f32.gmra.mrb[34].mxu0 %v12672_v26  ;;  %v9399_v29 = vsub.f32 %v1964_v24, %v9362_v58  ;;  %v9401_v26 = vand.u32 4294901760, %v1966_v57  ;;  %v9406_v15 = vsub.f32 %v2001_v59, %v9370_v16  ;;  %v9413_v24 = vsub.f32 %v2004_v20, %v9380_v30  ;;  %v2008_v4 = vld [vmem:[#allocation2 + $0x1c8] sm:$0xff]  ;;  %v1967_v30 = vld [vmem:[#allocation2 + $0x80] sm:$0xff] }
 0x27f   :  { %12673 = vst [vmem:[#allocation105_spill] sm:$0xff] %v9389_v28  ;;  %12674 = vst [vmem:[#allocation106_spill] sm:$0xff] %v9391_v54  ;;  %7132 = vmatpush1.bf16.msra.mxu0 %v8929_v37  ;;  %2210 = vmatprep.mubr.f32.mxu0 %v2209_v9  ;;  %v2238_v1 = vsub.f32 %v9311_v32, %v12675_v17  ;;  %v9408_v37 = vand.u32 4294901760, %v2003_v0  ;;  %v2230_v9 = vand.u32 4294901760, %v2229_v18  ;;  %v9415_v17 = vand.u32 4294901760, %v2006_v53 }
 0x280   :  { %12676 = vst [vmem:[#allocation107_spill] sm:$0xff] %v9399_v29  ;;  %12677 = vst [vmem:[#allocation108_spill] sm:$0xff] %v9401_v26  ;;  %4158 = vmatmul.mubr.f32.gmra.mrb[2].mxu1 %v9368_v36  ;;  %7133 = vmatprep.subr.bf16.mxu0 %v12607_v3  ;;  %v9417_v58 = vand.u32 4294901760, %v1965_v21  ;;  %v12683_v59 = vand.u32 4294901760, %v9351_v35  ;;  %v9425_v18 = vsub.f32 %v1963_v46, %v9391_v54  ;;  %v9427_v20 = vand.u32 4294901760, %v1968_v23 }
 0x281   :  { %12678 = vst [vmem:[#allocation109_spill] sm:$0xff] %v9406_v15  ;;  %12679 = vst [vmem:[#allocation110_spill] sm:$0xff] %v9408_v37  ;;  %7228 = vmatpush1.bf16.msra.mxu1 %v8878_v50  ;;  %4164 = vmatprep.mubr.f32.mxu1 %v9375_v25  ;;  %v2239_v19 = vand.u32 4294901760, %v2238_v1  ;;  %v9440_v46 = vsub.f32 %v2003_v0, %v9408_v37  ;;  %v9442_v50 = vand.u32 4294901760, %v2005_v42  ;;  %v9449_v1 = vand.u32 4294901760, %v2008_v4 }
 0x282   :  { %12680 = vst [vmem:[#allocation111_spill] sm:$0xff] %v9413_v24  ;;  %12681 = vst [vmem:[#allocation112_spill] sm:$0xff] %v9415_v17  ;;  %2216 = vmatmul.mubr.f32.gmra.mrb[36].mxu0 %v2215_v49  ;;  %7229 = vmatprep.subr.bf16.mxu1 %v12607_v3  ;;  %v2244_v16 = vsub.f32 %v9351_v35, %v12683_v59  ;;  %v12686_v49 = vand.u32 4294901760, %v9360_v55  ;;  %v9435_v59 = vsub.f32 %v1966_v57, %v9401_v26  ;;  %v2007_v57 = vld [vmem:[#allocation2 + $0x1c0] sm:$0xff] }
 0x283   :  { %12682 = vst [vmem:[#allocation113_spill] sm:$0xff] %v9417_v58  ;;  %12684 = vst [vmem:[#allocation114_spill] sm:$0xff] %v9425_v18  ;;  %7135 = vmatpush1.bf16.msra.mxu0 %v8955_v13  ;;  %2225 = vmatprep.mubr.f32.mxu0 %v2224_v40  ;;  %v1970_v40 = vld [vmem:[#allocation2 + $0x98] sm:$0xff]  ;;  %v9447_v13 = vsub.f32 %v2006_v53, %v9415_v17  ;;  %v9454_v11 = vand.u32 4294901760, %v1967_v30  ;;  %v12694_v37 = vand.u32 4294901760, %v9389_v28 }
 0x284   :  { %12685 = vst [vmem:[#allocation115_spill] sm:$0xff] %v9427_v20  ;;  %v2253_v32 = vsub.f32 %v9360_v55, %v12686_v49  ;;  %12687 = vst [vmem:[#allocation116_spill] sm:$0xff] %v9435_v59  ;;  %4167 = vmatmul.mubr.f32.gmra.mrb[4].mxu1 %v9406_v15  ;;  %7136 = vmatprep.subr.bf16.mxu0 %v12607_v3  ;;  %v9452_v49 = vsub.f32 %v1965_v21, %v9417_v58  ;;  %v2245_v0 = vand.u32 4294901760, %v2244_v16  ;;  %v2010_v53 = vld [vmem:[#allocation2 + $0x1d8] sm:$0xff]  ;;  %v1969_v55 = vld [vmem:[#allocation2 + $0x90] sm:$0xff] }
 0x285   :  { %12688 = vst [vmem:[#allocation117_spill] sm:$0xff] %v9440_v46  ;;  %12689 = vst [vmem:[#allocation118_spill] sm:$0xff] %v9442_v50  ;;  %7231 = vmatpush1.bf16.msra.mxu1 %v8900_v52  ;;  %4173 = vmatprep.mubr.f32.mxu1 %v9413_v24  ;;  %v2259_v52 = vsub.f32 %v9389_v28, %v12694_v37  ;;  %v9462_v17 = vsub.f32 %v1968_v23, %v9427_v20  ;;  %v12696_v58 = vand.u32 4294901760, %v9399_v29  ;;  %v2012_v20 = vld [vmem:[#allocation2 + $0x1e8] sm:$0xff] }
 0x286   :  { %12690 = vst [vmem:[#allocation119_spill] sm:$0xff] %v9447_v13  ;;  %12691 = vst [vmem:[#allocation120_spill] sm:$0xff] %v9449_v1  ;;  %2231 = vmatmul.mubr.f32.gmra.mrb[38].mxu0 %v2230_v9  ;;  %7232 = vmatprep.subr.bf16.mxu1 %v12607_v3  ;;  %v2254_v21 = vand.u32 4294901760, %v2253_v32  ;;  %v9469_v54 = vand.u32 4294901760, %v1970_v40  ;;  %v9474_v23 = vsub.f32 %v2005_v42, %v9442_v50  ;;  %v9476_v37 = vand.u32 4294901760, %v2007_v57 }
 0x287   :  { %12692 = vst [vmem:[#allocation121_spill] sm:$0xff] %v9452_v49  ;;  %12693 = vst [vmem:[#allocation122_spill] sm:$0xff] %v9454_v11  ;;  %7138 = vmatpush1.bf16.msra.mxu0 %v8982_v63  ;;  %2240 = vmatprep.mubr.f32.mxu0 %v2239_v19  ;;  %v2268_v9 = vsub.f32 %v9399_v29, %v12696_v58  ;;  %v1972_v63 = vld [vmem:[#allocation2 + $0xa8] sm:$0xff]  ;;  %v9481_v19 = vsub.f32 %v2008_v4, %v9449_v1  ;;  %v9483_v32 = vand.u32 4294901760, %v2010_v53  ;;  %v2009_v58 = vld [vmem:[#allocation2 + $0x1d0] sm:$0xff] }
 0x288   :  { %12695 = vst [vmem:[#allocation123_spill] sm:$0xff] %v9462_v17  ;;  %12697 = vst [vmem:[#allocation124_spill] sm:$0xff] %v9469_v54  ;;  %4176 = vmatmul.mubr.f32.gmra.mrb[6].mxu1 %v9440_v46  ;;  %7139 = vmatprep.subr.bf16.mxu0 %v12607_v3  ;;  %v9487_v26 = vsub.f32 %v1967_v30, %v9454_v11  ;;  %v2260_v42 = vand.u32 4294901760, %v2259_v52  ;;  %v12703_v50 = vand.u32 4294901760, %v9425_v18  ;;  %v9494_v1 = vand.u32 4294901760, %v1969_v55  ;;  %v1971_v29 = vld [vmem:[#allocation2 + $0xa0] sm:$0xff] }
 0x289   :  { %12698 = vst [vmem:[#allocation125_spill] sm:$0xff] %v9474_v23  ;;  %12699 = vst [vmem:[#allocation126_spill] sm:$0xff] %v9476_v37  ;;  %7234 = vmatpush1.bf16.msra.mxu1 %v8924_v14  ;;  %4182 = vmatprep.mubr.f32.mxu1 %v9447_v13  ;;  %v2269_v16 = vand.u32 4294901760, %v2268_v9  ;;  %v12705_v30 = vand.u32 4294901760, %v9435_v59  ;;  %v9501_v11 = vsub.f32 %v1970_v40, %v9469_v54  ;;  %v9503_v52 = vand.u32 4294901760, %v1972_v63  ;;  %v2011_v54 = vld [vmem:[#allocation2 + $0x1e0] sm:$0xff] }
 0x28a   :  { %12700 = vst [vmem:[#allocation127_spill] sm:$0xff] %v9481_v19  ;;  %12701 = vst [vmem:[#allocation128_spill] sm:$0xff] %v9483_v32  ;;  %2246 = vmatmul.mubr.f32.gmra.mrb[40].mxu0 %v2245_v0  ;;  %7235 = vmatprep.subr.bf16.mxu1 %v12607_v3  ;;  %v2274_v14 = vsub.f32 %v9425_v18, %v12703_v50  ;;  %v9508_v50 = vsub.f32 %v2007_v57, %v9476_v37  ;;  %v12711_v9 = vand.u32 4294901760, %v9452_v49  ;;  %v2014_v18 = vld [vmem:[#allocation2 + $0x1f8] sm:$0xff] }
 0x28b   :  { %12702 = vst [vmem:[#allocation129_spill] sm:$0xff] %v9487_v26  ;;  %12704 = vst [vmem:[#allocation130_spill] sm:$0xff] %v9494_v1  ;;  %7141 = vmatpush1.bf16.msra.mxu0 %v9011_v8  ;;  %2255 = vmatprep.mubr.f32.mxu0 %v2254_v21  ;;  %v2283_v0 = vsub.f32 %v9435_v59, %v12705_v30  ;;  %v9510_v8 = vand.u32 4294901760, %v2009_v58  ;;  %v1974_v21 = vld [vmem:[#allocation2 + $0xb8] sm:$0xff]  ;;  %v9515_v40 = vsub.f32 %v2010_v53, %v9483_v32 }
 0x28c   :  { %12706 = vst [vmem:[#allocation131_spill] sm:$0xff] %v9501_v11  ;;  %12707 = vst [vmem:[#allocation132_spill] sm:$0xff] %v9503_v52  ;;  %4185 = vmatmul.mubr.f32.gmra.mrb[8].mxu1 %v9474_v23  ;;  %7142 = vmatprep.subr.bf16.mxu0 %v12607_v3  ;;  %v2289_v30 = vsub.f32 %v9452_v49, %v12711_v9  ;;  %v9520_v4 = vand.u32 4294901760, %v2012_v20  ;;  %v2275_v37 = vand.u32 4294901760, %v2274_v14  ;;  %v9530_v32 = vand.u32 4294901760, %v1971_v29  ;;  %v1973_v49 = vld [vmem:[#allocation2 + $0xb0] sm:$0xff] }
 0x28d   :  { %12708 = vst [vmem:[#allocation133_spill] sm:$0xff] %v9508_v50  ;;  %12709 = vst [vmem:[#allocation134_spill] sm:$0xff] %v9510_v8  ;;  %7237 = vmatpush1.bf16.msra.mxu1 %v8950_v61  ;;  %4191 = vmatprep.mubr.f32.mxu1 %v9481_v19  ;;  %v12713_v61 = vand.u32 4294901760, %v9462_v17  ;;  %v9528_v53 = vsub.f32 %v1969_v55, %v9494_v1  ;;  %v2284_v9 = vand.u32 4294901760, %v2283_v0  ;;  %v9537_v14 = vand.u32 4294901760, %v1974_v21  ;;  %v2013_v1 = vld [vmem:[#allocation2 + $0x1f0] sm:$0xff] }
 0x28e   :  { %12710 = vst [vmem:[#allocation135_spill] sm:$0xff] %v9515_v40  ;;  %12712 = vst [vmem:[#allocation136_spill] sm:$0xff] %v9520_v4  ;;  %2261 = vmatmul.mubr.f32.gmra.mrb[42].mxu0 %v2260_v42  ;;  %7238 = vmatprep.subr.bf16.mxu1 %v12607_v3  ;;  %v9535_v42 = vsub.f32 %v1972_v63, %v9503_v52  ;;  %v9544_v55 = vand.u32 4294901760, %v2011_v54  ;;  %v9549_v63 = vsub.f32 %v2012_v20, %v9520_v4  ;;  %v1975_v20 = vld [vmem:[#allocation2 + $0xc0] sm:$0xff] }
 0x28f   :  { %v2298_v59 = vsub.f32 %v9462_v17, %v12713_v61  ;;  %12714 = vst [vmem:[#allocation137_spill] sm:$0xff] %v9528_v53  ;;  %12715 = vst [vmem:[#allocation138_spill] sm:$0xff] %v9530_v32  ;;  %7144 = vmatpush1.bf16.msra.mxu0 %v9048_v34  ;;  %2270 = vmatprep.mubr.f32.mxu0 %v2269_v16  ;;  %v9542_v61 = vsub.f32 %v2009_v58, %v9510_v8  ;;  %v1976_v34 = vld [vmem:[#allocation2 + $0xc8] sm:$0xff]  ;;  %v2290_v16 = vand.u32 4294901760, %v2289_v30 }
 0x290   :  { %12716 = vst [vmem:[#allocation139_spill] sm:$0xff] %v9535_v42  ;;  %12717 = vst [vmem:[#allocation140_spill] sm:$0xff] %v9537_v14  ;;  %4194 = vmatmul.mubr.f32.gmra.mrb[10].mxu1 %v9508_v50  ;;  %7145 = vmatprep.subr.bf16.mxu0 %v12607_v3  ;;  %v12721_v0 = vand.u32 4294901760, %v9487_v26  ;;  %v9554_v52 = vand.u32 4294901760, %v2014_v18  ;;  %v9559_v17 = vsub.f32 %v1971_v29, %v9530_v32  ;;  %v9561_v30 = vand.u32 4294901760, %v1973_v49  ;;  %v2018_v32 = vld [vmem:[#allocation2 + $0x218] sm:$0xff] }
 0x291   :  { %12718 = vst [vmem:[#allocation141_spill] sm:$0xff] %v9542_v61  ;;  %12719 = vst [vmem:[#allocation142_spill] sm:$0xff] %v9544_v55  ;;  %7240 = vmatpush1.bf16.msra.mxu1 %v8977_v7  ;;  %4200 = vmatprep.mubr.f32.mxu1 %v9515_v40  ;;  %v2299_v58 = vand.u32 4294901760, %v2298_v59  ;;  %v2016_v7 = vld [vmem:[#allocation2 + $0x208] sm:$0xff]  ;;  %v9569_v59 = vsub.f32 %v1974_v21, %v9537_v14  ;;  %v9571_v8 = vand.u32 4294901760, %v1976_v34  ;;  %v9587_v14 = vand.u32 4294901760, %v1975_v20 }
 0x292   :  { %12720 = vst [vmem:[#allocation143_spill] sm:$0xff] %v9549_v63  ;;  %v2304_v57 = vsub.f32 %v9487_v26, %v12721_v0  ;;  %12722 = vst [vmem:[#allocation144_spill] sm:$0xff] %v9554_v52  ;;  %2276 = vmatmul.mubr.f32.gmra.mrb[44].mxu0 %v2275_v37  ;;  %7241 = vmatprep.subr.bf16.mxu1 %v12607_v3  ;;  %v12725_v0 = vand.u32 4294901760, %v9501_v11  ;;  %v1978_v26 = vld [vmem:[#allocation2 + $0xd8] sm:$0xff]  ;;  %v9576_v29 = vsub.f32 %v2011_v54, %v9544_v55  ;;  %v2015_v37 = vld [vmem:[#allocation2 + $0x200] sm:$0xff] }
 0x293   :  { %12723 = vst [vmem:[#allocation145_spill] sm:$0xff] %v9559_v17  ;;  %12724 = vst [vmem:[#allocation146_spill] sm:$0xff] %v9561_v30  ;;  %7147 = vmatpush1.bf16.msra.mxu0 %v9077_v12  ;;  %2285 = vmatprep.mubr.f32.mxu0 %v2284_v9  ;;  %v9578_v12 = vand.u32 4294901760, %v2013_v1  ;;  %v9583_v21 = vsub.f32 %v2014_v18, %v9554_v52  ;;  %v12733_v54 = vand.u32 4294901760, %v9528_v53  ;;  %v9597_v18 = vand.u32 4294901760, %v1978_v26  ;;  %v1977_v52 = vld [vmem:[#allocation2 + $0xd0] sm:$0xff] }
 0x294   :  { %v2313_v4 = vsub.f32 %v9501_v11, %v12725_v0  ;;  %12726 = vst [vmem:[#allocation147_spill] sm:$0xff] %v9569_v59  ;;  %12727 = vst [vmem:[#allocation148_spill] sm:$0xff] %v9571_v8  ;;  %4203 = vmatmul.mubr.f32.gmra.mrb[12].mxu1 %v9542_v61  ;;  %7148 = vmatprep.subr.bf16.mxu0 %v12607_v3  ;;  %v2305_v9 = vand.u32 4294901760, %v2304_v57  ;;  %v9585_v0 = vand.u32 4294901760, %v2016_v7  ;;  %v9624_v35 = vand.u32 4294901760, %v1977_v52 }
 0x295   :  { %12728 = vst [vmem:[#allocation149_spill] sm:$0xff] %v9576_v29  ;;  %12729 = vst [vmem:[#allocation150_spill] sm:$0xff] %v9578_v12  ;;  %7243 = vmatpush1.bf16.msra.mxu1 %v9006_v41  ;;  %4209 = vmatprep.mubr.f32.mxu1 %v9549_v63  ;;  %v2319_v55 = vsub.f32 %v9528_v53, %v12733_v54  ;;  %v9595_v57 = vsub.f32 %v1973_v49, %v9561_v30  ;;  %v9612_v41 = vand.u32 4294901760, %v2015_v37 }
 0x296   :  { %12730 = vst [vmem:[#allocation151_spill] sm:$0xff] %v9583_v21  ;;  %12731 = vst [vmem:[#allocation152_spill] sm:$0xff] %v9585_v0  ;;  %2291 = vmatmul.mubr.f32.gmra.mrb[46].mxu0 %v2290_v16  ;;  %7244 = vmatprep.subr.bf16.mxu1 %v12607_v3  ;;  %v2314_v11 = vand.u32 4294901760, %v2313_v4  ;;  %v12736_v16 = vand.u32 4294901760, %v9535_v42  ;;  %v9605_v54 = vsub.f32 %v1976_v34, %v9571_v8  ;;  %v2017_v34 = vld [vmem:[#allocation2 + $0x210] sm:$0xff] }
 0x297   :  { %12732 = vst [vmem:[#allocation153_spill] sm:$0xff] %v9587_v14  ;;  %12734 = vst [vmem:[#allocation154_spill] sm:$0xff] %v9595_v57  ;;  %7150 = vmatpush1.bf16.msra.mxu0 %v9106_v47  ;;  %2300 = vmatprep.mubr.f32.mxu0 %v2299_v58  ;;  %v9610_v49 = vsub.f32 %v2013_v1, %v9578_v12  ;;  %v1980_v47 = vld [vmem:[#allocation2 + $0xe8] sm:$0xff]  ;;  %v9617_v4 = vsub.f32 %v2016_v7, %v9585_v0  ;;  %v9619_v58 = vand.u32 4294901760, %v2018_v32 }
 0x298   :  { %12735 = vst [vmem:[#allocation155_spill] sm:$0xff] %v9597_v18  ;;  %v2328_v28 = vsub.f32 %v9535_v42, %v12736_v16  ;;  %12737 = vst [vmem:[#allocation156_spill] sm:$0xff] %v9605_v54  ;;  %4212 = vmatmul.mubr.f32.gmra.mrb[14].mxu1 %v9576_v29  ;;  %7151 = vmatprep.subr.bf16.mxu0 %v12607_v3  ;;  %v9622_v16 = vsub.f32 %v1975_v20, %v9587_v14  ;;  %v2320_v1 = vand.u32 4294901760, %v2319_v55  ;;  %v2020_v7 = vld [vmem:[#allocation2 + $0x228] sm:$0xff]  ;;  %v1979_v42 = vld [vmem:[#allocation2 + $0xe0] sm:$0xff] }
 0x299   :  { %12738 = vst [vmem:[#allocation157_spill] sm:$0xff] %v9610_v49  ;;  %12739 = vst [vmem:[#allocation158_spill] sm:$0xff] %v9612_v41  ;;  %7246 = vmatpush1.bf16.msra.mxu1 %v9041_v60  ;;  %4218 = vmatprep.mubr.f32.mxu1 %v9583_v21  ;;  %v12744_v12 = vand.u32 4294901760, %v9559_v17  ;;  %v9632_v0 = vsub.f32 %v1978_v26, %v9597_v18  ;;  %v12746_v14 = vand.u32 4294901760, %v9569_v59  ;;  %v9639_v30 = vand.u32 4294901760, %v1980_v47  ;;  %v2022_v18 = vld [vmem:[#allocation2 + $0x238] sm:$0xff] }
 0x29a   :  { %12740 = vst [vmem:[#allocation159_spill] sm:$0xff] %v9617_v4  ;;  %12741 = vst [vmem:[#allocation160_spill] sm:$0xff] %v9619_v58  ;;  %2306 = vmatmul.mubr.f32.gmra.mrb[48].mxu0 %v2305_v9  ;;  %7247 = vmatprep.subr.bf16.mxu1 %v12607_v3  ;;  %v2329_v20 = vand.u32 4294901760, %v2328_v28  ;;  %v9644_v26 = vsub.f32 %v2015_v37, %v9612_v41  ;;  %v9653_v28 = vand.u32 4294901760, %v2020_v7  ;;  %v12753_v41 = vand.u32 4294901760, %v9595_v57 }
 0x29b   :  { %12742 = vst [vmem:[#allocation161_spill] sm:$0xff] %v9622_v16  ;;  %12743 = vst [vmem:[#allocation162_spill] sm:$0xff] %v9624_v35  ;;  %v2334_v60 = vsub.f32 %v9559_v17, %v12744_v12  ;;  %7153 = vmatpush1.bf16.msra.mxu0 %v9142_v33  ;;  %2315 = vmatprep.mubr.f32.mxu0 %v2314_v11  ;;  %v2343_v9 = vsub.f32 %v9569_v59, %v12746_v14  ;;  %v9646_v12 = vand.u32 4294901760, %v2017_v34  ;;  %v1982_v33 = vld [vmem:[#allocation2 + $0xf8] sm:$0xff]  ;;  %v2019_v14 = vld [vmem:[#allocation2 + $0x220] sm:$0xff] }
 0x29c   :  { %12745 = vst [vmem:[#allocation163_spill] sm:$0xff] %v9632_v0  ;;  %12747 = vst [vmem:[#allocation164_spill] sm:$0xff] %v9639_v30  ;;  %4221 = vmatmul.mubr.f32.gmra.mrb[16].mxu1 %v9610_v49  ;;  %7154 = vmatprep.subr.bf16.mxu0 %v12607_v3  ;;  %v9651_v11 = vsub.f32 %v2018_v32, %v9619_v58  ;;  %v9657_v8 = vsub.f32 %v1977_v52, %v9624_v35  ;;  %v9664_v58 = vand.u32 4294901760, %v1979_v42  ;;  %v1981_v59 = vld [vmem:[#allocation2 + $0xf0] sm:$0xff] }
 0x29d   :  { %12748 = vst [vmem:[#allocation165_spill] sm:$0xff] %v9644_v26  ;;  %12749 = vst [vmem:[#allocation166_spill] sm:$0xff] %v9646_v12  ;;  %7249 = vmatpush1.bf16.msra.mxu1 %v9072_v44  ;;  %4227 = vmatprep.mubr.f32.mxu1 %v9617_v4  ;;  %v2335_v37 = vand.u32 4294901760, %v2334_v60  ;;  %v2349_v44 = vsub.f32 %v9595_v57, %v12753_v41  ;;  %v2344_v55 = vand.u32 4294901760, %v2343_v9  ;;  %v12755_v52 = vand.u32 4294901760, %v9605_v54  ;;  %v2024_v57 = vld [vmem:[#allocation2 + $0x248] sm:$0xff] }
 0x29e   :  { %12750 = vst [vmem:[#allocation167_spill] sm:$0xff] %v9651_v11  ;;  %12751 = vst [vmem:[#allocation168_spill] sm:$0xff] %v9653_v28  ;;  %2321 = vmatmul.mubr.f32.gmra.mrb[50].mxu0 %v2320_v1  ;;  %7250 = vmatprep.subr.bf16.mxu1 %v12607_v3  ;;  %v9671_v35 = vsub.f32 %v1980_v47, %v9639_v30  ;;  %v9673_v60 = vand.u32 4294901760, %v1982_v33  ;;  %v9678_v41 = vsub.f32 %v2017_v34, %v9646_v12  ;;  %v2021_v30 = vld [vmem:[#allocation2 + $0x230] sm:$0xff] }
 0x29f   :  { %12752 = vst [vmem:[#allocation169_spill] sm:$0xff] %v9657_v8  ;;  %12754 = vst [vmem:[#allocation170_spill] sm:$0xff] %v9664_v58  ;;  %7156 = vmatpush1.bf16.msra.mxu0 %v9179_v6  ;;  %2330 = vmatprep.mubr.f32.mxu0 %v2329_v20  ;;  %v2358_v1 = vsub.f32 %v9605_v54, %v12755_v52  ;;  %v9680_v6 = vand.u32 4294901760, %v2019_v14  ;;  %v1984_v20 = vld [vmem:[#allocation2 + $0x108] sm:$0xff]  ;;  %v9685_v47 = vsub.f32 %v2020_v7, %v9653_v28 }
 0x2a0   :  { %12756 = vst [vmem:[#allocation171_spill] sm:$0xff] %v9671_v35  ;;  %12757 = vst [vmem:[#allocation172_spill] sm:$0xff] %v9673_v60  ;;  %4230 = vmatmul.mubr.f32.gmra.mrb[18].mxu1 %v9644_v26  ;;  %7157 = vmatprep.subr.bf16.mxu0 %v12607_v3  ;;  %v12761_v9 = vand.u32 4294901760, %v9622_v16  ;;  %v9690_v32 = vand.u32 4294901760, %v2022_v18  ;;  %v2350_v12 = vand.u32 4294901760, %v2349_v44  ;;  %v9698_v7 = vsub.f32 %v1979_v42, %v9664_v58  ;;  %v2023_v58 = vld [vmem:[#allocation2 + $0x240] sm:$0xff] }
 0x2a1   :  { %12758 = vst [vmem:[#allocation173_spill] sm:$0xff] %v9678_v41  ;;  %12759 = vst [vmem:[#allocation174_spill] sm:$0xff] %v9680_v6  ;;  %7252 = vmatpush1.bf16.msra.mxu1 %v9101_v27  ;;  %4236 = vmatprep.mubr.f32.mxu1 %v9651_v11  ;;  %v12763_v27 = vand.u32 4294901760, %v9632_v0  ;;  %v9700_v28 = vand.u32 4294901760, %v1981_v59  ;;  %v9707_v44 = vand.u32 4294901760, %v1984_v20  ;;  %v9714_v42 = vand.u32 4294901760, %v2021_v30 }
 0x2a2   :  { %12760 = vst [vmem:[#allocation175_spill] sm:$0xff] %v9685_v47  ;;  %v2364_v52 = vsub.f32 %v9622_v16, %v12761_v9  ;;  %12762 = vst [vmem:[#allocation176_spill] sm:$0xff] %v9690_v32  ;;  %2336 = vmatmul.mubr.f32.gmra.mrb[52].mxu0 %v2335_v37  ;;  %7253 = vmatprep.subr.bf16.mxu1 %v12607_v3  ;;  %v2359_v9 = vand.u32 4294901760, %v2358_v1  ;;  %v9705_v37 = vsub.f32 %v1982_v33, %v9673_v60  ;;  %v1983_v16 = vld [vmem:[#allocation2 + $0x100] sm:$0xff] }
 0x2a3   :  { %v2373_v54 = vsub.f32 %v9632_v0, %v12763_v27  ;;  %12764 = vst [vmem:[#allocation177_spill] sm:$0xff] %v9698_v7  ;;  %12765 = vst [vmem:[#allocation178_spill] sm:$0xff] %v9700_v28  ;;  %7159 = vmatpush1.bf16.msra.mxu0 %v9212_v39  ;;  %2345 = vmatprep.mubr.f32.mxu0 %v2344_v55  ;;  %v9712_v27 = vsub.f32 %v2019_v14, %v9680_v6  ;;  %v1986_v39 = vld [vmem:[#allocation2 + $0x118] sm:$0xff]  ;;  %v12771_v1 = vand.u32 4294901760, %v9657_v8 }
 0x2a4   :  { %12766 = vst [vmem:[#allocation179_spill] sm:$0xff] %v9705_v37  ;;  %12767 = vst [vmem:[#allocation180_spill] sm:$0xff] %v9707_v44  ;;  %4239 = vmatmul.mubr.f32.gmra.mrb[20].mxu1 %v9678_v41  ;;  %7160 = vmatprep.subr.bf16.mxu0 %v12607_v3  ;;  %v2365_v55 = vand.u32 4294901760, %v2364_v52  ;;  %v9719_v33 = vsub.f32 %v2022_v18, %v9690_v32  ;;  %v9724_v60 = vand.u32 4294901760, %v2024_v57  ;;  %v9731_v52 = vand.u32 4294901760, %v1983_v16  ;;  %v1985_v18 = vld [vmem:[#allocation2 + $0x110] sm:$0xff] }
 0x2a5   :  { %12768 = vst [vmem:[#allocation181_spill] sm:$0xff] %v9712_v27  ;;  %12769 = vst [vmem:[#allocation182_spill] sm:$0xff] %v9714_v42  ;;  %7255 = vmatpush1.bf16.msra.mxu1 %v9137_v10  ;;  %4245 = vmatprep.mubr.f32.mxu1 %v9685_v47  ;;  %v2379_v34 = vsub.f32 %v9657_v8, %v12771_v1  ;;  %v2374_v14 = vand.u32 4294901760, %v2373_v54  ;;  %v2026_v10 = vld [vmem:[#allocation2 + $0x258] sm:$0xff]  ;;  %v9729_v0 = vsub.f32 %v1981_v59, %v9700_v28  ;;  %v1988_v8 = vld [vmem:[#allocation2 + $0x128] sm:$0xff] }
 0x2a6   :  { %12770 = vst [vmem:[#allocation183_spill] sm:$0xff] %v9719_v33  ;;  %12772 = vst [vmem:[#allocation184_spill] sm:$0xff] %v9724_v60  ;;  %2351 = vmatmul.mubr.f32.gmra.mrb[54].mxu0 %v2350_v12  ;;  %7256 = vmatprep.subr.bf16.mxu1 %v12607_v3  ;;  %v12775_v1 = vand.u32 4294901760, %v9671_v35  ;;  %v9739_v54 = vsub.f32 %v1984_v20, %v9707_v44  ;;  %v9741_v6 = vand.u32 4294901760, %v1986_v39  ;;  %v2025_v12 = vld [vmem:[#allocation2 + $0x250] sm:$0xff]  ;;  %v9757_v44 = vand.u32 4294901760, %v1985_v18 }
 0x2a7   :  { %12773 = vst [vmem:[#allocation185_spill] sm:$0xff] %v9729_v0  ;;  %12774 = vst [vmem:[#allocation186_spill] sm:$0xff] %v9731_v52  ;;  %7162 = vmatpush1.bf16.msra.mxu0 %v9241_v62  ;;  %2360 = vmatprep.mubr.f32.mxu0 %v2359_v9  ;;  %v9746_v59 = vsub.f32 %v2021_v30, %v9714_v42  ;;  %v9748_v62 = vand.u32 4294901760, %v2023_v58  ;;  %v2380_v9 = vand.u32 4294901760, %v2379_v34  ;;  %v12783_v30 = vand.u32 4294901760, %v9698_v7  ;;  %v2028_v28 = vld [vmem:[#allocation2 + $0x268] sm:$0xff] }
 0x2a8   :  { %v2388_v32 = vsub.f32 %v9671_v35, %v12775_v1  ;;  %12776 = vst [vmem:[#allocation187_spill] sm:$0xff] %v9739_v54  ;;  %12777 = vst [vmem:[#allocation188_spill] sm:$0xff] %v9741_v6  ;;  %4248 = vmatmul.mubr.f32.gmra.mrb[22].mxu1 %v9712_v27  ;;  %7163 = vmatprep.subr.bf16.mxu0 %v12607_v3  ;;  %v9753_v20 = vsub.f32 %v2024_v57, %v9724_v60  ;;  %v9755_v1 = vand.u32 4294901760, %v2026_v10  ;;  %v1987_v60 = vld [vmem:[#allocation2 + $0x120] sm:$0xff] }
 0x2a9   :  { %12778 = vst [vmem:[#allocation189_spill] sm:$0xff] %v9746_v59  ;;  %12779 = vst [vmem:[#allocation190_spill] sm:$0xff] %v9748_v62  ;;  %7258 = vmatpush1.bf16.msra.mxu1 %v9172_v51  ;;  %4254 = vmatprep.mubr.f32.mxu1 %v9719_v33  ;;  %v2394_v42 = vsub.f32 %v9698_v7, %v12783_v30  ;;  %v9765_v34 = vsub.f32 %v1983_v16, %v9731_v52  ;;  %v9767_v57 = vand.u32 4294901760, %v1988_v8  ;;  %v2036_v7 = vld [vmem:[#allocation2 + $0x2a8] sm:$0xff] }
 0x2aa   :  { %12780 = vst [vmem:[#allocation191_spill] sm:$0xff] %v9753_v20  ;;  %12781 = vst [vmem:[#allocation192_spill] sm:$0xff] %v9755_v1  ;;  %2366 = vmatmul.mubr.f32.gmra.mrb[56].mxu0 %v2365_v55  ;;  %7259 = vmatprep.subr.bf16.mxu1 %v12607_v3  ;;  %v2389_v35 = vand.u32 4294901760, %v2388_v32  ;;  %v12786_v55 = vand.u32 4294901760, %v9705_v37  ;;  %v9775_v30 = vsub.f32 %v1986_v39, %v9741_v6  ;;  %v9782_v51 = vand.u32 4294901760, %v2025_v12  ;;  %v2027_v39 = vld [vmem:[#allocation2 + $0x260] sm:$0xff] }
 0x2ab   :  { %12782 = vst [vmem:[#allocation193_spill] sm:$0xff] %v9757_v44  ;;  %12784 = vst [vmem:[#allocation194_spill] sm:$0xff] %v9765_v34  ;;  %7165 = vmatpush1.bf16.msra.mxu0 %v9276_v38  ;;  %2375 = vmatprep.mubr.f32.mxu0 %v2374_v14  ;;  %v9780_v16 = vsub.f32 %v2023_v58, %v9748_v62  ;;  %v1990_v38 = vld [vmem:[#allocation2 + $0x138] sm:$0xff]  ;;  %v9787_v32 = vsub.f32 %v2026_v10, %v9755_v1  ;;  %v9789_v14 = vand.u32 4294901760, %v2028_v28 }
 0x2ac   :  { %12785 = vst [vmem:[#allocation195_spill] sm:$0xff] %v9767_v57  ;;  %v2403_v17 = vsub.f32 %v9705_v37, %v12786_v55  ;;  %12787 = vst [vmem:[#allocation196_spill] sm:$0xff] %v9775_v30  ;;  %4257 = vmatmul.mubr.f32.gmra.mrb[24].mxu1 %v9746_v59  ;;  %7166 = vmatprep.subr.bf16.mxu0 %v12607_v3  ;;  %v9792_v55 = vsub.f32 %v1985_v18, %v9757_v44  ;;  %v9794_v53 = vand.u32 4294901760, %v1987_v60  ;;  %v2030_v10 = vld [vmem:[#allocation2 + $0x278] sm:$0xff]  ;;  %v1989_v37 = vld [vmem:[#allocation2 + $0x130] sm:$0xff] }
 0x2ad   :  { %12788 = vst [vmem:[#allocation197_spill] sm:$0xff] %v9780_v16  ;;  %12789 = vst [vmem:[#allocation198_spill] sm:$0xff] %v9782_v51  ;;  %7261 = vmatpush1.bf16.msra.mxu1 %v9205_v2  ;;  %4263 = vmatprep.mubr.f32.mxu1 %v9753_v20  ;;  %v2395_v58 = vand.u32 4294901760, %v2394_v42  ;;  %v12794_v62 = vand.u32 4294901760, %v9729_v0  ;;  %v9802_v1 = vsub.f32 %v1988_v8, %v9767_v57  ;;  %v12796_v44 = vand.u32 4294901760, %v9739_v54  ;;  %v2032_v57 = vld [vmem:[#allocation2 + $0x288] sm:$0xff] }
 0x2ae   :  { %12790 = vst [vmem:[#allocation199_spill] sm:$0xff] %v9787_v32  ;;  %12791 = vst [vmem:[#allocation200_spill] sm:$0xff] %v9789_v14  ;;  %2381 = vmatmul.mubr.f32.gmra.mrb[58].mxu0 %v2380_v9  ;;  %7262 = vmatprep.subr.bf16.mxu1 %v12607_v3  ;;  %v2404_v18 = vand.u32 4294901760, %v2403_v17  ;;  %v9809_v52 = vand.u32 4294901760, %v1990_v38  ;;  %v9814_v8 = vsub.f32 %v2025_v12, %v9782_v51  ;;  %v9823_v17 = vand.u32 4294901760, %v2030_v10 }
 0x2af   :  { %12792 = vst [vmem:[#allocation201_spill] sm:$0xff] %v9792_v55  ;;  %12793 = vst [vmem:[#allocation202_spill] sm:$0xff] %v9794_v53  ;;  %v2409_v2 = vsub.f32 %v9729_v0, %v12794_v62  ;;  %7168 = vmatpush1.bf16.msra.mxu0 %v9306_v48  ;;  %2390 = vmatprep.mubr.f32.mxu0 %v2389_v35  ;;  %v2418_v9 = vsub.f32 %v9739_v54, %v12796_v44  ;;  %v9816_v62 = vand.u32 4294901760, %v2027_v39  ;;  %v1992_v48 = vld [vmem:[#allocation2 + $0x148] sm:$0xff]  ;;  %v2029_v44 = vld [vmem:[#allocation2 + $0x270] sm:$0xff] }
 0x2b0   :  { %12795 = vst [vmem:[#allocation203_spill] sm:$0xff] %v9802_v1  ;;  %12797 = vst [vmem:[#allocation204_spill] sm:$0xff] %v9809_v52  ;;  %4266 = vmatmul.mubr.f32.gmra.mrb[26].mxu1 %v9780_v16  ;;  %7169 = vmatprep.subr.bf16.mxu0 %v12607_v3  ;;  %v9821_v35 = vsub.f32 %v2028_v28, %v9789_v14  ;;  %v9827_v6 = vsub.f32 %v1987_v60, %v9794_v53  ;;  %v12803_v51 = vand.u32 4294901760, %v9765_v34  ;;  %v1991_v54 = vld [vmem:[#allocation2 + $0x140] sm:$0xff]  ;;  %v2034_v0 = vld [vmem:[#allocation2 + $0x298] sm:$0xff] }
 0x2b1   :  { %12798 = vst [vmem:[#allocation205_spill] sm:$0xff] %v9814_v8  ;;  %12799 = vst [vmem:[#allocation206_spill] sm:$0xff] %v9816_v62  ;;  %7264 = vmatpush1.bf16.msra.mxu1 %v9236_v22  ;;  %4272 = vmatprep.mubr.f32.mxu1 %v9787_v32  ;;  %v2410_v12 = vand.u32 4294901760, %v2409_v2  ;;  %v9834_v14 = vand.u32 4294901760, %v1989_v37  ;;  %v2419_v42 = vand.u32 4294901760, %v2418_v9  ;;  %v12805_v60 = vand.u32 4294901760, %v9775_v30 }
 0x2b2   :  { %12800 = vst [vmem:[#allocation207_spill] sm:$0xff] %v9821_v35  ;;  %12801 = vst [vmem:[#allocation208_spill] sm:$0xff] %v9823_v17  ;;  %2396 = vmatmul.mubr.f32.gmra.mrb[60].mxu0 %v2395_v58  ;;  %7265 = vmatprep.subr.bf16.mxu1 %v12607_v3  ;;  %v2424_v22 = vsub.f32 %v9765_v34, %v12803_v51  ;;  %v9841_v53 = vsub.f32 %v1990_v38, %v9809_v52  ;;  %v9843_v2 = vand.u32 4294901760, %v1992_v48  ;;  %v12810_v9 = vld [vmem:[#allocation83_spill] sm:$0xff] }
 0x2b3   :  { %12802 = vst [vmem:[#allocation209_spill] sm:$0xff] %v9827_v6  ;;  %12804 = vst [vmem:[#allocation210_spill] sm:$0xff] %v9834_v14  ;;  %7171 = vmatpush1.bf16.msra.mxu0 %v9342_v5  ;;  %2405 = vmatprep.mubr.f32.mxu0 %v2404_v18  ;;  %v2433_v58 = vsub.f32 %v9775_v30, %v12805_v60  ;;  %v9848_v51 = vsub.f32 %v2027_v39, %v9816_v62  ;;  %v9850_v5 = vand.u32 4294901760, %v2029_v44  ;;  %v1994_v18 = vld [vmem:[#allocation2 + $0x158] sm:$0xff]  ;;  %v2031_v30 = vld [vmem:[#allocation2 + $0x280] sm:$0xff] }
 0x2b4   :  { %12806 = vst [vmem:[#allocation211_spill] sm:$0xff] %v9841_v53  ;;  %12807 = vst [vmem:[#allocation212_spill] sm:$0xff] %v9843_v2  ;;  %4275 = vmatmul.mubr.f32.gmra.mrb[28].mxu1 %v9814_v8  ;;  %7172 = vmatprep.subr.bf16.mxu0 %v12607_v3  ;;  %v9855_v38 = vsub.f32 %v2030_v10, %v9823_v17  ;;  %v12812_v60 = vand.u32 4294901760, %v9792_v55  ;;  %v9860_v52 = vand.u32 4294901760, %v2032_v57  ;;  %v2425_v62 = vand.u32 4294901760, %v2424_v22 }
 0x2b5   :  { %12808 = vst [vmem:[#allocation213_spill] sm:$0xff] %v9848_v51  ;;  %12809 = vst [vmem:[#allocation214_spill] sm:$0xff] %v9850_v5  ;;  %7267 = vmatpush1.bf16.msra.mxu1 %v12810_v9  ;;  %4281 = vmatprep.mubr.f32.mxu1 %v9821_v35  ;;  %v12814_v9 = vand.u32 4294901760, %v9802_v1  ;;  %v9868_v10 = vsub.f32 %v1989_v37, %v9834_v14  ;;  %v9870_v17 = vand.u32 4294901760, %v1991_v54  ;;  %v9877_v22 = vand.u32 4294901760, %v1994_v18  ;;  %v1996_v14 = vld [vmem:[#allocation2 + $0x168] sm:$0xff] }
 0x2b6   :  { %12811 = vst [vmem:[#allocation215_spill] sm:$0xff] %v9855_v38  ;;  %v2439_v28 = vsub.f32 %v9792_v55, %v12812_v60  ;;  %12813 = vst [vmem:[#allocation216_spill] sm:$0xff] %v9860_v52  ;;  %2411 = vmatmul.mubr.f32.gmra.mrb[62].mxu0 %v2410_v12  ;;  %7268 = vmatprep.subr.bf16.mxu1 %v12607_v3  ;;  %v2434_v60 = vand.u32 4294901760, %v2433_v58  ;;  %v9875_v12 = vsub.f32 %v1992_v48, %v9843_v2  ;;  %v1993_v55 = vld [vmem:[#allocation2 + $0x150] sm:$0xff] }
 0x2b7   :  { %v2448_v34 = vsub.f32 %v9802_v1, %v12814_v9  ;;  %12815 = vst [vmem:[#allocation217_spill] sm:$0xff] %v9868_v10  ;;  %12816 = vst [vmem:[#allocation218_spill] sm:$0xff] %v9870_v17  ;;  %7174 = vmatpush1.bf16.msra.mxu0 %v9382_v45  ;;  %2420 = vmatprep.mubr.f32.mxu0 %v2419_v42  ;;  %v9881_v9 = vsub.f32 %v2029_v44, %v9850_v5  ;;  %v9883_v37 = vand.u32 4294901760, %v2031_v30  ;;  %v12820_v45 = vld [vmem:[#allocation89_spill] sm:$0xff]  ;;  %v2033_v44 = vld [vmem:[#allocation2 + $0x290] sm:$0xff] }
 0x2b8   :  { %12817 = vst [vmem:[#allocation219_spill] sm:$0xff] %v9875_v12  ;;  %12818 = vst [vmem:[#allocation220_spill] sm:$0xff] %v9877_v22  ;;  %4284 = vmatmul.mubr.f32.gmra.mrb[30].mxu1 %v9848_v51  ;;  %7175 = vmatprep.subr.bf16.mxu0 %v12607_v3  ;;  %v2440_v42 = vand.u32 4294901760, %v2439_v28  ;;  %v9889_v48 = vsub.f32 %v2032_v57, %v9860_v52  ;;  %v12822_v58 = vand.u32 4294901760, %v9827_v6  ;;  %v9894_v2 = vand.u32 4294901760, %v2034_v0  ;;  %v1995_v1 = vld [vmem:[#allocation2 + $0x160] sm:$0xff] }
 0x2b9   :  { %12819 = vst [vmem:[#allocation221_spill] sm:$0xff] %v9883_v37  ;;  %7270 = vmatpush1.bf16.msra.mxu1 %v12820_v45  ;;  %4290 = vmatprep.mubr.f32.mxu1 %v9855_v38  ;;  %v2449_v5 = vand.u32 4294901760, %v2448_v34  ;;  %v9898_v45 = vsub.f32 %v1991_v54, %v9870_v17  ;;  %v9900_v31 = vand.u32 4294901760, %v1993_v55  ;;  %v12826_v57 = vand.u32 4294901760, %v9841_v53 }
 0x2ba   :  { %12821 = vst [vmem:[#allocation222_spill] sm:$0xff] %v9889_v48  ;;  %v2454_v39 = vsub.f32 %v9827_v6, %v12822_v58  ;;  %12823 = vst [vmem:[#allocation223_spill] sm:$0xff] %v9894_v2  ;;  %2426 = vmatmul.mubr.f32.gmra.mrb[64].mxu0 %v2425_v62  ;;  %7271 = vmatprep.subr.bf16.mxu1 %v12607_v3  ;;  %v9908_v62 = vsub.f32 %v1994_v18, %v9877_v22  ;;  %v9910_v34 = vand.u32 4294901760, %v1996_v14  ;;  %v2035_v18 = vld [vmem:[#allocation2 + $0x2a0] sm:$0xff] }
 0x2bb   :  { %12824 = vst [vmem:[#allocation224_spill] sm:$0xff] %v9898_v45  ;;  %12825 = vst [vmem:[#allocation225_spill] sm:$0xff] %v9900_v31  ;;  %2435 = vmatprep.mubr.f32.mxu0 %v2434_v60  ;;  %v2463_v28 = vsub.f32 %v9841_v53, %v12826_v57  ;;  %v9914_v54 = vsub.f32 %v2031_v30, %v9883_v37  ;;  %v9916_v52 = vand.u32 4294901760, %v2033_v44  ;;  %v9922_v58 = vand.u32 4294901760, %v2036_v7  ;;  %v2038_v30 = vld [vmem:[#allocation2 + $0x2b8] sm:$0xff] }
 0x2bc   :  { %12827 = vst [vmem:[#allocation226_spill] sm:$0xff] %v9908_v62  ;;  %12828 = vst [vmem:[#allocation227_spill] sm:$0xff] %v9910_v34  ;;  %4293 = vmatmul.mubr.f32.gmra.mrb[32].mxu1 %v9881_v9  ;;  %v2455_v60 = vand.u32 4294901760, %v2454_v39  ;;  %v9920_v57 = vsub.f32 %v2034_v0, %v9894_v2  ;;  %v12831_v22 = vand.u32 4294901760, %v9868_v10  ;;  %v12265_v53 = vand.u32 4294901760, %v9898_v45 }
 0x2bd   :  { %12829 = vst [vmem:[#allocation228_spill] sm:$0xff] %v9916_v52  ;;  %4299 = vmatprep.mubr.f32.mxu1 %v9889_v48  ;;  %12830 = vst [vmem:[#allocation229_spill] sm:$0xff] %v9922_v58  ;;  %v9929_v37 = vsub.f32 %v1993_v55, %v9900_v31  ;;  %v9931_v6 = vand.u32 4294901760, %v1995_v1  ;;  %v2464_v39 = vand.u32 4294901760, %v2463_v28  ;;  %v12834_v0 = vand.u32 4294901760, %v9875_v12 }
 0x2be   :  { %2441 = vmatmul.mubr.f32.gmra.mrb[66].mxu0 %v2440_v42  ;;  %v2469_v17 = vsub.f32 %v9868_v10, %v12831_v22  ;;  %v9938_v3 = vsub.f32 %v1996_v14, %v9910_v34  ;;  %v9942_v22 = vsub.f32 %v2033_v44, %v9916_v52  ;;  %v9944_v55 = vand.u32 4294901760, %v2035_v18  ;;  %v2040_v44 = vld [vmem:[#allocation2 + $0x2c8] sm:$0xff] }
 0x2bf   :  { %12832 = vst [vmem:[#allocation230_spill] sm:$0xff] %v9929_v37  ;;  %12833 = vst [vmem:[#allocation231_spill] sm:$0xff] %v9931_v6  ;;  %2450 = vmatprep.mubr.f32.mxu0 %v2449_v5  ;;  %v2478_v2 = vsub.f32 %v9875_v12, %v12834_v0  ;;  %v9948_v5 = vsub.f32 %v2036_v7, %v9922_v58  ;;  %v9950_v28 = vand.u32 4294901760, %v2038_v30  ;;  %v2037_v0 = vld [vmem:[#allocation2 + $0x2b0] sm:$0xff]  ;;  %v12274_v34 = vand.u32 4294901760, %v9929_v37 }
 0x2c0   :  { %12835 = vst [vmem:[#allocation232_spill] sm:$0xff] %v9938_v3  ;;  %4302 = vmatmul.mubr.f32.gmra.mrb[34].mxu1 %v9914_v54  ;;  %12836 = vst [vmem:[#allocation233_spill] sm:$0xff] %v9944_v55  ;;  %v2470_v42 = vand.u32 4294901760, %v2469_v17  ;;  %v2484_v14 = vsub.f32 %v9898_v45, %v12265_v53  ;;  %v9957_v52 = vsub.f32 %v1995_v1, %v9931_v6  ;;  %v12839_v7 = vand.u32 4294901760, %v9908_v62 }
 0x2c1   :  { %4308 = vmatprep.mubr.f32.mxu1 %v9920_v57  ;;  %12837 = vst [vmem:[#allocation234_spill] sm:$0xff] %v9950_v28  ;;  %v2479_v31 = vand.u32 4294901760, %v2478_v2  ;;  %v9965_v17 = vsub.f32 %v2035_v18, %v9944_v55  ;;  %v9971_v1 = vsub.f32 %v2038_v30, %v9950_v28  ;;  %v2039_v2 = vld [vmem:[#allocation2 + $0x2c0] sm:$0xff]  ;;  %v2042_v18 = vld [vmem:[#allocation2 + $0x2d8] sm:$0xff]  ;;  %v12844_v6 = vand.u32 4294901760, %v9938_v3 }
 0x2c2   :  { %2456 = vmatmul.mubr.f32.gmra.mrb[68].mxu0 %v2455_v60  ;;  %12838 = vst [vmem:[#allocation235_spill] sm:$0xff] %v9957_v52  ;;  %v2493_v58 = vsub.f32 %v9908_v62, %v12839_v7  ;;  %v9967_v60 = vand.u32 4294901760, %v2037_v0  ;;  %v2485_v53 = vand.u32 4294901760, %v2484_v14  ;;  %v2499_v7 = vsub.f32 %v9929_v37, %v12274_v34  ;;  %v12845_v30 = vld [vmem:[#allocation8_spill] sm:$0xff] }
 0x2c3   :  { %2465 = vmatprep.mubr.f32.mxu0 %v2464_v39  ;;  %12840 = vst [vmem:[#allocation236_spill] sm:$0xff] %v9965_v17  ;;  %12842 = vst [vmem:[#allocation238_spill] sm:$0xff] %v9971_v1  ;;  %v9973_v39 = vand.u32 4294901760, %v2040_v44  ;;  %v2508_v62 = vsub.f32 %v9938_v3, %v12844_v6  ;;  %v9987_v14 = vand.u32 4294901760, %v2039_v2  ;;  %v12849_v6 = vand.u32 4294901760, %v9957_v52 }
 0x2c4   :  { %4311 = vmatmul.mubr.f32.gmra.mrb[36].mxu1 %v9942_v22  ;;  %12841 = vst [vmem:[#allocation237_spill] sm:$0xff] %v9967_v60  ;;  %v2494_v55 = vand.u32 4294901760, %v2493_v58  ;;  %v2041_v58 = vld [vmem:[#allocation2 + $0x2d0] sm:$0xff]  ;;  %v2500_v12 = vand.u32 4294901760, %v2499_v7  ;;  %v12850_v37 = vand.u32 4294901760, %v12845_v30 }
 0x2c5   :  { %4317 = vmatprep.mubr.f32.mxu1 %v9948_v5  ;;  %12843 = vst [vmem:[#allocation239_spill] sm:$0xff] %v9973_v39  ;;  %12847 = vst [vmem:[#allocation241_spill] sm:$0xff] %v9987_v14  ;;  %v9991_v34 = vsub.f32 %v2040_v44, %v9973_v39  ;;  %v2514_v28 = vsub.f32 %v9957_v52, %v12849_v6  ;;  %v10007_v7 = vand.u32 4294901760, %v2041_v58 }
 0x2c6   :  { %2471 = vmatmul.mubr.f32.gmra.mrb[70].mxu0 %v2470_v42  ;;  %v9985_v42 = vsub.f32 %v2037_v0, %v9967_v60  ;;  %v2044_v0 = vld [vmem:[#allocation2 + $0x2e8] sm:$0xff]  ;;  %v2509_v60 = vand.u32 4294901760, %v2508_v62  ;;  %v2523_v45 = vsub.f32 %v12845_v30, %v12850_v37  ;;  %v2043_v62 = vld [vmem:[#allocation2 + $0x2e0] sm:$0xff]  ;;  %v12854_v37 = vand.u32 4294901760, %v9128_v56 }
 0x2c7   :  { %2480 = vmatprep.mubr.f32.mxu0 %v2479_v31  ;;  %v9993_v31 = vand.u32 4294901760, %v2042_v18  ;;  %12852 = vst [vmem:[#allocation244_spill] sm:$0xff] %v10007_v7  ;;  %v2515_v3 = vand.u32 4294901760, %v2514_v28  ;;  %v12855_v30 = vand.u32 4294901760, %v9329_v43  ;;  %v10027_v28 = vand.u32 4294901760, %v2043_v62 }
 0x2c8   :  { %4320 = vmatmul.mubr.f32.gmra.mrb[38].mxu1 %v9965_v17  ;;  %12846 = vst [vmem:[#allocation240_spill] sm:$0xff] %v9985_v42  ;;  %v2529_v44 = vsub.f32 %v9128_v56, %v12854_v37 }
 0x2c9   :  { %4326 = vmatprep.mubr.f32.mxu1 %v9971_v1  ;;  %12848 = vst [vmem:[#allocation242_spill] sm:$0xff] %v9993_v31  ;;  %v10011_v6 = vsub.f32 %v2042_v18, %v9993_v31  ;;  %v2538_v52 = vsub.f32 %v9329_v43, %v12855_v30  ;;  %12856 = vst [vmem:[#allocation246_spill] sm:$0xff] %v10027_v28  ;;  %v12858_v30 = vand.u32 4294901760, %v9368_v36  ;;  %v12859_v43 = vand.u32 4294901760, %v9375_v25 }
 0x2ca   :  { %2486 = vmatmul.mubr.f32.gmra.mrb[72].mxu0 %v2485_v53  ;;  %v10005_v53 = vsub.f32 %v2039_v2, %v9987_v14  ;;  %v2046_v2 = vld [vmem:[#allocation2 + $0x2f8] sm:$0xff]  ;;  %v2524_v14 = vand.u32 4294901760, %v2523_v45  ;;  %v2045_v45 = vld [vmem:[#allocation2 + $0x2f0] sm:$0xff]  ;;  %v2530_v39 = vand.u32 4294901760, %v2529_v44 }
 0x2cb   :  { %2495 = vmatprep.mubr.f32.mxu0 %v2494_v55  ;;  %v10013_v55 = vand.u32 4294901760, %v2044_v0  ;;  %v2544_v18 = vsub.f32 %v9368_v36, %v12858_v30  ;;  %v2553_v56 = vsub.f32 %v9375_v25, %v12859_v43  ;;  %v10047_v44 = vand.u32 4294901760, %v2045_v45 }
 0x2cc   :  { %4329 = vmatmul.mubr.f32.gmra.mrb[40].mxu1 %v9985_v42  ;;  %12851 = vst [vmem:[#allocation243_spill] sm:$0xff] %v10005_v53  ;;  %v12862_v43 = vand.u32 4294901760, %v9406_v15  ;;  %v12863_v25 = vand.u32 4294901760, %v9413_v24 }
 0x2cd   :  { %4335 = vmatprep.mubr.f32.mxu1 %v9991_v34  ;;  %12853 = vst [vmem:[#allocation245_spill] sm:$0xff] %v10013_v55  ;;  %v10031_v37 = vsub.f32 %v2044_v0, %v10013_v55  ;;  %12860 = vst [vmem:[#allocation248_spill] sm:$0xff] %v10047_v44  ;;  %v2545_v31 = vand.u32 4294901760, %v2544_v18 }
 0x2ce   :  { %2501 = vmatmul.mubr.f32.gmra.mrb[74].mxu0 %v2500_v12  ;;  %v10025_v12 = vsub.f32 %v2041_v58, %v10007_v7  ;;  %v2048_v58 = vld [vmem:[#allocation2 + $0x308] sm:$0xff]  ;;  %v2539_v7 = vand.u32 4294901760, %v2538_v52  ;;  %v2047_v52 = vld [vmem:[#allocation2 + $0x300] sm:$0xff]  ;;  %v2559_v0 = vsub.f32 %v9406_v15, %v12862_v43  ;;  %v2568_v36 = vsub.f32 %v9413_v24, %v12863_v25 }
 0x2cf   :  { %2510 = vmatprep.mubr.f32.mxu0 %v2509_v60  ;;  %v10033_v60 = vand.u32 4294901760, %v2046_v2  ;;  %v10067_v18 = vand.u32 4294901760, %v2047_v52  ;;  %v12866_v25 = vand.u32 4294901760, %v9440_v46  ;;  %v12867_v24 = vand.u32 4294901760, %v9447_v13 }
 0x2d0   :  { %4338 = vmatmul.mubr.f32.gmra.mrb[42].mxu1 %v10005_v53  ;;  %v2560_v55 = vand.u32 4294901760, %v2559_v0 }
 0x2d1   :  { %4344 = vmatprep.mubr.f32.mxu1 %v10011_v6  ;;  %12857 = vst [vmem:[#allocation247_spill] sm:$0xff] %v10033_v60  ;;  %v10051_v30 = vsub.f32 %v2046_v2, %v10033_v60  ;;  %12864 = vst [vmem:[#allocation250_spill] sm:$0xff] %v10067_v18  ;;  %v2574_v2 = vsub.f32 %v9440_v46, %v12866_v25  ;;  %v2583_v15 = vsub.f32 %v9447_v13, %v12867_v24 }
 0x2d2   :  { %2516 = vmatmul.mubr.f32.gmra.mrb[76].mxu0 %v2515_v3  ;;  %v10045_v3 = vsub.f32 %v2043_v62, %v10027_v28  ;;  %v2050_v62 = vld [vmem:[#allocation2 + $0x318] sm:$0xff]  ;;  %v2554_v28 = vand.u32 4294901760, %v2553_v56  ;;  %v2049_v56 = vld [vmem:[#allocation2 + $0x310] sm:$0xff]  ;;  %v12870_v24 = vand.u32 4294901760, %v9474_v23  ;;  %v12871_v13 = vand.u32 4294901760, %v9481_v19 }
 0x2d3   :  { %2525 = vmatprep.mubr.f32.mxu0 %v2524_v14  ;;  %v10053_v14 = vand.u32 4294901760, %v2048_v58  ;;  %v10087_v0 = vand.u32 4294901760, %v2049_v56  ;;  %v2575_v60 = vand.u32 4294901760, %v2574_v2 }
 0x2d4   :  { %4347 = vmatmul.mubr.f32.gmra.mrb[44].mxu1 %v10025_v12  ;;  %v2598_v46 = vsub.f32 %v9481_v19, %v12871_v13  ;;  %v12874_v13 = vand.u32 4294901760, %v9508_v50  ;;  %v12875_v19 = vand.u32 4294901760, %v9515_v40 }
 0x2d5   :  { %4353 = vmatprep.mubr.f32.mxu1 %v10031_v37  ;;  %12861 = vst [vmem:[#allocation249_spill] sm:$0xff] %v10053_v14  ;;  %v10071_v43 = vsub.f32 %v2048_v58, %v10053_v14  ;;  %12868 = vst [vmem:[#allocation252_spill] sm:$0xff] %v10087_v0  ;;  %v2589_v58 = vsub.f32 %v9474_v23, %v12870_v24 }
 0x2d6   :  { %2531 = vmatmul.mubr.f32.gmra.mrb[78].mxu0 %v2530_v39  ;;  %v10065_v39 = vsub.f32 %v2045_v45, %v10047_v44  ;;  %v2052_v45 = vld [vmem:[#allocation2 + $0x328] sm:$0xff]  ;;  %v2569_v44 = vand.u32 4294901760, %v2568_v36  ;;  %v2051_v36 = vld [vmem:[#allocation2 + $0x320] sm:$0xff]  ;;  %v2613_v23 = vsub.f32 %v9515_v40, %v12875_v19  ;;  %v12878_v19 = vand.u32 4294901760, %v9542_v61 }
 0x2d7   :  { %2540 = vmatprep.mubr.f32.mxu0 %v2539_v7  ;;  %v10073_v7 = vand.u32 4294901760, %v2050_v62  ;;  %v10107_v2 = vand.u32 4294901760, %v2051_v36  ;;  %v2590_v14 = vand.u32 4294901760, %v2589_v58  ;;  %v12879_v40 = vand.u32 4294901760, %v9549_v63 }
 0x2d8   :  { %4356 = vmatmul.mubr.f32.gmra.mrb[46].mxu1 %v10045_v3 }
 0x2d9   :  { %4362 = vmatprep.mubr.f32.mxu1 %v10051_v30  ;;  %12865 = vst [vmem:[#allocation251_spill] sm:$0xff] %v10073_v7  ;;  %v10091_v25 = vsub.f32 %v2050_v62, %v10073_v7  ;;  %12872 = vst [vmem:[#allocation254_spill] sm:$0xff] %v10107_v2  ;;  %v2604_v62 = vsub.f32 %v9508_v50, %v12874_v13  ;;  %v2628_v50 = vsub.f32 %v9549_v63, %v12879_v40 }
 0x2da   :  { %2546 = vmatmul.mubr.f32.gmra.mrb[80].mxu0 %v2545_v31  ;;  %v10085_v31 = vsub.f32 %v2047_v52, %v10067_v18  ;;  %v2054_v52 = vld [vmem:[#allocation2 + $0x338] sm:$0xff]  ;;  %v2584_v18 = vand.u32 4294901760, %v2583_v15  ;;  %v2053_v15 = vld [vmem:[#allocation2 + $0x330] sm:$0xff]  ;;  %v12882_v40 = vand.u32 4294901760, %v9576_v29  ;;  %v12883_v63 = vand.u32 4294901760, %v9583_v21 }
 0x2db   :  { %2555 = vmatprep.mubr.f32.mxu0 %v2554_v28  ;;  %v10093_v28 = vand.u32 4294901760, %v2052_v45  ;;  %v10127_v58 = vand.u32 4294901760, %v2053_v15  ;;  %v2605_v7 = vand.u32 4294901760, %v2604_v62 }
 0x2dc   :  { %4365 = vmatmul.mubr.f32.gmra.mrb[48].mxu1 %v10065_v39 }
 0x2dd   :  { %4371 = vmatprep.mubr.f32.mxu1 %v10071_v43  ;;  %12869 = vst [vmem:[#allocation253_spill] sm:$0xff] %v10093_v28  ;;  %v10111_v24 = vsub.f32 %v2052_v45, %v10093_v28  ;;  %12876 = vst [vmem:[#allocation256_spill] sm:$0xff] %v10127_v58  ;;  %v2619_v45 = vsub.f32 %v9542_v61, %v12878_v19  ;;  %v2643_v61 = vsub.f32 %v9583_v21, %v12883_v63 }
 0x2de   :  { %2561 = vmatmul.mubr.f32.gmra.mrb[82].mxu0 %v2560_v55  ;;  %v10105_v55 = vsub.f32 %v2049_v56, %v10087_v0  ;;  %v2056_v56 = vld [vmem:[#allocation2 + $0x348] sm:$0xff]  ;;  %v2599_v0 = vand.u32 4294901760, %v2598_v46  ;;  %v2055_v46 = vld [vmem:[#allocation2 + $0x340] sm:$0xff]  ;;  %v12886_v63 = vand.u32 4294901760, %v9610_v49  ;;  %v12887_v21 = vand.u32 4294901760, %v9617_v4 }
 0x2df   :  { %2570 = vmatprep.mubr.f32.mxu0 %v2569_v44  ;;  %v10113_v44 = vand.u32 4294901760, %v2054_v52  ;;  %v10147_v62 = vand.u32 4294901760, %v2055_v46  ;;  %v2620_v28 = vand.u32 4294901760, %v2619_v45 }
 0x2e0   :  { %4374 = vmatmul.mubr.f32.gmra.mrb[50].mxu1 %v10085_v31 }
 0x2e1   :  { %4380 = vmatprep.mubr.f32.mxu1 %v10091_v25  ;;  %12873 = vst [vmem:[#allocation255_spill] sm:$0xff] %v10113_v44  ;;  %v10131_v13 = vsub.f32 %v2054_v52, %v10113_v44  ;;  %12880 = vst [vmem:[#allocation258_spill] sm:$0xff] %v10147_v62  ;;  %v2634_v52 = vsub.f32 %v9576_v29, %v12882_v40  ;;  %v2658_v29 = vsub.f32 %v9617_v4, %v12887_v21 }
 0x2e2   :  { %2576 = vmatmul.mubr.f32.gmra.mrb[84].mxu0 %v2575_v60  ;;  %v10125_v60 = vsub.f32 %v2051_v36, %v10107_v2  ;;  %v2058_v36 = vld [vmem:[#allocation2 + $0x358] sm:$0xff]  ;;  %v2614_v2 = vand.u32 4294901760, %v2613_v23  ;;  %v2057_v23 = vld [vmem:[#allocation2 + $0x350] sm:$0xff]  ;;  %v12890_v21 = vand.u32 4294901760, %v9644_v26  ;;  %v12891_v4 = vand.u32 4294901760, %v9651_v11 }
 0x2e3   :  { %2585 = vmatprep.mubr.f32.mxu0 %v2584_v18  ;;  %v10133_v18 = vand.u32 4294901760, %v2056_v56  ;;  %v10167_v45 = vand.u32 4294901760, %v2057_v23  ;;  %v2635_v44 = vand.u32 4294901760, %v2634_v52 }
 0x2e4   :  { %4383 = vmatmul.mubr.f32.gmra.mrb[52].mxu1 %v10105_v55 }
 0x2e5   :  { %4389 = vmatprep.mubr.f32.mxu1 %v10111_v24  ;;  %12877 = vst [vmem:[#allocation257_spill] sm:$0xff] %v10133_v18  ;;  %v10151_v19 = vsub.f32 %v2056_v56, %v10133_v18  ;;  %12884 = vst [vmem:[#allocation260_spill] sm:$0xff] %v10167_v45  ;;  %v2649_v56 = vsub.f32 %v9610_v49, %v12886_v63  ;;  %v2673_v49 = vsub.f32 %v9651_v11, %v12891_v4 }
 0x2e6   :  { %2591 = vmatmul.mubr.f32.gmra.mrb[86].mxu0 %v2590_v14  ;;  %v10145_v14 = vsub.f32 %v2053_v15, %v10127_v58  ;;  %v2060_v15 = vld [vmem:[#allocation2 + $0x368] sm:$0xff]  ;;  %v2629_v58 = vand.u32 4294901760, %v2628_v50  ;;  %v2059_v50 = vld [vmem:[#allocation2 + $0x360] sm:$0xff]  ;;  %v12894_v4 = vand.u32 4294901760, %v9678_v41  ;;  %v12895_v11 = vand.u32 4294901760, %v9685_v47 }
 0x2e7   :  { %2600 = vmatprep.mubr.f32.mxu0 %v2599_v0  ;;  %v10153_v0 = vand.u32 4294901760, %v2058_v36  ;;  %v10187_v52 = vand.u32 4294901760, %v2059_v50  ;;  %v2650_v18 = vand.u32 4294901760, %v2649_v56 }
 0x2e8   :  { %4392 = vmatmul.mubr.f32.gmra.mrb[54].mxu1 %v10125_v60 }
 0x2e9   :  { %4398 = vmatprep.mubr.f32.mxu1 %v10131_v13  ;;  %12881 = vst [vmem:[#allocation259_spill] sm:$0xff] %v10153_v0  ;;  %v10171_v40 = vsub.f32 %v2058_v36, %v10153_v0  ;;  %12888 = vst [vmem:[#allocation262_spill] sm:$0xff] %v10187_v52  ;;  %v2664_v36 = vsub.f32 %v9644_v26, %v12890_v21  ;;  %v2688_v26 = vsub.f32 %v9685_v47, %v12895_v11 }
 0x2ea   :  { %2606 = vmatmul.mubr.f32.gmra.mrb[88].mxu0 %v2605_v7  ;;  %v10165_v7 = vsub.f32 %v2055_v46, %v10147_v62  ;;  %v2062_v46 = vld [vmem:[#allocation2 + $0x378] sm:$0xff]  ;;  %v2644_v62 = vand.u32 4294901760, %v2643_v61  ;;  %v2061_v61 = vld [vmem:[#allocation2 + $0x370] sm:$0xff]  ;;  %v12898_v11 = vand.u32 4294901760, %v9712_v27  ;;  %v12899_v47 = vand.u32 4294901760, %v9719_v33 }
 0x2eb   :  { %2615 = vmatprep.mubr.f32.mxu0 %v2614_v2  ;;  %v10173_v2 = vand.u32 4294901760, %v2060_v15  ;;  %v10207_v56 = vand.u32 4294901760, %v2061_v61  ;;  %v2665_v0 = vand.u32 4294901760, %v2664_v36 }
 0x2ec   :  { %4401 = vmatmul.mubr.f32.gmra.mrb[56].mxu1 %v10145_v14 }
 0x2ed   :  { %4407 = vmatprep.mubr.f32.mxu1 %v10151_v19  ;;  %12885 = vst [vmem:[#allocation261_spill] sm:$0xff] %v10173_v2  ;;  %v10191_v63 = vsub.f32 %v2060_v15, %v10173_v2  ;;  %12892 = vst [vmem:[#allocation264_spill] sm:$0xff] %v10207_v56  ;;  %v2679_v15 = vsub.f32 %v9678_v41, %v12894_v4  ;;  %v2703_v41 = vsub.f32 %v9719_v33, %v12899_v47 }
 0x2ee   :  { %2621 = vmatmul.mubr.f32.gmra.mrb[90].mxu0 %v2620_v28  ;;  %v10185_v28 = vsub.f32 %v2057_v23, %v10167_v45  ;;  %v2064_v23 = vld [vmem:[#allocation2 + $0x388] sm:$0xff]  ;;  %v2659_v45 = vand.u32 4294901760, %v2658_v29  ;;  %v2063_v29 = vld [vmem:[#allocation2 + $0x380] sm:$0xff]  ;;  %v12902_v47 = vand.u32 4294901760, %v9746_v59  ;;  %v12903_v33 = vand.u32 4294901760, %v9753_v20 }
 0x2ef   :  { %2630 = vmatprep.mubr.f32.mxu0 %v2629_v58  ;;  %v10193_v58 = vand.u32 4294901760, %v2062_v46  ;;  %v10227_v36 = vand.u32 4294901760, %v2063_v29  ;;  %v2680_v2 = vand.u32 4294901760, %v2679_v15 }
 0x2f0   :  { %4410 = vmatmul.mubr.f32.gmra.mrb[58].mxu1 %v10165_v7 }
 0x2f1   :  { %4416 = vmatprep.mubr.f32.mxu1 %v10171_v40  ;;  %12889 = vst [vmem:[#allocation263_spill] sm:$0xff] %v10193_v58  ;;  %v10211_v21 = vsub.f32 %v2062_v46, %v10193_v58  ;;  %12896 = vst [vmem:[#allocation266_spill] sm:$0xff] %v10227_v36  ;;  %v2694_v46 = vsub.f32 %v9712_v27, %v12898_v11  ;;  %v2718_v27 = vsub.f32 %v9753_v20, %v12903_v33 }
 0x2f2   :  { %2636 = vmatmul.mubr.f32.gmra.mrb[92].mxu0 %v2635_v44  ;;  %v10205_v44 = vsub.f32 %v2059_v50, %v10187_v52  ;;  %v2066_v50 = vld [vmem:[#allocation2 + $0x398] sm:$0xff]  ;;  %v2674_v52 = vand.u32 4294901760, %v2673_v49  ;;  %v2065_v49 = vld [vmem:[#allocation2 + $0x390] sm:$0xff]  ;;  %v12906_v33 = vand.u32 4294901760, %v9780_v16  ;;  %v12907_v20 = vand.u32 4294901760, %v9787_v32 }
 0x2f3   :  { %2645 = vmatprep.mubr.f32.mxu0 %v2644_v62  ;;  %v10213_v62 = vand.u32 4294901760, %v2064_v23  ;;  %v10247_v15 = vand.u32 4294901760, %v2065_v49  ;;  %v2695_v58 = vand.u32 4294901760, %v2694_v46 }
 0x2f4   :  { %4419 = vmatmul.mubr.f32.gmra.mrb[60].mxu1 %v10185_v28 }
 0x2f5   :  { %4425 = vmatprep.mubr.f32.mxu1 %v10191_v63  ;;  %12893 = vst [vmem:[#allocation265_spill] sm:$0xff] %v10213_v62  ;;  %v10231_v4 = vsub.f32 %v2064_v23, %v10213_v62  ;;  %12900 = vst [vmem:[#allocation268_spill] sm:$0xff] %v10247_v15  ;;  %v2709_v23 = vsub.f32 %v9746_v59, %v12902_v47  ;;  %v2733_v59 = vsub.f32 %v9787_v32, %v12907_v20 }
 0x2f6   :  { %2651 = vmatmul.mubr.f32.gmra.mrb[94].mxu0 %v2650_v18  ;;  %v10225_v18 = vsub.f32 %v2061_v61, %v10207_v56  ;;  %v2068_v61 = vld [vmem:[#allocation2 + $0x3a8] sm:$0xff]  ;;  %v2689_v56 = vand.u32 4294901760, %v2688_v26  ;;  %v2067_v26 = vld [vmem:[#allocation2 + $0x3a0] sm:$0xff]  ;;  %v12910_v20 = vand.u32 4294901760, %v9814_v8  ;;  %v12911_v32 = vand.u32 4294901760, %v9821_v35 }
 0x2f7   :  { %2660 = vmatprep.mubr.f32.mxu0 %v2659_v45  ;;  %v10233_v45 = vand.u32 4294901760, %v2066_v50  ;;  %v10267_v46 = vand.u32 4294901760, %v2067_v26  ;;  %v2710_v62 = vand.u32 4294901760, %v2709_v23 }
 0x2f8   :  { %4428 = vmatmul.mubr.f32.gmra.mrb[62].mxu1 %v10205_v44 }
 0x2f9   :  { %4434 = vmatprep.mubr.f32.mxu1 %v10211_v21  ;;  %12897 = vst [vmem:[#allocation267_spill] sm:$0xff] %v10233_v45  ;;  %v10251_v11 = vsub.f32 %v2066_v50, %v10233_v45  ;;  %12904 = vst [vmem:[#allocation270_spill] sm:$0xff] %v10267_v46  ;;  %v2724_v50 = vsub.f32 %v9780_v16, %v12906_v33  ;;  %v2748_v16 = vsub.f32 %v9821_v35, %v12911_v32 }
 0x2fa   :  { %2666 = vmatmul.mubr.f32.gmra.mrb[96].mxu0 %v2665_v0  ;;  %v10245_v0 = vsub.f32 %v2063_v29, %v10227_v36  ;;  %v2070_v29 = vld [vmem:[#allocation2 + $0x3b8] sm:$0xff]  ;;  %v2704_v36 = vand.u32 4294901760, %v2703_v41  ;;  %v2069_v41 = vld [vmem:[#allocation2 + $0x3b0] sm:$0xff]  ;;  %v12914_v32 = vand.u32 4294901760, %v9848_v51  ;;  %v12915_v35 = vand.u32 4294901760, %v9855_v38 }
 0x2fb   :  { %2675 = vmatprep.mubr.f32.mxu0 %v2674_v52  ;;  %v10253_v52 = vand.u32 4294901760, %v2068_v61  ;;  %v10287_v23 = vand.u32 4294901760, %v2069_v41  ;;  %v2725_v45 = vand.u32 4294901760, %v2724_v50 }
 0x2fc   :  { %4437 = vmatmul.mubr.f32.gmra.mrb[64].mxu1 %v10225_v18 }
 0x2fd   :  { %4443 = vmatprep.mubr.f32.mxu1 %v10231_v4  ;;  %12901 = vst [vmem:[#allocation269_spill] sm:$0xff] %v10253_v52  ;;  %v10271_v47 = vsub.f32 %v2068_v61, %v10253_v52  ;;  %12908 = vst [vmem:[#allocation272_spill] sm:$0xff] %v10287_v23  ;;  %v2739_v61 = vsub.f32 %v9814_v8, %v12910_v20  ;;  %v2763_v8 = vsub.f32 %v9855_v38, %v12915_v35 }
 0x2fe   :  { %2681 = vmatmul.mubr.f32.gmra.mrb[98].mxu0 %v2680_v2  ;;  %v10265_v2 = vsub.f32 %v2065_v49, %v10247_v15  ;;  %v2072_v49 = vld [vmem:[#allocation2 + $0x3c8] sm:$0xff]  ;;  %v2719_v15 = vand.u32 4294901760, %v2718_v27  ;;  %v2071_v27 = vld [vmem:[#allocation2 + $0x3c0] sm:$0xff]  ;;  %v12918_v35 = vand.u32 4294901760, %v9881_v9  ;;  %v12919_v38 = vand.u32 4294901760, %v9889_v48 }
 0x2ff   :  { %2690 = vmatprep.mubr.f32.mxu0 %v2689_v56  ;;  %v10273_v56 = vand.u32 4294901760, %v2070_v29  ;;  %v10307_v50 = vand.u32 4294901760, %v2071_v27  ;;  %v2740_v52 = vand.u32 4294901760, %v2739_v61 }
 0x300   :  { %4446 = vmatmul.mubr.f32.gmra.mrb[66].mxu1 %v10245_v0 }
 0x301   :  { %4452 = vmatprep.mubr.f32.mxu1 %v10251_v11  ;;  %12905 = vst [vmem:[#allocation271_spill] sm:$0xff] %v10273_v56  ;;  %v10291_v33 = vsub.f32 %v2070_v29, %v10273_v56  ;;  %12912 = vst [vmem:[#allocation274_spill] sm:$0xff] %v10307_v50  ;;  %v2754_v29 = vsub.f32 %v9848_v51, %v12914_v32  ;;  %v2778_v51 = vsub.f32 %v9889_v48, %v12919_v38 }
 0x302   :  { %2696 = vmatmul.mubr.f32.gmra.mrb[100].mxu0 %v2695_v58  ;;  %v10285_v58 = vsub.f32 %v2067_v26, %v10267_v46  ;;  %v2074_v26 = vld [vmem:[#allocation2 + $0x3d8] sm:$0xff]  ;;  %v2734_v46 = vand.u32 4294901760, %v2733_v59  ;;  %v2073_v59 = vld [vmem:[#allocation2 + $0x3d0] sm:$0xff]  ;;  %v12922_v38 = vand.u32 4294901760, %v9914_v54 }
 0x303   :  { %2705 = vmatprep.mubr.f32.mxu0 %v2704_v36  ;;  %v10293_v36 = vand.u32 4294901760, %v2072_v49  ;;  %v10327_v61 = vand.u32 4294901760, %v2073_v59  ;;  %v2755_v56 = vand.u32 4294901760, %v2754_v29 }
 0x304   :  { %4455 = vmatmul.mubr.f32.gmra.mrb[68].mxu1 %v10265_v2 }
 0x305   :  { %4461 = vmatprep.mubr.f32.mxu1 %v10271_v47  ;;  %12909 = vst [vmem:[#allocation273_spill] sm:$0xff] %v10293_v36  ;;  %v10311_v20 = vsub.f32 %v2072_v49, %v10293_v36  ;;  %12916 = vst [vmem:[#allocation276_spill] sm:$0xff] %v10327_v61  ;;  %v2769_v49 = vsub.f32 %v9881_v9, %v12918_v35 }
 0x306   :  { %2711 = vmatmul.mubr.f32.gmra.mrb[102].mxu0 %v2710_v62  ;;  %v10305_v62 = vsub.f32 %v2069_v41, %v10287_v23  ;;  %v2076_v41 = vld [vmem:[#allocation2 + $0x3e8] sm:$0xff]  ;;  %v2749_v23 = vand.u32 4294901760, %v2748_v16  ;;  %v2075_v16 = vld [vmem:[#allocation2 + $0x3e0] sm:$0xff] }
 0x307   :  { %2720 = vmatprep.mubr.f32.mxu0 %v2719_v15  ;;  %v10313_v15 = vand.u32 4294901760, %v2074_v26  ;;  %v10347_v29 = vand.u32 4294901760, %v2075_v16  ;;  %v2770_v36 = vand.u32 4294901760, %v2769_v49 }
 0x308   :  { %4464 = vmatmul.mubr.f32.gmra.mrb[70].mxu1 %v10285_v58 }
 0x309   :  { %4470 = vmatprep.mubr.f32.mxu1 %v10291_v33  ;;  %12913 = vst [vmem:[#allocation275_spill] sm:$0xff] %v10313_v15  ;;  %v10331_v32 = vsub.f32 %v2074_v26, %v10313_v15  ;;  %12920 = vst [vmem:[#allocation278_spill] sm:$0xff] %v10347_v29  ;;  %v2784_v26 = vsub.f32 %v9914_v54, %v12922_v38  ;;  %v12396_v15 = vand.u32 4294901760, %v9942_v22 }
 0x30a   :  { %2726 = vmatmul.mubr.f32.gmra.mrb[104].mxu0 %v2725_v45  ;;  %v10325_v45 = vsub.f32 %v2071_v27, %v10307_v50  ;;  %v2078_v27 = vld [vmem:[#allocation2 + $0x3f8] sm:$0xff]  ;;  %v2764_v50 = vand.u32 4294901760, %v2763_v8  ;;  %v2077_v8 = vld [vmem:[#allocation2 + $0x3f0] sm:$0xff] }
 0x30b   :  { %2735 = vmatprep.mubr.f32.mxu0 %v2734_v46  ;;  %v10333_v46 = vand.u32 4294901760, %v2076_v41 }
 0x30c   :  { %4473 = vmatmul.mubr.f32.gmra.mrb[72].mxu1 %v10305_v62 }
 0x30d   :  { %4479 = vmatprep.mubr.f32.mxu1 %v10311_v20  ;;  %12917 = vst [vmem:[#allocation277_spill] sm:$0xff] %v10333_v46  ;;  %v10351_v35 = vsub.f32 %v2076_v41, %v10333_v46  ;;  %v12395_v41 = vand.u32 4294901760, %v9948_v5  ;;  %v10365_v46 = vsub.f32 %v2075_v16, %v10347_v29  ;;  %v12403_v29 = vand.u32 4294901760, %v9971_v1 }
 0x30e   :  { %2741 = vmatmul.mubr.f32.gmra.mrb[106].mxu0 %v2740_v52  ;;  %v10345_v52 = vsub.f32 %v2073_v59, %v10327_v61  ;;  %v2779_v59 = vand.u32 4294901760, %v2778_v51  ;;  %v12923_v61 = vand.u32 4294901760, %v9920_v57  ;;  %v2785_v51 = vand.u32 4294901760, %v2784_v26 }
 0x30f   :  { %2750 = vmatprep.mubr.f32.mxu0 %v2749_v23  ;;  %v10353_v23 = vand.u32 4294901760, %v2078_v27  ;;  %v2808_v16 = vsub.f32 %v9948_v5, %v12395_v41  ;;  %v2823_v41 = vsub.f32 %v9971_v1, %v12403_v29  ;;  %v12931_v1 = vand.u32 4294901760, %v9991_v34 }
 0x310   :  { %4482 = vmatmul.mubr.f32.gmra.mrb[74].mxu1 %v10325_v45  ;;  %v2793_v48 = vsub.f32 %v9920_v57, %v12923_v61  ;;  %v12399_v61 = vand.u32 4294901760, %v9965_v17 }
 0x311   :  { %4488 = vmatprep.mubr.f32.mxu1 %v10331_v32  ;;  %12921 = vst [vmem:[#allocation279_spill] sm:$0xff] %v10353_v23  ;;  %v10371_v49 = vsub.f32 %v2078_v27, %v10353_v23  ;;  %v12929_v23 = vld [vmem:[#allocation9_spill] sm:$0xff] }
 0x312   :  { %2756 = vmatmul.mubr.f32.gmra.mrb[108].mxu0 %v2755_v56  ;;  %v10367_v56 = vand.u32 4294901760, %v2077_v8  ;;  %v2794_v38 = vand.u32 4294901760, %v2793_v48  ;;  %v2814_v26 = vsub.f32 %v9965_v17, %v12399_v61  ;;  %v12405_v48 = vand.u32 4294901760, %v9985_v42 }
 0x313   :  { %2765 = vmatprep.mubr.f32.mxu0 %v2764_v50  ;;  %v2799_v50 = vsub.f32 %v9942_v22, %v12396_v15  ;;  %v12930_v17 = vand.u32 4294901760, %v12929_v23  ;;  %v2824_v15 = vand.u32 4294901760, %v2823_v41  ;;  %v12409_v41 = vand.u32 4294901760, %v10025_v12 }
 0x314   :  { %4491 = vmatmul.mubr.f32.gmra.mrb[76].mxu1 %v10345_v52  ;;  %12924 = vst [vmem:[#allocation280_spill] sm:$0xff] %v10367_v56  ;;  %v10383_v27 = vsub.f32 %v2077_v8, %v10367_v56  ;;  %v12925_v8 = vld [vmem:[#allocation6_spill] sm:$0xff] }
 0x315   :  { %4497 = vmatprep.mubr.f32.mxu1 %v10351_v35  ;;  %v12926_v56 = vand.u32 4294901760, %v12925_v8  ;;  %v2838_v8 = vsub.f32 %v9991_v34, %v12931_v1  ;;  %v12937_v1 = vld [vmem:[#allocation15_spill] sm:$0xff] }
 0x316   :  { %2771 = vmatmul.mubr.f32.gmra.mrb[110].mxu0 %v2770_v36  ;;  %v2800_v36 = vand.u32 4294901760, %v2799_v50  ;;  %v2829_v50 = vsub.f32 %v9985_v42, %v12405_v48  ;;  %v12934_v48 = vld [vmem:[#allocation40_spill] sm:$0xff] }
 0x317   :  { %2780 = vmatprep.mubr.f32.mxu0 %v2779_v59  ;;  %v2809_v59 = vand.u32 4294901760, %v2808_v16  ;;  %v12927_v16 = vld [vmem:[#allocation11_spill] sm:$0xff]  ;;  %v12935_v42 = vand.u32 4294901760, %v12934_v48 }
 0x318   :  { %4500 = vmatmul.mubr.f32.gmra.mrb[78].mxu1 %v10365_v46  ;;  %v12928_v61 = vand.u32 4294901760, %v12927_v16  ;;  %v12936_v16 = vmov 0.0|0.0   ;;  %v2830_v23 = vand.u32 4294901760, %v2829_v50  ;;  %v12942_v50 = vld [vmem:[#allocation43_spill] sm:$0xff] }
 0x319   :  { %4506 = vmatprep.mubr.f32.mxu1 %v10371_v49  ;;  %v12943_v48 = vand.u32 4294901760, %v12942_v50 }
 0x31a   :  { %2786 = vmatmul.mubr.f32.gmra.mrb[112].mxu0 %v2785_v51  ;;  %v2815_v51 = vand.u32 4294901760, %v2814_v26  ;;  %v7272_v29 = vpack.c.bf16 %v12930_v17, %v12928_v61  ;;  %v12938_v61 = vand.u32 4294901760, %v12937_v1 }
 0x31b   :  { %2795 = vmatprep.mubr.f32.mxu0 %v2794_v38  ;;  %v12407_v38 = vand.u32 4294901760, %v10005_v53 }
 0x31c   :  { %4509 = vmatmul.mubr.f32.gmra.mrb[80].mxu1 %v10383_v27 }
 0x31d   :  { %4613 = vmatprep.mubr.f32.mxu1 %v12926_v56  ;;  %v2844_v17 = vsub.f32 %v10005_v53, %v12407_v38  ;;  %v12944_v38 = vld [vmem:[#allocation60_spill] sm:$0xff] }
 0x31e   :  { %2801 = vmatmul.mubr.f32.gmra.mrb[114].mxu0 %v2800_v36  ;;  %v12932_v36 = vld [vmem:[#allocation31_spill] sm:$0xff]  ;;  %v12945_v53 = vand.u32 4294901760, %v12944_v38 }
 0x31f   :  { %2810 = vmatprep.mubr.f32.mxu0 %v2809_v59  ;;  %v12933_v26 = vand.u32 4294901760, %v12932_v36  ;;  %v12939_v59 = vld [vmem:[#allocation13_spill] sm:$0xff]  ;;  %v2845_v1 = vand.u32 4294901760, %v2844_v17 }
 0x320   :  { %v12940_v56 = vand.u32 4294901760, %v12939_v59  ;;  %v12948_v59 = vld [vmem:[#allocation17_spill] sm:$0xff] }
 0x321   :  { %4617 = vmatmul.mubr.f32.vlgmr.msra.gmra.mrb[82].mxu1 %v12933_v26  ;;  %v12941_v26 = vand.u32 4294901760, %v10011_v6  ;;  %v12951_v17 = vld [vmem:[#allocation65_spill] sm:$0xff] }
 0x322   :  { %7273 = vmatpush1.bf16.msra.mxu1 %v7272_v29  ;;  %4624 = vmatprep.mubr.f32.mxu1 %v12935_v42  ;;  %v7275_v36 = vpack.c.bf16 %v12940_v56, %v12938_v61  ;;  %v2839_v29 = vand.u32 4294901760, %v2838_v8  ;;  %v12410_v8 = vand.u32 4294901760, %v10045_v3  ;;  %v12946_v56 = vld [vmem:[#allocation20_spill] sm:$0xff]  ;;  %v12952_v38 = vand.u32 4294901760, %v12951_v17 }
 0x323   :  { %2816 = vmatmul.mubr.f32.gmra.mrb[116].mxu0 %v2815_v51  ;;  %7274 = vmatprep.subr.bf16.mxu1 %v12936_v16  ;;  %v2853_v42 = vsub.f32 %v10011_v6, %v12941_v26  ;;  %v12947_v61 = vand.u32 4294901760, %v12946_v56  ;;  %v12949_v26 = vand.u32 4294901760, %v12948_v59 }
 0x324   :  { %2825 = vmatprep.mubr.f32.mxu0 %v2824_v15  ;;  %v2859_v15 = vsub.f32 %v10025_v12, %v12409_v41  ;;  %v12953_v41 = vld [vmem:[#allocation82_spill] sm:$0xff] }
 0x325   :  { %4628 = vmatmul.mubr.f32.gmra.mrb[84].mxu1 %v12943_v48  ;;  %v7278_v51 = vpack.c.bf16 %v12949_v26, %v12947_v61  ;;  %v2854_v48 = vand.u32 4294901760, %v2853_v42  ;;  %v12954_v50 = vand.u32 4294901760, %v12953_v41  ;;  %v12411_v42 = vand.u32 4294901760, %v10065_v39  ;;  %v12955_v61 = vld [vmem:[#allocation19_spill] sm:$0xff]  ;;  %v12957_v26 = vld [vmem:[#allocation24_spill] sm:$0xff] }
 0x326   :  { %7276 = vmatpush1.bf16.msra.mxu1 %v7275_v36  ;;  %4635 = vmatprep.mubr.f32.mxu1 %v12945_v53  ;;  %v12950_v36 = vand.u32 4294901760, %v10031_v37  ;;  %v2860_v56 = vand.u32 4294901760, %v2859_v15  ;;  %v12956_v59 = vand.u32 4294901760, %v12955_v61  ;;  %v12960_v15 = vld [vmem:[#allocation88_spill] sm:$0xff] }
 0x327   :  { %2831 = vmatmul.mubr.f32.gmra.mrb[118].mxu0 %v2830_v23  ;;  %7277 = vmatprep.subr.bf16.mxu1 %v12936_v16  ;;  %v12961_v41 = vand.u32 4294901760, %v12960_v15 }
 0x328   :  { %2840 = vmatprep.mubr.f32.mxu0 %v2839_v29  ;;  %v2868_v53 = vsub.f32 %v10031_v37, %v12950_v36  ;;  %v2874_v29 = vsub.f32 %v10045_v3, %v12410_v8  ;;  %v12958_v36 = vand.u32 4294901760, %v12957_v26  ;;  %v12962_v8 = vld [vmem:[#allocation91_spill] sm:$0xff] }
 0x329   :  { %4639 = vmatmul.mubr.f32.gmra.mrb[86].mxu1 %v12952_v38  ;;  %v12963_v17 = vand.u32 4294901760, %v12962_v8 }
 0x32a   :  { %7279 = vmatpush1.bf16.msra.mxu1 %v7278_v51  ;;  %4646 = vmatprep.mubr.f32.mxu1 %v12954_v50  ;;  %v7281_v23 = vpack.c.bf16 %v12958_v36, %v12956_v59  ;;  %v2869_v38 = vand.u32 4294901760, %v2868_v53  ;;  %v12959_v51 = vand.u32 4294901760, %v10051_v30  ;;  %v2875_v61 = vand.u32 4294901760, %v2874_v29  ;;  %v12964_v59 = vld [vmem:[#allocation28_spill] sm:$0xff]  ;;  %v12966_v36 = vld [vmem:[#allocation23_spill] sm:$0xff]  ;;  %v12969_v29 = vld [vmem:[#allocation97_spill] sm:$0xff] }
 0x32b   :  { %2846 = vmatmul.mubr.f32.gmra.mrb[120].mxu0 %v2845_v1  ;;  %7280 = vmatprep.subr.bf16.mxu1 %v12936_v16  ;;  %v12412_v53 = vand.u32 4294901760, %v10085_v31  ;;  %v12965_v26 = vand.u32 4294901760, %v12964_v59  ;;  %v12970_v8 = vand.u32 4294901760, %v12969_v29 }
 0x32c   :  { %2855 = vmatprep.mubr.f32.mxu0 %v2854_v48  ;;  %v2883_v50 = vsub.f32 %v10051_v30, %v12959_v51  ;;  %v2889_v48 = vsub.f32 %v10065_v39, %v12411_v42  ;;  %v12967_v51 = vand.u32 4294901760, %v12966_v36  ;;  %v12971_v42 = vld [vmem:[#allocation99_spill] sm:$0xff] }
 0x32d   :  { %4650 = vmatmul.mubr.f32.gmra.mrb[88].mxu1 %v12961_v41  ;;  %v12972_v15 = vand.u32 4294901760, %v12971_v42 }
 0x32e   :  { %7282 = vmatpush1.bf16.msra.mxu1 %v7281_v23  ;;  %4657 = vmatprep.mubr.f32.mxu1 %v12963_v17  ;;  %v7284_v1 = vpack.c.bf16 %v12967_v51, %v12965_v26  ;;  %v2884_v41 = vand.u32 4294901760, %v2883_v50  ;;  %v12968_v23 = vand.u32 4294901760, %v10071_v43  ;;  %v2890_v59 = vand.u32 4294901760, %v2889_v48  ;;  %v12973_v26 = vld [vmem:[#allocation33_spill] sm:$0xff]  ;;  %v12975_v51 = vld [vmem:[#allocation30_spill] sm:$0xff] }
 0x32f   :  { %2861 = vmatmul.mubr.f32.gmra.mrb[122].mxu0 %v2860_v56  ;;  %7283 = vmatprep.subr.bf16.mxu1 %v12936_v16  ;;  %v12413_v50 = vand.u32 4294901760, %v10105_v55  ;;  %v12974_v36 = vand.u32 4294901760, %v12973_v26  ;;  %v12978_v48 = vld [vmem:[#allocation105_spill] sm:$0xff] }
 0x330   :  { %2870 = vmatprep.mubr.f32.mxu0 %v2869_v38  ;;  %v2898_v17 = vsub.f32 %v10071_v43, %v12968_v23  ;;  %v2904_v38 = vsub.f32 %v10085_v31, %v12412_v53  ;;  %v12976_v23 = vand.u32 4294901760, %v12975_v51  ;;  %v12979_v42 = vand.u32 4294901760, %v12978_v48  ;;  %v12980_v53 = vld [vmem:[#allocation107_spill] sm:$0xff] }
 0x331   :  { %4661 = vmatmul.mubr.f32.gmra.mrb[90].mxu1 %v12970_v8  ;;  %v12981_v29 = vand.u32 4294901760, %v12980_v53 }
 0x332   :  { %7285 = vmatpush1.bf16.msra.mxu1 %v7284_v1  ;;  %4668 = vmatprep.mubr.f32.mxu1 %v12972_v15  ;;  %v7287_v56 = vpack.c.bf16 %v12976_v23, %v12974_v36  ;;  %v2899_v8 = vand.u32 4294901760, %v2898_v17  ;;  %v12977_v1 = vand.u32 4294901760, %v10091_v25  ;;  %v2905_v26 = vand.u32 4294901760, %v2904_v38  ;;  %v12982_v36 = vld [vmem:[#allocation39_spill] sm:$0xff]  ;;  %v12984_v23 = vld [vmem:[#allocation36_spill] sm:$0xff]  ;;  %v12987_v38 = vld [vmem:[#allocation114_spill] sm:$0xff] }
 0x333   :  { %2876 = vmatmul.mubr.f32.gmra.mrb[124].mxu0 %v2875_v61  ;;  %7286 = vmatprep.subr.bf16.mxu1 %v12936_v16  ;;  %v12414_v17 = vand.u32 4294901760, %v10125_v60  ;;  %v12983_v51 = vand.u32 4294901760, %v12982_v36  ;;  %v12988_v53 = vand.u32 4294901760, %v12987_v38 }
 0x334   :  { %2885 = vmatprep.mubr.f32.mxu0 %v2884_v41  ;;  %v2913_v15 = vsub.f32 %v10091_v25, %v12977_v1  ;;  %v2919_v41 = vsub.f32 %v10105_v55, %v12413_v50  ;;  %v12985_v1 = vand.u32 4294901760, %v12984_v23  ;;  %v12989_v50 = vld [vmem:[#allocation116_spill] sm:$0xff] }
 0x335   :  { %4672 = vmatmul.mubr.f32.gmra.mrb[92].mxu1 %v12979_v42  ;;  %v12990_v48 = vand.u32 4294901760, %v12989_v50 }
 0x336   :  { %7288 = vmatpush1.bf16.msra.mxu1 %v7287_v56  ;;  %4679 = vmatprep.mubr.f32.mxu1 %v12981_v29  ;;  %v7290_v61 = vpack.c.bf16 %v12985_v1, %v12983_v51  ;;  %v2914_v42 = vand.u32 4294901760, %v2913_v15  ;;  %v12986_v56 = vand.u32 4294901760, %v10111_v24  ;;  %v2920_v36 = vand.u32 4294901760, %v2919_v41  ;;  %v12991_v51 = vld [vmem:[#allocation45_spill] sm:$0xff]  ;;  %v12993_v1 = vld [vmem:[#allocation42_spill] sm:$0xff] }
 0x337   :  { %2891 = vmatmul.mubr.f32.gmra.mrb[126].mxu0 %v2890_v59  ;;  %7289 = vmatprep.subr.bf16.mxu1 %v12936_v16  ;;  %v12415_v15 = vand.u32 4294901760, %v10145_v14  ;;  %v12992_v23 = vand.u32 4294901760, %v12991_v51  ;;  %v12996_v41 = vld [vmem:[#allocation121_spill] sm:$0xff] }
 0x338   :  { %2900 = vmatprep.mubr.f32.mxu0 %v2899_v8  ;;  %v2928_v29 = vsub.f32 %v10111_v24, %v12986_v56  ;;  %v2934_v8 = vsub.f32 %v10125_v60, %v12414_v17  ;;  %v12994_v56 = vand.u32 4294901760, %v12993_v1  ;;  %v12997_v50 = vand.u32 4294901760, %v12996_v41  ;;  %v12998_v17 = vld [vmem:[#allocation123_spill] sm:$0xff] }
 0x339   :  { %4683 = vmatmul.mubr.f32.gmra.mrb[94].mxu1 %v12988_v53  ;;  %v12999_v38 = vand.u32 4294901760, %v12998_v17 }
 0x33a   :  { %7291 = vmatpush1.bf16.msra.mxu1 %v7290_v61  ;;  %4690 = vmatprep.mubr.f32.mxu1 %v12990_v48  ;;  %v7293_v59 = vpack.c.bf16 %v12994_v56, %v12992_v23  ;;  %v2929_v53 = vand.u32 4294901760, %v2928_v29  ;;  %v12995_v61 = vand.u32 4294901760, %v10131_v13  ;;  %v2935_v51 = vand.u32 4294901760, %v2934_v8  ;;  %v13000_v23 = vld [vmem:[#allocation50_spill] sm:$0xff]  ;;  %v13002_v56 = vld [vmem:[#allocation47_spill] sm:$0xff]  ;;  %v13005_v8 = vld [vmem:[#allocation129_spill] sm:$0xff] }
 0x33b   :  { %2906 = vmatmul.mubr.f32.gmra.mrb[128].mxu0 %v2905_v26  ;;  %7292 = vmatprep.subr.bf16.mxu1 %v12936_v16  ;;  %v12416_v29 = vand.u32 4294901760, %v10165_v7  ;;  %v13001_v1 = vand.u32 4294901760, %v13000_v23  ;;  %v13006_v17 = vand.u32 4294901760, %v13005_v8 }
 0x33c   :  { %2915 = vmatprep.mubr.f32.mxu0 %v2914_v42  ;;  %v2943_v48 = vsub.f32 %v10131_v13, %v12995_v61  ;;  %v2949_v42 = vsub.f32 %v10145_v14, %v12415_v15  ;;  %v13003_v61 = vand.u32 4294901760, %v13002_v56  ;;  %v13007_v15 = vld [vmem:[#allocation131_spill] sm:$0xff] }
 0x33d   :  { %4694 = vmatmul.mubr.f32.gmra.mrb[96].mxu1 %v12997_v50  ;;  %v13008_v41 = vand.u32 4294901760, %v13007_v15 }
 0x33e   :  { %7294 = vmatpush1.bf16.msra.mxu1 %v7293_v59  ;;  %4701 = vmatprep.mubr.f32.mxu1 %v12999_v38  ;;  %v7296_v26 = vpack.c.bf16 %v13003_v61, %v13001_v1  ;;  %v2944_v50 = vand.u32 4294901760, %v2943_v48  ;;  %v13004_v59 = vand.u32 4294901760, %v10151_v19  ;;  %v2950_v23 = vand.u32 4294901760, %v2949_v42  ;;  %v13009_v1 = vld [vmem:[#allocation56_spill] sm:$0xff]  ;;  %v13011_v61 = vld [vmem:[#allocation53_spill] sm:$0xff] }
 0x33f   :  { %2921 = vmatmul.mubr.f32.gmra.mrb[130].mxu0 %v2920_v36  ;;  %7295 = vmatprep.subr.bf16.mxu1 %v12936_v16  ;;  %v12417_v48 = vand.u32 4294901760, %v10185_v28  ;;  %v13010_v56 = vand.u32 4294901760, %v13009_v1  ;;  %v13014_v42 = vld [vmem:[#allocation137_spill] sm:$0xff] }
 0x340   :  { %2930 = vmatprep.mubr.f32.mxu0 %v2929_v53  ;;  %v2958_v38 = vsub.f32 %v10151_v19, %v13004_v59  ;;  %v2964_v53 = vsub.f32 %v10165_v7, %v12416_v29  ;;  %v13012_v59 = vand.u32 4294901760, %v13011_v61  ;;  %v13015_v15 = vand.u32 4294901760, %v13014_v42  ;;  %v13016_v29 = vld [vmem:[#allocation139_spill] sm:$0xff] }
 0x341   :  { %4705 = vmatmul.mubr.f32.gmra.mrb[98].mxu1 %v13006_v17  ;;  %v13017_v8 = vand.u32 4294901760, %v13016_v29 }
 0x342   :  { %7297 = vmatpush1.bf16.msra.mxu1 %v7296_v26  ;;  %4712 = vmatprep.mubr.f32.mxu1 %v13008_v41  ;;  %v7299_v36 = vpack.c.bf16 %v13012_v59, %v13010_v56  ;;  %v2959_v17 = vand.u32 4294901760, %v2958_v38  ;;  %v13013_v26 = vand.u32 4294901760, %v10171_v40  ;;  %v2965_v1 = vand.u32 4294901760, %v2964_v53  ;;  %v13018_v56 = vld [vmem:[#allocation62_spill] sm:$0xff]  ;;  %v13023_v53 = vld [vmem:[#allocation145_spill] sm:$0xff] }
 0x343   :  { %2936 = vmatmul.mubr.f32.gmra.mrb[132].mxu0 %v2935_v51  ;;  %7298 = vmatprep.subr.bf16.mxu1 %v12936_v16  ;;  %v12418_v38 = vand.u32 4294901760, %v10205_v44  ;;  %v13019_v61 = vand.u32 4294901760, %v13018_v56  ;;  %v13020_v59 = vld [vmem:[#allocation58_spill] sm:$0xff]  ;;  %v13024_v29 = vand.u32 4294901760, %v13023_v53 }
 0x344   :  { %2945 = vmatprep.mubr.f32.mxu0 %v2944_v50  ;;  %v2973_v41 = vsub.f32 %v10171_v40, %v13013_v26  ;;  %v2979_v50 = vsub.f32 %v10185_v28, %v12417_v48  ;;  %v13021_v26 = vand.u32 4294901760, %v13020_v59  ;;  %v13025_v48 = vld [vmem:[#allocation147_spill] sm:$0xff] }
 0x345   :  { %4716 = vmatmul.mubr.f32.gmra.mrb[100].mxu1 %v13015_v15  ;;  %v13026_v42 = vand.u32 4294901760, %v13025_v48 }
 0x346   :  { %7300 = vmatpush1.bf16.msra.mxu1 %v7299_v36  ;;  %4723 = vmatprep.mubr.f32.mxu1 %v13017_v8  ;;  %v7302_v51 = vpack.c.bf16 %v13021_v26, %v13019_v61  ;;  %v2974_v15 = vand.u32 4294901760, %v2973_v41  ;;  %v13022_v36 = vand.u32 4294901760, %v10191_v63  ;;  %v2980_v56 = vand.u32 4294901760, %v2979_v50  ;;  %v13027_v61 = vld [vmem:[#allocation67_spill] sm:$0xff]  ;;  %v13029_v26 = vld [vmem:[#allocation64_spill] sm:$0xff]  ;;  %v13032_v50 = vld [vmem:[#allocation154_spill] sm:$0xff] }
 0x347   :  { %2951 = vmatmul.mubr.f32.gmra.mrb[134].mxu0 %v2950_v23  ;;  %7301 = vmatprep.subr.bf16.mxu1 %v12936_v16  ;;  %v12419_v41 = vand.u32 4294901760, %v10225_v18  ;;  %v13028_v59 = vand.u32 4294901760, %v13027_v61  ;;  %v13033_v48 = vand.u32 4294901760, %v13032_v50 }
 0x348   :  { %2960 = vmatprep.mubr.f32.mxu0 %v2959_v17  ;;  %v2988_v8 = vsub.f32 %v10191_v63, %v13022_v36  ;;  %v2994_v17 = vsub.f32 %v10205_v44, %v12418_v38  ;;  %v13030_v36 = vand.u32 4294901760, %v13029_v26  ;;  %v13034_v38 = vld [vmem:[#allocation156_spill] sm:$0xff] }
 0x349   :  { %4727 = vmatmul.mubr.f32.gmra.mrb[102].mxu1 %v13024_v29  ;;  %v13035_v53 = vand.u32 4294901760, %v13034_v38 }
 0x34a   :  { %7303 = vmatpush1.bf16.msra.mxu1 %v7302_v51  ;;  %4734 = vmatprep.mubr.f32.mxu1 %v13026_v42  ;;  %v7305_v23 = vpack.c.bf16 %v13030_v36, %v13028_v59  ;;  %v2989_v29 = vand.u32 4294901760, %v2988_v8  ;;  %v13031_v51 = vand.u32 4294901760, %v10211_v21  ;;  %v2995_v61 = vand.u32 4294901760, %v2994_v17  ;;  %v13036_v59 = vld [vmem:[#allocation73_spill] sm:$0xff]  ;;  %v13038_v36 = vld [vmem:[#allocation70_spill] sm:$0xff] }
 0x34b   :  { %2966 = vmatmul.mubr.f32.gmra.mrb[136].mxu0 %v2965_v1  ;;  %7304 = vmatprep.subr.bf16.mxu1 %v12936_v16  ;;  %v12420_v8 = vand.u32 4294901760, %v10245_v0  ;;  %v13037_v26 = vand.u32 4294901760, %v13036_v59  ;;  %v13041_v17 = vld [vmem:[#allocation161_spill] sm:$0xff] }
 0x34c   :  { %2975 = vmatprep.mubr.f32.mxu0 %v2974_v15  ;;  %v3003_v42 = vsub.f32 %v10211_v21, %v13031_v51  ;;  %v3009_v15 = vsub.f32 %v10225_v18, %v12419_v41  ;;  %v13039_v51 = vand.u32 4294901760, %v13038_v36  ;;  %v13042_v38 = vand.u32 4294901760, %v13041_v17  ;;  %v13043_v41 = vld [vmem:[#allocation163_spill] sm:$0xff] }
 0x34d   :  { %4738 = vmatmul.mubr.f32.gmra.mrb[104].mxu1 %v13033_v48  ;;  %v13044_v50 = vand.u32 4294901760, %v13043_v41 }
 0x34e   :  { %7306 = vmatpush1.bf16.msra.mxu1 %v7305_v23  ;;  %4745 = vmatprep.mubr.f32.mxu1 %v13035_v53  ;;  %v7308_v1 = vpack.c.bf16 %v13039_v51, %v13037_v26  ;;  %v3004_v48 = vand.u32 4294901760, %v3003_v42  ;;  %v13040_v23 = vand.u32 4294901760, %v10231_v4  ;;  %v3010_v59 = vand.u32 4294901760, %v3009_v15  ;;  %v13045_v26 = vld [vmem:[#allocation78_spill] sm:$0xff]  ;;  %v13047_v51 = vld [vmem:[#allocation75_spill] sm:$0xff]  ;;  %v13050_v15 = vld [vmem:[#allocation169_spill] sm:$0xff] }
 0x34f   :  { %2981 = vmatmul.mubr.f32.gmra.mrb[138].mxu0 %v2980_v56  ;;  %7307 = vmatprep.subr.bf16.mxu1 %v12936_v16  ;;  %v12421_v42 = vand.u32 4294901760, %v10265_v2  ;;  %v13046_v36 = vand.u32 4294901760, %v13045_v26  ;;  %v13051_v41 = vand.u32 4294901760, %v13050_v15 }
 0x350   :  { %2990 = vmatprep.mubr.f32.mxu0 %v2989_v29  ;;  %v3018_v53 = vsub.f32 %v10231_v4, %v13040_v23  ;;  %v3024_v29 = vsub.f32 %v10245_v0, %v12420_v8  ;;  %v13048_v23 = vand.u32 4294901760, %v13047_v51  ;;  %v13052_v8 = vld [vmem:[#allocation171_spill] sm:$0xff] }
 0x351   :  { %4749 = vmatmul.mubr.f32.gmra.mrb[106].mxu1 %v13042_v38  ;;  %v13053_v17 = vand.u32 4294901760, %v13052_v8 }
 0x352   :  { %7309 = vmatpush1.bf16.msra.mxu1 %v7308_v1  ;;  %4756 = vmatprep.mubr.f32.mxu1 %v13044_v50  ;;  %v7311_v56 = vpack.c.bf16 %v13048_v23, %v13046_v36  ;;  %v3019_v38 = vand.u32 4294901760, %v3018_v53  ;;  %v13049_v1 = vand.u32 4294901760, %v10251_v11  ;;  %v3025_v26 = vand.u32 4294901760, %v3024_v29  ;;  %v13054_v36 = vld [vmem:[#allocation84_spill] sm:$0xff]  ;;  %v13056_v23 = vld [vmem:[#allocation81_spill] sm:$0xff] }
 0x353   :  { %2996 = vmatmul.mubr.f32.gmra.mrb[140].mxu0 %v2995_v61  ;;  %7310 = vmatprep.subr.bf16.mxu1 %v12936_v16  ;;  %v12422_v53 = vand.u32 4294901760, %v10285_v58  ;;  %v13055_v51 = vand.u32 4294901760, %v13054_v36  ;;  %v13059_v29 = vld [vmem:[#allocation177_spill] sm:$0xff] }
 0x354   :  { %3005 = vmatprep.mubr.f32.mxu0 %v3004_v48  ;;  %v3033_v50 = vsub.f32 %v10251_v11, %v13049_v1  ;;  %v3039_v48 = vsub.f32 %v10265_v2, %v12421_v42  ;;  %v13057_v1 = vand.u32 4294901760, %v13056_v23  ;;  %v13060_v8 = vand.u32 4294901760, %v13059_v29  ;;  %v13061_v42 = vld [vmem:[#allocation179_spill] sm:$0xff] }
 0x355   :  { %4760 = vmatmul.mubr.f32.gmra.mrb[108].mxu1 %v13051_v41  ;;  %v13062_v15 = vand.u32 4294901760, %v13061_v42 }
 0x356   :  { %7312 = vmatpush1.bf16.msra.mxu1 %v7311_v56  ;;  %4767 = vmatprep.mubr.f32.mxu1 %v13053_v17  ;;  %v7314_v61 = vpack.c.bf16 %v13057_v1, %v13055_v51  ;;  %v3034_v41 = vand.u32 4294901760, %v3033_v50  ;;  %v13058_v56 = vand.u32 4294901760, %v10271_v47  ;;  %v3040_v36 = vand.u32 4294901760, %v3039_v48  ;;  %v13063_v51 = vld [vmem:[#allocation90_spill] sm:$0xff]  ;;  %v13065_v1 = vld [vmem:[#allocation87_spill] sm:$0xff]  ;;  %v13068_v48 = vld [vmem:[#allocation185_spill] sm:$0xff] }
 0x357   :  { %3011 = vmatmul.mubr.f32.gmra.mrb[142].mxu0 %v3010_v59  ;;  %7313 = vmatprep.subr.bf16.mxu1 %v12936_v16  ;;  %v12424_v50 = vand.u32 4294901760, %v10305_v62  ;;  %v13064_v23 = vand.u32 4294901760, %v13063_v51  ;;  %v13069_v42 = vand.u32 4294901760, %v13068_v48 }
 0x358   :  { %3020 = vmatprep.mubr.f32.mxu0 %v3019_v38  ;;  %v3048_v17 = vsub.f32 %v10271_v47, %v13058_v56  ;;  %v3054_v38 = vsub.f32 %v10285_v58, %v12422_v53  ;;  %v13066_v56 = vand.u32 4294901760, %v13065_v1  ;;  %v13070_v53 = vld [vmem:[#allocation187_spill] sm:$0xff]  ;;  %v13072_v1 = vld [vmem:[#allocation194_spill] sm:$0xff] }
 0x359   :  { %4771 = vmatmul.mubr.f32.gmra.mrb[110].mxu1 %v13060_v8  ;;  %v13071_v29 = vand.u32 4294901760, %v13070_v53 }
 0x35a   :  { %7315 = vmatpush1.bf16.msra.mxu1 %v7314_v61  ;;  %4778 = vmatprep.mubr.f32.mxu1 %v13062_v15  ;;  %v7317_v59 = vpack.c.bf16 %v13066_v56, %v13064_v23  ;;  %v3049_v8 = vand.u32 4294901760, %v3048_v17  ;;  %v13067_v61 = vand.u32 4294901760, %v10291_v33  ;;  %v3055_v51 = vand.u32 4294901760, %v3054_v38 }
 0x35b   :  { %3026 = vmatmul.mubr.f32.gmra.mrb[144].mxu0 %v3025_v26  ;;  %7316 = vmatprep.subr.bf16.mxu1 %v12936_v16  ;;  %v12423_v26 = vand.u32 4294901760, %v10311_v20  ;;  %v12425_v17 = vand.u32 4294901760, %v10325_v45 }
 0x35c   :  { %3035 = vmatprep.mubr.f32.mxu0 %v3034_v41  ;;  %v3063_v15 = vsub.f32 %v10291_v33, %v13067_v61  ;;  %v3069_v41 = vsub.f32 %v10305_v62, %v12424_v50  ;;  %v12428_v50 = vand.u32 4294901760, %v10351_v35 }
 0x35d   :  { %4782 = vmatmul.mubr.f32.gmra.mrb[112].mxu1 %v13069_v42  ;;  %v3078_v42 = vsub.f32 %v10311_v20, %v12423_v26  ;;  %v3084_v61 = vsub.f32 %v10325_v45, %v12425_v17 }
 0x35e   :  { %7318 = vmatpush1.bf16.msra.mxu1 %v7317_v59  ;;  %4789 = vmatprep.mubr.f32.mxu1 %v13071_v29  ;;  %v3064_v23 = vand.u32 4294901760, %v3063_v15  ;;  %v12426_v59 = vand.u32 4294901760, %v10331_v32  ;;  %v13073_v29 = vand.u32 4294901760, %v13072_v1  ;;  %v3070_v56 = vand.u32 4294901760, %v3069_v41 }
 0x35f   :  { %3041 = vmatmul.mubr.f32.gmra.mrb[146].mxu0 %v3040_v36  ;;  %7319 = vmatprep.subr.bf16.mxu1 %v12936_v16  ;;  %v13074_v36 = vld [vmem:[#allocation196_spill] sm:$0xff]  ;;  %v3079_v15 = vand.u32 4294901760, %v3078_v42  ;;  %v3085_v41 = vand.u32 4294901760, %v3084_v61 }
 0x360   :  { %3050 = vmatprep.mubr.f32.mxu0 %v3049_v8  ;;  %v13075_v38 = vand.u32 4294901760, %v13074_v36  ;;  %v12427_v8 = vand.u32 4294901760, %v10345_v52  ;;  %v3093_v26 = vsub.f32 %v10331_v32, %v12426_v59  ;;  %v3108_v59 = vsub.f32 %v10351_v35, %v12428_v50 }
 0x361   :  { %4793 = vmatmul.mubr.f32.gmra.mrb[114].mxu1 %v13073_v29  ;;  %v13076_v29 = vld [vmem:[#allocation201_spill] sm:$0xff] }
 0x362   :  { %4800 = vmatprep.mubr.f32.mxu1 %v13075_v38  ;;  %v13077_v1 = vand.u32 4294901760, %v13076_v29  ;;  %v13078_v38 = vld [vmem:[#allocation203_spill] sm:$0xff]  ;;  %v3099_v17 = vsub.f32 %v10345_v52, %v12427_v8  ;;  %v3094_v42 = vand.u32 4294901760, %v3093_v26  ;;  %v12430_v29 = vand.u32 4294901760, %v10371_v49 }
 0x363   :  { %3056 = vmatmul.mubr.f32.gmra.mrb[148].mxu0 %v3055_v51  ;;  %v13079_v51 = vand.u32 4294901760, %v13078_v38  ;;  %v12431_v26 = vand.u32 4294901760, %v10383_v27 }
 0x364   :  { %3065 = vmatprep.mubr.f32.mxu0 %v3064_v23  ;;  %v12429_v23 = vand.u32 4294901760, %v10365_v46  ;;  %v3100_v61 = vand.u32 4294901760, %v3099_v17  ;;  %v3123_v50 = vsub.f32 %v10371_v49, %v12430_v29 }
 0x365   :  { %4804 = vmatmul.mubr.f32.gmra.mrb[116].mxu1 %v13077_v1  ;;  %v13080_v1 = vld [vmem:[#allocation209_spill] sm:$0xff] }
 0x366   :  { %4811 = vmatprep.mubr.f32.mxu1 %v13079_v51  ;;  %v13081_v36 = vand.u32 4294901760, %v13080_v1  ;;  %v13082_v51 = vld [vmem:[#allocation211_spill] sm:$0xff]  ;;  %v3114_v8 = vsub.f32 %v10365_v46, %v12429_v23  ;;  %v13084_v1 = vand.u32 4294901760, %v9868_v10  ;;  %v13089_v23 = vld [vmem:[#allocation226_spill] sm:$0xff] }
 0x367   :  { %3071 = vmatmul.mubr.f32.gmra.mrb[150].mxu0 %v3070_v56  ;;  %v13083_v56 = vand.u32 4294901760, %v13082_v51  ;;  %v13090_v38 = vand.u32 4294901760, %v13089_v23  ;;  %v13100_v23 = vld [vmem:[#allocation25_spill] sm:$0xff] }
 0x368   :  { %3080 = vmatprep.mubr.f32.mxu0 %v3079_v15  ;;  %v3109_v15 = vand.u32 4294901760, %v3108_v59  ;;  %v3115_v17 = vand.u32 4294901760, %v3114_v8 }
 0x369   :  { %4815 = vmatmul.mubr.f32.gmra.mrb[118].mxu1 %v13081_v36  ;;  %v13085_v36 = vld [vmem:[#allocation219_spill] sm:$0xff] }
 0x36a   :  { %4822 = vmatprep.mubr.f32.mxu1 %v13083_v56  ;;  %v13086_v51 = vand.u32 4294901760, %v13085_v36  ;;  %v3124_v56 = vand.u32 4294901760, %v3123_v50 }
 0x36b   :  { %3086 = vmatmul.mubr.f32.gmra.mrb[152].mxu0 %v3085_v41  ;;  %v3129_v41 = vsub.f32 %v10383_v27, %v12431_v26  ;;  %v13098_v26 = vld [vmem:[#allocation8_spill] sm:$0xff] }
 0x36c   :  { %3095 = vmatprep.mubr.f32.mxu0 %v3094_v42  ;;  %v13087_v42 = vld [vmem:[#allocation224_spill] sm:$0xff] }
 0x36d   :  { %4826 = vmatmul.mubr.f32.gmra.mrb[120].mxu1 %v13084_v1  ;;  %v13088_v59 = vand.u32 4294901760, %v13087_v42  ;;  %v3130_v29 = vand.u32 4294901760, %v3129_v41  ;;  %v13091_v1 = vld [vmem:[#allocation230_spill] sm:$0xff]  ;;  %v13103_v41 = vld [vmem:[#allocation59_spill] sm:$0xff] }
 0x36e   :  { %4833 = vmatprep.mubr.f32.mxu1 %v13086_v51  ;;  %v13092_v36 = vand.u32 4294901760, %v13091_v1  ;;  %v13093_v51 = vld [vmem:[#allocation232_spill] sm:$0xff] }
 0x36f   :  { %3101 = vmatmul.mubr.f32.gmra.mrb[154].mxu0 %v3100_v61  ;;  %v13094_v8 = vand.u32 4294901760, %v13093_v51  ;;  %v13095_v61 = vld [vmem:[#allocation5_spill] sm:$0xff] }
 0x370   :  { %3110 = vmatprep.mubr.f32.mxu0 %v3109_v15  ;;  %v13096_v15 = vld [vmem:[#allocation235_spill] sm:$0xff] }
 0x371   :  { %4837 = vmatmul.mubr.f32.gmra.mrb[122].mxu1 %v13088_v59  ;;  %v13097_v50 = vand.u32 4294901760, %v13096_v15  ;;  %v13099_v59 = vand.u32 4294901760, %v13098_v26  ;;  %v13109_v26 = vld [vmem:[#allocation48_spill] sm:$0xff] }
 0x372   :  { %4844 = vmatprep.mubr.f32.mxu1 %v13090_v38  ;;  %v13101_v38 = vld [vmem:[#allocation12_spill] sm:$0xff] }
 0x373   :  { %3116 = vmatmul.mubr.f32.gmra.mrb[156].mxu0 %v3115_v17  ;;  %v13102_v17 = vld [vmem:[#allocation34_spill] sm:$0xff] }
 0x374   :  { %3125 = vmatprep.mubr.f32.mxu0 %v3124_v56 }
 0x375   :  { %4848 = vmatmul.mubr.f32.gmra.mrb[124].mxu1 %v13092_v36  ;;  %v13104_v36 = vand.u32 4294901760, %v13103_v41  ;;  %v13114_v41 = vld [vmem:[#allocation54_spill] sm:$0xff] }
 0x376   :  { %4855 = vmatprep.mubr.f32.mxu1 %v13094_v8  ;;  %v13107_v8 = vld [vmem:[#allocation37_spill] sm:$0xff] }
 0x377   :  { %3131 = vmatmul.mubr.f32.gmra.mrb[158].mxu0 %v3130_v29  ;;  %v13105_v29 = vld [vmem:[#allocation95_spill] sm:$0xff] }
 0x378   :  { %3361 = vmatprep.mubr.f32.mxu0 %v13095_v61  ;;  %v13106_v56 = vand.u32 4294901760, %v13105_v29  ;;  %v13116_v29 = vld [vmem:[#allocation71_spill] sm:$0xff] }
 0x379   :  { %4859 = vmatmul.mubr.f32.gmra.mrb[126].mxu1 %v13097_v50  ;;  %v13108_v50 = vld [vmem:[#allocation16_spill] sm:$0xff] }
 0x37a   :  { %4866 = vmatprep.mubr.f32.mxu1 %v13099_v59  ;;  %v13110_v59 = vld [vmem:[#allocation101_spill] sm:$0xff] }
 0x37b   :  { %3363 = vmatmul.mubr.f32.vlgmr.msra.gmra.mrb[32].mxu0 %v13100_v23  ;;  %v13111_v15 = vand.u32 4294901760, %v13110_v59  ;;  %v13122_v59 = vld [vmem:[#allocation21_spill] sm:$0xff] }
 0x37c   :  { %7177 = vmatpush1.bf16.msra.mxu0 %v13101_v38  ;;  %3368 = vmatprep.mubr.f32.mxu0 %v13102_v17  ;;  %v13112_v38 = vld [vmem:[#allocation103_spill] sm:$0xff] }
 0x37d   :  { %4870 = vmatmul.mubr.f32.gmra.mrb[0].mxu1 %v13104_v36  ;;  %7178 = vmatprep.subr.bf16.mxu0 %v12936_v16  ;;  %v13113_v51 = vand.u32 4294901760, %v13112_v38  ;;  %v13115_v36 = vld [vmem:[#allocation22_spill] sm:$0xff]  ;;  %v13123_v38 = vld [vmem:[#allocation85_spill] sm:$0xff] }
 0x37e   :  { %4877 = vmatprep.mubr.f32.mxu1 %v13106_v56  ;;  %v13117_v56 = vld [vmem:[#allocation109_spill] sm:$0xff] }
 0x37f   :  { %3370 = vmatmul.mubr.f32.gmra.mrb[34].mxu0 %v13107_v8  ;;  %v13118_v1 = vand.u32 4294901760, %v13117_v56  ;;  %v13129_v56 = vld [vmem:[#allocation29_spill] sm:$0xff] }
 0x380   :  { %7180 = vmatpush1.bf16.msra.mxu0 %v13108_v50  ;;  %3375 = vmatprep.mubr.f32.mxu0 %v13109_v26  ;;  %v13119_v50 = vld [vmem:[#allocation111_spill] sm:$0xff] }
 0x381   :  { %4881 = vmatmul.mubr.f32.gmra.mrb[2].mxu1 %v13111_v15  ;;  %7181 = vmatprep.subr.bf16.mxu0 %v12936_v16  ;;  %v13120_v42 = vand.u32 4294901760, %v13119_v50  ;;  %v13121_v15 = vld [vmem:[#allocation79_spill] sm:$0xff]  ;;  %v13130_v50 = vld [vmem:[#allocation94_spill] sm:$0xff] }
 0x382   :  { %4888 = vmatprep.mubr.f32.mxu1 %v13113_v51  ;;  %v13124_v51 = vld [vmem:[#allocation117_spill] sm:$0xff] }
 0x383   :  { %3377 = vmatmul.mubr.f32.gmra.mrb[36].mxu0 %v13114_v41  ;;  %v13125_v10 = vand.u32 4294901760, %v13124_v51  ;;  %v13136_v51 = vld [vmem:[#allocation35_spill] sm:$0xff] }
 0x384   :  { %7183 = vmatpush1.bf16.msra.mxu0 %v13115_v36  ;;  %3382 = vmatprep.mubr.f32.mxu0 %v13116_v29  ;;  %v13126_v36 = vld [vmem:[#allocation119_spill] sm:$0xff] }
 0x385   :  { %4892 = vmatmul.mubr.f32.gmra.mrb[4].mxu1 %v13118_v1  ;;  %7184 = vmatprep.subr.bf16.mxu0 %v12936_v16  ;;  %v13127_v53 = vand.u32 4294901760, %v13126_v36  ;;  %v13128_v1 = vld [vmem:[#allocation92_spill] sm:$0xff] }
 0x386   :  { %4899 = vmatprep.mubr.f32.mxu1 %v13120_v42  ;;  %v13131_v42 = vld [vmem:[#allocation125_spill] sm:$0xff]  ;;  %v13137_v36 = vld [vmem:[#allocation100_spill] sm:$0xff] }
 0x387   :  { %3384 = vmatmul.mubr.f32.gmra.mrb[38].mxu0 %v13121_v15  ;;  %v13132_v48 = vand.u32 4294901760, %v13131_v42  ;;  %v13143_v42 = vld [vmem:[#allocation41_spill] sm:$0xff] }
 0x388   :  { %7186 = vmatpush1.bf16.msra.mxu0 %v13122_v59  ;;  %3389 = vmatprep.mubr.f32.mxu0 %v13123_v38  ;;  %v13133_v59 = vld [vmem:[#allocation127_spill] sm:$0xff] }
 0x389   :  { %4903 = vmatmul.mubr.f32.gmra.mrb[6].mxu1 %v13125_v10  ;;  %7187 = vmatprep.subr.bf16.mxu0 %v12936_v16  ;;  %v13134_v38 = vand.u32 4294901760, %v13133_v59  ;;  %v13135_v10 = vld [vmem:[#allocation98_spill] sm:$0xff]  ;;  %v13144_v59 = vld [vmem:[#allocation108_spill] sm:$0xff] }
 0x38a   :  { %4910 = vmatprep.mubr.f32.mxu1 %v13127_v53  ;;  %v13138_v53 = vld [vmem:[#allocation133_spill] sm:$0xff] }
 0x38b   :  { %3391 = vmatmul.mubr.f32.gmra.mrb[40].mxu0 %v13128_v1  ;;  %v13139_v1 = vand.u32 4294901760, %v13138_v53  ;;  %v13150_v53 = vld [vmem:[#allocation46_spill] sm:$0xff] }
 0x38c   :  { %7189 = vmatpush1.bf16.msra.mxu0 %v13129_v56  ;;  %3396 = vmatprep.mubr.f32.mxu0 %v13130_v50  ;;  %v13140_v56 = vld [vmem:[#allocation135_spill] sm:$0xff] }
 0x38d   :  { %4914 = vmatmul.mubr.f32.gmra.mrb[8].mxu1 %v13132_v48  ;;  %7190 = vmatprep.subr.bf16.mxu0 %v12936_v16  ;;  %v13141_v50 = vand.u32 4294901760, %v13140_v56  ;;  %v13142_v48 = vld [vmem:[#allocation106_spill] sm:$0xff]  ;;  %v13151_v56 = vld [vmem:[#allocation115_spill] sm:$0xff] }
 0x38e   :  { %4921 = vmatprep.mubr.f32.mxu1 %v13134_v38  ;;  %v13145_v38 = vld [vmem:[#allocation141_spill] sm:$0xff] }
 0x38f   :  { %3398 = vmatmul.mubr.f32.gmra.mrb[42].mxu0 %v13135_v10  ;;  %v13146_v10 = vand.u32 4294901760, %v13145_v38  ;;  %v13157_v38 = vld [vmem:[#allocation52_spill] sm:$0xff] }
 0x390   :  { %7192 = vmatpush1.bf16.msra.mxu0 %v13136_v51  ;;  %3403 = vmatprep.mubr.f32.mxu0 %v13137_v36  ;;  %v13147_v51 = vld [vmem:[#allocation143_spill] sm:$0xff] }
 0x391   :  { %4925 = vmatmul.mubr.f32.gmra.mrb[10].mxu1 %v13139_v1  ;;  %7193 = vmatprep.subr.bf16.mxu0 %v12936_v16  ;;  %v13148_v36 = vand.u32 4294901760, %v13147_v51  ;;  %v13149_v1 = vld [vmem:[#allocation113_spill] sm:$0xff]  ;;  %v13158_v51 = vld [vmem:[#allocation124_spill] sm:$0xff] }
 0x392   :  { %4932 = vmatprep.mubr.f32.mxu1 %v13141_v50  ;;  %v13152_v50 = vld [vmem:[#allocation149_spill] sm:$0xff] }
 0x393   :  { %3405 = vmatmul.mubr.f32.gmra.mrb[44].mxu0 %v13142_v48  ;;  %v13153_v48 = vand.u32 4294901760, %v13152_v50  ;;  %v13164_v50 = vld [vmem:[#allocation57_spill] sm:$0xff] }
 0x394   :  { %7195 = vmatpush1.bf16.msra.mxu0 %v13143_v42  ;;  %3410 = vmatprep.mubr.f32.mxu0 %v13144_v59  ;;  %v13154_v42 = vld [vmem:[#allocation151_spill] sm:$0xff] }
 0x395   :  { %4936 = vmatmul.mubr.f32.gmra.mrb[12].mxu1 %v13146_v10  ;;  %7196 = vmatprep.subr.bf16.mxu0 %v12936_v16  ;;  %v13155_v59 = vand.u32 4294901760, %v13154_v42  ;;  %v13156_v10 = vld [vmem:[#allocation122_spill] sm:$0xff]  ;;  %v13165_v42 = vld [vmem:[#allocation132_spill] sm:$0xff] }
 0x396   :  { %4943 = vmatprep.mubr.f32.mxu1 %v13148_v36  ;;  %v13159_v36 = vld [vmem:[#allocation157_spill] sm:$0xff] }
 0x397   :  { %3412 = vmatmul.mubr.f32.gmra.mrb[46].mxu0 %v13149_v1  ;;  %v13160_v1 = vand.u32 4294901760, %v13159_v36  ;;  %v13171_v36 = vld [vmem:[#allocation63_spill] sm:$0xff] }
 0x398   :  { %7198 = vmatpush1.bf16.msra.mxu0 %v13150_v53  ;;  %3417 = vmatprep.mubr.f32.mxu0 %v13151_v56  ;;  %v13161_v53 = vld [vmem:[#allocation159_spill] sm:$0xff] }
 0x399   :  { %4947 = vmatmul.mubr.f32.gmra.mrb[14].mxu1 %v13153_v48  ;;  %7199 = vmatprep.subr.bf16.mxu0 %v12936_v16  ;;  %v13162_v56 = vand.u32 4294901760, %v13161_v53  ;;  %v13163_v48 = vld [vmem:[#allocation130_spill] sm:$0xff]  ;;  %v13172_v53 = vld [vmem:[#allocation140_spill] sm:$0xff] }
 0x39a   :  { %4954 = vmatprep.mubr.f32.mxu1 %v13155_v59  ;;  %v13166_v59 = vld [vmem:[#allocation165_spill] sm:$0xff] }
 0x39b   :  { %3419 = vmatmul.mubr.f32.gmra.mrb[48].mxu0 %v13156_v10  ;;  %v13167_v10 = vand.u32 4294901760, %v13166_v59  ;;  %v13178_v59 = vld [vmem:[#allocation69_spill] sm:$0xff] }
 0x39c   :  { %7201 = vmatpush1.bf16.msra.mxu0 %v13157_v38  ;;  %3424 = vmatprep.mubr.f32.mxu0 %v13158_v51  ;;  %v13168_v38 = vld [vmem:[#allocation167_spill] sm:$0xff] }
 0x39d   :  { %4958 = vmatmul.mubr.f32.gmra.mrb[16].mxu1 %v13160_v1  ;;  %7202 = vmatprep.subr.bf16.mxu0 %v12936_v16  ;;  %v13169_v51 = vand.u32 4294901760, %v13168_v38  ;;  %v13170_v1 = vld [vmem:[#allocation138_spill] sm:$0xff]  ;;  %v13179_v38 = vld [vmem:[#allocation148_spill] sm:$0xff] }
 0x39e   :  { %4965 = vmatprep.mubr.f32.mxu1 %v13162_v56  ;;  %v13173_v56 = vld [vmem:[#allocation173_spill] sm:$0xff] }
 0x39f   :  { %3426 = vmatmul.mubr.f32.gmra.mrb[50].mxu0 %v13163_v48  ;;  %v13174_v48 = vand.u32 4294901760, %v13173_v56  ;;  %v13185_v56 = vld [vmem:[#allocation74_spill] sm:$0xff] }
 0x3a0   :  { %7204 = vmatpush1.bf16.msra.mxu0 %v13164_v50  ;;  %3431 = vmatprep.mubr.f32.mxu0 %v13165_v42  ;;  %v13175_v50 = vld [vmem:[#allocation175_spill] sm:$0xff] }
 0x3a1   :  { %4969 = vmatmul.mubr.f32.gmra.mrb[18].mxu1 %v13167_v10  ;;  %7205 = vmatprep.subr.bf16.mxu0 %v12936_v16  ;;  %v13176_v42 = vand.u32 4294901760, %v13175_v50  ;;  %v13177_v10 = vld [vmem:[#allocation146_spill] sm:$0xff]  ;;  %v13186_v50 = vld [vmem:[#allocation155_spill] sm:$0xff] }
 0x3a2   :  { %4976 = vmatprep.mubr.f32.mxu1 %v13169_v51  ;;  %v13180_v51 = vld [vmem:[#allocation181_spill] sm:$0xff] }
 0x3a3   :  { %3433 = vmatmul.mubr.f32.gmra.mrb[52].mxu0 %v13170_v1  ;;  %v13181_v1 = vand.u32 4294901760, %v13180_v51  ;;  %v13192_v51 = vld [vmem:[#allocation80_spill] sm:$0xff] }
 0x3a4   :  { %7207 = vmatpush1.bf16.msra.mxu0 %v13171_v36  ;;  %3438 = vmatprep.mubr.f32.mxu0 %v13172_v53  ;;  %v13182_v36 = vld [vmem:[#allocation183_spill] sm:$0xff] }
 0x3a5   :  { %4980 = vmatmul.mubr.f32.gmra.mrb[20].mxu1 %v13174_v48  ;;  %7208 = vmatprep.subr.bf16.mxu0 %v12936_v16  ;;  %v13183_v53 = vand.u32 4294901760, %v13182_v36  ;;  %v13184_v48 = vld [vmem:[#allocation153_spill] sm:$0xff]  ;;  %v13193_v36 = vld [vmem:[#allocation164_spill] sm:$0xff] }
 0x3a6   :  { %4987 = vmatprep.mubr.f32.mxu1 %v13176_v42  ;;  %v13187_v42 = vld [vmem:[#allocation189_spill] sm:$0xff] }
 0x3a7   :  { %3440 = vmatmul.mubr.f32.gmra.mrb[54].mxu0 %v13177_v10  ;;  %v13188_v10 = vand.u32 4294901760, %v13187_v42  ;;  %v13199_v42 = vld [vmem:[#allocation86_spill] sm:$0xff] }
 0x3a8   :  { %7210 = vmatpush1.bf16.msra.mxu0 %v13178_v59  ;;  %3445 = vmatprep.mubr.f32.mxu0 %v13179_v38  ;;  %v13189_v59 = vld [vmem:[#allocation191_spill] sm:$0xff] }
 0x3a9   :  { %4991 = vmatmul.mubr.f32.gmra.mrb[22].mxu1 %v13181_v1  ;;  %7211 = vmatprep.subr.bf16.mxu0 %v12936_v16  ;;  %v13190_v38 = vand.u32 4294901760, %v13189_v59  ;;  %v13191_v1 = vld [vmem:[#allocation162_spill] sm:$0xff]  ;;  %v13200_v59 = vld [vmem:[#allocation172_spill] sm:$0xff] }
 0x3aa   :  { %4998 = vmatprep.mubr.f32.mxu1 %v13183_v53  ;;  %v13194_v53 = vld [vmem:[#allocation197_spill] sm:$0xff] }
 0x3ab   :  { %3447 = vmatmul.mubr.f32.gmra.mrb[56].mxu0 %v13184_v48  ;;  %v13195_v48 = vand.u32 4294901760, %v13194_v53  ;;  %v13206_v53 = vld [vmem:[#allocation93_spill] sm:$0xff] }
 0x3ac   :  { %7213 = vmatpush1.bf16.msra.mxu0 %v13185_v56  ;;  %3452 = vmatprep.mubr.f32.mxu0 %v13186_v50  ;;  %v13196_v56 = vld [vmem:[#allocation199_spill] sm:$0xff] }
 0x3ad   :  { %5002 = vmatmul.mubr.f32.gmra.mrb[24].mxu1 %v13188_v10  ;;  %7214 = vmatprep.subr.bf16.mxu0 %v12936_v16  ;;  %v13197_v50 = vand.u32 4294901760, %v13196_v56  ;;  %v13198_v10 = vld [vmem:[#allocation170_spill] sm:$0xff]  ;;  %v13207_v56 = vld [vmem:[#allocation180_spill] sm:$0xff] }
 0x3ae   :  { %5009 = vmatprep.mubr.f32.mxu1 %v13190_v38  ;;  %v13201_v38 = vld [vmem:[#allocation205_spill] sm:$0xff] }
 0x3af   :  { %3454 = vmatmul.mubr.f32.gmra.mrb[58].mxu0 %v13191_v1  ;;  %v13202_v1 = vand.u32 4294901760, %v13201_v38  ;;  %v13214_v38 = vand.u32 4294901760, %v9881_v9  ;;  %v13223_v9 = vand.u32 4294901760, %v9942_v22 }
 0x3b0   :  { %7216 = vmatpush1.bf16.msra.mxu0 %v13192_v51  ;;  %3459 = vmatprep.mubr.f32.mxu0 %v13193_v36  ;;  %v13203_v51 = vld [vmem:[#allocation207_spill] sm:$0xff] }
 0x3b1   :  { %5013 = vmatmul.mubr.f32.gmra.mrb[26].mxu1 %v13195_v48  ;;  %7217 = vmatprep.subr.bf16.mxu0 %v12936_v16  ;;  %v13204_v36 = vand.u32 4294901760, %v13203_v51  ;;  %v13205_v48 = vld [vmem:[#allocation178_spill] sm:$0xff] }
 0x3b2   :  { %5020 = vmatprep.mubr.f32.mxu1 %v13197_v50  ;;  %v13208_v50 = vld [vmem:[#allocation213_spill] sm:$0xff] }
 0x3b3   :  { %3461 = vmatmul.mubr.f32.gmra.mrb[60].mxu0 %v13198_v10  ;;  %v13209_v10 = vand.u32 4294901760, %v13208_v50  ;;  %v13219_v50 = vand.u32 4294901760, %v9914_v54 }
 0x3b4   :  { %7219 = vmatpush1.bf16.msra.mxu0 %v13199_v42  ;;  %3466 = vmatprep.mubr.f32.mxu0 %v13200_v59  ;;  %v13210_v42 = vld [vmem:[#allocation215_spill] sm:$0xff]  ;;  %v13212_v59 = vld [vmem:[#allocation186_spill] sm:$0xff] }
 0x3b5   :  { %5024 = vmatmul.mubr.f32.gmra.mrb[28].mxu1 %v13202_v1  ;;  %7220 = vmatprep.subr.bf16.mxu0 %v12936_v16  ;;  %v13211_v15 = vand.u32 4294901760, %v13210_v42  ;;  %v13213_v1 = vld [vmem:[#allocation188_spill] sm:$0xff] }
 0x3b6   :  { %5031 = vmatprep.mubr.f32.mxu1 %v13204_v36  ;;  %v13215_v36 = vld [vmem:[#allocation222_spill] sm:$0xff]  ;;  %v13222_v42 = vld [vmem:[#allocation204_spill] sm:$0xff] }
 0x3b7   :  { %3468 = vmatmul.mubr.f32.gmra.mrb[62].mxu0 %v13205_v48  ;;  %v13216_v51 = vand.u32 4294901760, %v13215_v36  ;;  %v13217_v48 = vld [vmem:[#allocation193_spill] sm:$0xff]  ;;  %v13225_v36 = vld [vmem:[#allocation210_spill] sm:$0xff] }
 0x3b8   :  { %7222 = vmatpush1.bf16.msra.mxu0 %v13206_v53  ;;  %3473 = vmatprep.mubr.f32.mxu0 %v13207_v56  ;;  %v13218_v53 = vld [vmem:[#allocation195_spill] sm:$0xff] }
 0x3b9   :  { %5035 = vmatmul.mubr.f32.gmra.mrb[30].mxu1 %v13209_v10  ;;  %v13220_v10 = vand.u32 4294901760, %v9920_v57 }
 0x3ba   :  { %5042 = vmatprep.mubr.f32.mxu1 %v13211_v15  ;;  %v13221_v15 = vld [vmem:[#allocation202_spill] sm:$0xff] }
 0x3bb   :  { %3475 = vmatmul.mubr.f32.gmra.mrb[64].mxu0 %v13212_v59 }
 0x3bc   :  { %3480 = vmatprep.mubr.f32.mxu0 %v13213_v1 }
 0x3bd   :  { %5046 = vmatmul.mubr.f32.gmra.mrb[32].mxu1 %v13214_v38  ;;  %v13224_v38 = vand.u32 4294901760, %v9948_v5  ;;  %v13235_v5 = vand.u32 4294901760, %v9991_v34  ;;  %v13244_v34 = vand.u32 4294901760, %v10031_v37  ;;  %v13252_v37 = vand.u32 4294901760, %v10071_v43 }
 0x3be   :  { %5053 = vmatprep.mubr.f32.mxu1 %v13216_v51  ;;  %v13226_v51 = vld [vmem:[#allocation212_spill] sm:$0xff]  ;;  %v13260_v43 = vand.u32 4294901760, %v10111_v24  ;;  %v13268_v24 = vand.u32 4294901760, %v10151_v19  ;;  %v13276_v19 = vand.u32 4294901760, %v10191_v63  ;;  %v13284_v63 = vand.u32 4294901760, %v10231_v4 }
 0x3bf   :  { %3482 = vmatmul.mubr.f32.gmra.mrb[66].mxu0 %v13217_v48  ;;  %v13292_v4 = vand.u32 4294901760, %v10271_v47  ;;  %v13300_v47 = vand.u32 4294901760, %v10311_v20  ;;  %v13308_v20 = vand.u32 4294901760, %v10351_v35  ;;  %v13316_v35 = vld [vmem:[#allocation228_spill] sm:$0xff] }
 0x3c0   :  { %3487 = vmatprep.mubr.f32.mxu0 %v13218_v53  ;;  %v13227_v53 = vld [vmem:[#allocation236_spill] sm:$0xff] }
 0x3c1   :  { %5057 = vmatmul.mubr.f32.gmra.mrb[34].mxu1 %v13219_v50  ;;  %v13228_v54 = vand.u32 4294901760, %v13227_v53  ;;  %v13229_v50 = vld [vmem:[#allocation238_spill] sm:$0xff] }
 0x3c2   :  { %5064 = vmatprep.mubr.f32.mxu1 %v13220_v10  ;;  %v13230_v57 = vand.u32 4294901760, %v13229_v50  ;;  %v13231_v10 = vld [vmem:[#allocation218_spill] sm:$0xff]  ;;  %v13241_v50 = vld [vmem:[#allocation231_spill] sm:$0xff] }
 0x3c3   :  { %3489 = vmatmul.mubr.f32.gmra.mrb[68].mxu0 %v13221_v15  ;;  %v13232_v15 = vld [vmem:[#allocation220_spill] sm:$0xff] }
 0x3c4   :  { %3494 = vmatprep.mubr.f32.mxu0 %v13222_v42  ;;  %v13233_v42 = vld [vmem:[#allocation240_spill] sm:$0xff] }
 0x3c5   :  { %5068 = vmatmul.mubr.f32.gmra.mrb[36].mxu1 %v13223_v9  ;;  %v13234_v22 = vand.u32 4294901760, %v13233_v42  ;;  %v13236_v9 = vld [vmem:[#allocation225_spill] sm:$0xff]  ;;  %v13243_v42 = vand.u32 4294901760, %v10025_v12  ;;  %v13251_v12 = vand.u32 4294901760, %v10065_v39  ;;  %v13259_v39 = vand.u32 4294901760, %v10105_v55 }
 0x3c6   :  { %5075 = vmatprep.mubr.f32.mxu1 %v13224_v38  ;;  %v13237_v38 = vld [vmem:[#allocation227_spill] sm:$0xff]  ;;  %v13267_v55 = vand.u32 4294901760, %v10145_v14  ;;  %v13275_v14 = vand.u32 4294901760, %v10185_v28  ;;  %v13283_v28 = vand.u32 4294901760, %v10225_v18  ;;  %v13291_v18 = vand.u32 4294901760, %v10265_v2 }
 0x3c7   :  { %3496 = vmatmul.mubr.f32.gmra.mrb[70].mxu0 %v13225_v36  ;;  %v13299_v2 = vand.u32 4294901760, %v10305_v62  ;;  %v13307_v62 = vand.u32 4294901760, %v10345_v52  ;;  %v13315_v52 = vand.u32 4294901760, %v10383_v27  ;;  %v13321_v27 = vld [vmem:[#allocation14_spill] sm:$0xff] }
 0x3c8   :  { %3501 = vmatprep.mubr.f32.mxu0 %v13226_v51  ;;  %v13238_v51 = vld [vmem:[#allocation243_spill] sm:$0xff] }
 0x3c9   :  { %5079 = vmatmul.mubr.f32.gmra.mrb[38].mxu1 %v13228_v54  ;;  %v13239_v53 = vand.u32 4294901760, %v13238_v51  ;;  %v13240_v54 = vand.u32 4294901760, %v10011_v6  ;;  %v13247_v51 = vand.u32 4294901760, %v10045_v3  ;;  %v13248_v6 = vand.u32 4294901760, %v10051_v30 }
 0x3ca   :  { %5086 = vmatprep.mubr.f32.mxu1 %v13230_v57  ;;  %v13242_v57 = vld [vmem:[#allocation7_spill] sm:$0xff]  ;;  %v13255_v3 = vand.u32 4294901760, %v10085_v31  ;;  %v13256_v30 = vand.u32 4294901760, %v10091_v25  ;;  %v13263_v31 = vand.u32 4294901760, %v10125_v60  ;;  %v13264_v25 = vand.u32 4294901760, %v10131_v13 }
 0x3cb   :  { %3503 = vmatmul.mubr.f32.gmra.mrb[72].mxu0 %v13231_v10  ;;  %v13271_v60 = vand.u32 4294901760, %v10165_v7  ;;  %v13272_v13 = vand.u32 4294901760, %v10171_v40  ;;  %v13279_v7 = vand.u32 4294901760, %v10205_v44  ;;  %v13280_v40 = vand.u32 4294901760, %v10211_v21 }
 0x3cc   :  { %3508 = vmatprep.mubr.f32.mxu0 %v13232_v15  ;;  %v13287_v44 = vand.u32 4294901760, %v10245_v0  ;;  %v13288_v21 = vand.u32 4294901760, %v10251_v11  ;;  %v13295_v0 = vand.u32 4294901760, %v10285_v58  ;;  %v13296_v11 = vand.u32 4294901760, %v10291_v33 }
 0x3cd   :  { %5090 = vmatmul.mubr.f32.gmra.mrb[40].mxu1 %v13234_v22  ;;  %v13245_v22 = vld [vmem:[#allocation51_spill] sm:$0xff]  ;;  %v13303_v58 = vand.u32 4294901760, %v10325_v45  ;;  %v13304_v33 = vand.u32 4294901760, %v10331_v32  ;;  %v13311_v45 = vand.u32 4294901760, %v10365_v46  ;;  %v13312_v32 = vand.u32 4294901760, %v10371_v49  ;;  %v13318_v46 = vld [vmem:[#allocation10_spill] sm:$0xff] }
 0x3ce   :  { %5097 = vmatprep.mubr.f32.mxu1 %v13235_v5  ;;  %v13246_v5 = vld [vmem:[#allocation68_spill] sm:$0xff]  ;;  %v13319_v49 = vld [vmem:[#allocation233_spill] sm:$0xff] }
 0x3cf   :  { %3510 = vmatmul.mubr.f32.gmra.mrb[74].mxu0 %v13236_v9 }
 0x3d0   :  { %3515 = vmatprep.mubr.f32.mxu0 %v13237_v38 }
 0x3d1   :  { %5101 = vmatmul.mubr.f32.gmra.mrb[42].mxu1 %v13239_v53  ;;  %v13249_v53 = vld [vmem:[#allocation76_spill] sm:$0xff] }
 0x3d2   :  { %5108 = vmatprep.mubr.f32.mxu1 %v13240_v54  ;;  %v13250_v54 = vld [vmem:[#allocation96_spill] sm:$0xff] }
 0x3d3   :  { %3517 = vmatmul.mubr.f32.gmra.mrb[76].mxu0 %v13241_v50 }
 0x3d4   :  { %3522 = vmatprep.mubr.f32.mxu0 %v13242_v57 }
 0x3d5   :  { %5112 = vmatmul.mubr.f32.gmra.mrb[44].mxu1 %v13243_v42  ;;  %v13253_v42 = vld [vmem:[#allocation102_spill] sm:$0xff] }
 0x3d6   :  { %5119 = vmatprep.mubr.f32.mxu1 %v13244_v34  ;;  %v13254_v34 = vld [vmem:[#allocation104_spill] sm:$0xff] }
 0x3d7   :  { %3524 = vmatmul.mubr.f32.gmra.mrb[78].mxu0 %v13245_v22 }
 0x3d8   :  { %3529 = vmatprep.mubr.f32.mxu0 %v13246_v5 }
 0x3d9   :  { %5123 = vmatmul.mubr.f32.gmra.mrb[46].mxu1 %v13247_v51  ;;  %v13257_v51 = vld [vmem:[#allocation110_spill] sm:$0xff] }
 0x3da   :  { %5130 = vmatprep.mubr.f32.mxu1 %v13248_v6  ;;  %v13258_v6 = vld [vmem:[#allocation112_spill] sm:$0xff] }
 0x3db   :  { %3531 = vmatmul.mubr.f32.gmra.mrb[80].mxu0 %v13249_v53 }
 0x3dc   :  { %3536 = vmatprep.mubr.f32.mxu0 %v13250_v54 }
 0x3dd   :  { %5134 = vmatmul.mubr.f32.gmra.mrb[48].mxu1 %v13251_v12  ;;  %v13261_v12 = vld [vmem:[#allocation118_spill] sm:$0xff] }
 0x3de   :  { %5141 = vmatprep.mubr.f32.mxu1 %v13252_v37  ;;  %v13262_v37 = vld [vmem:[#allocation120_spill] sm:$0xff] }
 0x3df   :  { %3538 = vmatmul.mubr.f32.gmra.mrb[82].mxu0 %v13253_v42 }
 0x3e0   :  { %3543 = vmatprep.mubr.f32.mxu0 %v13254_v34 }
 0x3e1   :  { %5145 = vmatmul.mubr.f32.gmra.mrb[50].mxu1 %v13255_v3  ;;  %v13265_v3 = vld [vmem:[#allocation126_spill] sm:$0xff] }
 0x3e2   :  { %5152 = vmatprep.mubr.f32.mxu1 %v13256_v30  ;;  %v13266_v30 = vld [vmem:[#allocation128_spill] sm:$0xff] }
 0x3e3   :  { %3545 = vmatmul.mubr.f32.gmra.mrb[84].mxu0 %v13257_v51 }
 0x3e4   :  { %3550 = vmatprep.mubr.f32.mxu0 %v13258_v6 }
 0x3e5   :  { %5156 = vmatmul.mubr.f32.gmra.mrb[52].mxu1 %v13259_v39  ;;  %v13269_v39 = vld [vmem:[#allocation134_spill] sm:$0xff] }
 0x3e6   :  { %5163 = vmatprep.mubr.f32.mxu1 %v13260_v43  ;;  %v13270_v43 = vld [vmem:[#allocation136_spill] sm:$0xff] }
 0x3e7   :  { %3552 = vmatmul.mubr.f32.gmra.mrb[86].mxu0 %v13261_v12 }
 0x3e8   :  { %3557 = vmatprep.mubr.f32.mxu0 %v13262_v37 }
 0x3e9   :  { %5167 = vmatmul.mubr.f32.gmra.mrb[54].mxu1 %v13263_v31  ;;  %v13273_v31 = vld [vmem:[#allocation142_spill] sm:$0xff] }
 0x3ea   :  { %5174 = vmatprep.mubr.f32.mxu1 %v13264_v25  ;;  %v13274_v25 = vld [vmem:[#allocation144_spill] sm:$0xff] }
 0x3eb   :  { %3559 = vmatmul.mubr.f32.gmra.mrb[88].mxu0 %v13265_v3 }
 0x3ec   :  { %3564 = vmatprep.mubr.f32.mxu0 %v13266_v30 }
 0x3ed   :  { %5178 = vmatmul.mubr.f32.gmra.mrb[56].mxu1 %v13267_v55  ;;  %v13277_v55 = vld [vmem:[#allocation150_spill] sm:$0xff] }
 0x3ee   :  { %5185 = vmatprep.mubr.f32.mxu1 %v13268_v24  ;;  %v13278_v24 = vld [vmem:[#allocation152_spill] sm:$0xff] }
 0x3ef   :  { %3566 = vmatmul.mubr.f32.gmra.mrb[90].mxu0 %v13269_v39 }
 0x3f0   :  { %3571 = vmatprep.mubr.f32.mxu0 %v13270_v43 }
 0x3f1   :  { %5189 = vmatmul.mubr.f32.gmra.mrb[58].mxu1 %v13271_v60  ;;  %v13281_v60 = vld [vmem:[#allocation158_spill] sm:$0xff] }
 0x3f2   :  { %5196 = vmatprep.mubr.f32.mxu1 %v13272_v13  ;;  %v13282_v13 = vld [vmem:[#allocation160_spill] sm:$0xff] }
 0x3f3   :  { %3573 = vmatmul.mubr.f32.gmra.mrb[92].mxu0 %v13273_v31 }
 0x3f4   :  { %3578 = vmatprep.mubr.f32.mxu0 %v13274_v25 }
 0x3f5   :  { %5200 = vmatmul.mubr.f32.gmra.mrb[60].mxu1 %v13275_v14  ;;  %v13285_v14 = vld [vmem:[#allocation166_spill] sm:$0xff] }
 0x3f6   :  { %5207 = vmatprep.mubr.f32.mxu1 %v13276_v19  ;;  %v13286_v19 = vld [vmem:[#allocation168_spill] sm:$0xff] }
 0x3f7   :  { %3580 = vmatmul.mubr.f32.gmra.mrb[94].mxu0 %v13277_v55 }
 0x3f8   :  { %3585 = vmatprep.mubr.f32.mxu0 %v13278_v24 }
 0x3f9   :  { %5211 = vmatmul.mubr.f32.gmra.mrb[62].mxu1 %v13279_v7  ;;  %v13289_v7 = vld [vmem:[#allocation174_spill] sm:$0xff] }
 0x3fa   :  { %5218 = vmatprep.mubr.f32.mxu1 %v13280_v40  ;;  %v13290_v40 = vld [vmem:[#allocation176_spill] sm:$0xff] }
 0x3fb   :  { %3587 = vmatmul.mubr.f32.gmra.mrb[96].mxu0 %v13281_v60 }
 0x3fc   :  { %3592 = vmatprep.mubr.f32.mxu0 %v13282_v13 }
 0x3fd   :  { %5222 = vmatmul.mubr.f32.gmra.mrb[64].mxu1 %v13283_v28  ;;  %v13293_v28 = vld [vmem:[#allocation182_spill] sm:$0xff] }
 0x3fe   :  { %5229 = vmatprep.mubr.f32.mxu1 %v13284_v63  ;;  %v13294_v63 = vld [vmem:[#allocation184_spill] sm:$0xff] }
 0x3ff   :  { %3594 = vmatmul.mubr.f32.gmra.mrb[98].mxu0 %v13285_v14 }
 0x400   :  { %3599 = vmatprep.mubr.f32.mxu0 %v13286_v19 }
 0x401   :  { %5233 = vmatmul.mubr.f32.gmra.mrb[66].mxu1 %v13287_v44  ;;  %v13297_v44 = vld [vmem:[#allocation190_spill] sm:$0xff] }
 0x402   :  { %5240 = vmatprep.mubr.f32.mxu1 %v13288_v21  ;;  %v13298_v21 = vld [vmem:[#allocation192_spill] sm:$0xff] }
 0x403   :  { %3601 = vmatmul.mubr.f32.gmra.mrb[100].mxu0 %v13289_v7 }
 0x404   :  { %3606 = vmatprep.mubr.f32.mxu0 %v13290_v40 }
 0x405   :  { %5244 = vmatmul.mubr.f32.gmra.mrb[68].mxu1 %v13291_v18  ;;  %v13301_v18 = vld [vmem:[#allocation198_spill] sm:$0xff] }
 0x406   :  { %5251 = vmatprep.mubr.f32.mxu1 %v13292_v4  ;;  %v13302_v4 = vld [vmem:[#allocation200_spill] sm:$0xff] }
 0x407   :  { %3608 = vmatmul.mubr.f32.gmra.mrb[102].mxu0 %v13293_v28 }
 0x408   :  { %3613 = vmatprep.mubr.f32.mxu0 %v13294_v63 }
 0x409   :  { %5255 = vmatmul.mubr.f32.gmra.mrb[70].mxu1 %v13295_v0  ;;  %v13305_v0 = vld [vmem:[#allocation206_spill] sm:$0xff] }
 0x40a   :  { %5262 = vmatprep.mubr.f32.mxu1 %v13296_v11  ;;  %v13306_v11 = vld [vmem:[#allocation208_spill] sm:$0xff] }
 0x40b   :  { %3615 = vmatmul.mubr.f32.gmra.mrb[104].mxu0 %v13297_v44 }
 0x40c   :  { %3620 = vmatprep.mubr.f32.mxu0 %v13298_v21 }
 0x40d   :  { %5266 = vmatmul.mubr.f32.gmra.mrb[72].mxu1 %v13299_v2  ;;  %v13309_v2 = vld [vmem:[#allocation214_spill] sm:$0xff] }
 0x40e   :  { %5273 = vmatprep.mubr.f32.mxu1 %v13300_v47  ;;  %v13310_v47 = vld [vmem:[#allocation216_spill] sm:$0xff] }
 0x40f   :  { %3622 = vmatmul.mubr.f32.gmra.mrb[106].mxu0 %v13301_v18 }
 0x410   :  { %3627 = vmatprep.mubr.f32.mxu0 %v13302_v4 }
 0x411   :  { %5277 = vmatmul.mubr.f32.gmra.mrb[74].mxu1 %v13303_v58  ;;  %v13313_v58 = vld [vmem:[#allocation221_spill] sm:$0xff] }
 0x412   :  { %5284 = vmatprep.mubr.f32.mxu1 %v13304_v33  ;;  %v13314_v33 = vld [vmem:[#allocation223_spill] sm:$0xff] }
 0x413   :  { %3629 = vmatmul.mubr.f32.gmra.mrb[108].mxu0 %v13305_v0 }
 0x414   :  { %3634 = vmatprep.mubr.f32.mxu0 %v13306_v11 }
 0x415   :  { %5288 = vmatmul.mubr.f32.gmra.mrb[76].mxu1 %v13307_v62  ;;  %v13317_v62 = vld [vmem:[#allocation229_spill] sm:$0xff] }
 0x416   :  { %5295 = vmatprep.mubr.f32.mxu1 %v13308_v20  ;;  %v13320_v20 = vld [vmem:[#allocation234_spill] sm:$0xff] }
 0x417   :  { %3636 = vmatmul.mubr.f32.gmra.mrb[110].mxu0 %v13309_v2 }
 0x418   :  { %3641 = vmatprep.mubr.f32.mxu0 %v13310_v47 }
 0x419   :  { %5299 = vmatmul.mubr.f32.gmra.mrb[78].mxu1 %v13311_v45  ;;  %v13322_v45 = vld [vmem:[#allocation237_spill] sm:$0xff] }
 0x41a   :  { %5306 = vmatprep.mubr.f32.mxu1 %v13312_v32  ;;  %v13323_v32 = vld [vmem:[#allocation239_spill] sm:$0xff] }
 0x41b   :  { %3643 = vmatmul.mubr.f32.gmra.mrb[112].mxu0 %v13313_v58 }
 0x41c   :  { %3648 = vmatprep.mubr.f32.mxu0 %v13314_v33 }
 0x41d   :  { %5310 = vmatmul.mubr.f32.gmra.mrb[80].mxu1 %v13315_v52  ;;  %v13324_v52 = vld [vmem:[#allocation18_spill] sm:$0xff] }
 0x41e   :  { %5476 = vmatprep.mubr.f32.mxu1 %v13095_v61  ;;  %v13334_v61 = vld [vmem:[#allocation94_spill] sm:$0xff] }
 0x41f   :  { %3650 = vmatmul.mubr.f32.gmra.mrb[114].mxu0 %v13316_v35 }
 0x420   :  { %3655 = vmatprep.mubr.f32.mxu0 %v13317_v62 }
 0x421   :  { %5478 = vmatmul.mubr.f32.vlgmr.msra.gmra.mrb[82].mxu1 %v13100_v23  ;;  %v13330_v23 = vld [vmem:[#allocation244_spill] sm:$0xff] }
 0x422   :  { %7321 = vmatpush1.bf16.msra.mxu1 %v13318_v46  ;;  %5483 = vmatprep.mubr.f32.mxu1 %v13102_v17  ;;  %v13325_v46 = vld [vmem:[#allocation241_spill] sm:$0xff] }
 0x423   :  { %3657 = vmatmul.mubr.f32.gmra.mrb[116].mxu0 %v13319_v49  ;;  %7322 = vmatprep.subr.bf16.mxu1 %v12936_v16  ;;  %v13329_v17 = vld [vmem:[#allocation85_spill] sm:$0xff] }
 0x424   :  { %3662 = vmatprep.mubr.f32.mxu0 %v13320_v20 }
 0x425   :  { %5485 = vmatmul.mubr.f32.gmra.mrb[84].mxu1 %v13107_v8  ;;  %v13326_v8 = vld [vmem:[#allocation242_spill] sm:$0xff] }
 0x426   :  { %7324 = vmatpush1.bf16.msra.mxu1 %v13321_v27  ;;  %5490 = vmatprep.mubr.f32.mxu1 %v13109_v26  ;;  %v13327_v27 = vld [vmem:[#allocation79_spill] sm:$0xff] }
 0x427   :  { %3664 = vmatmul.mubr.f32.gmra.mrb[118].mxu0 %v13322_v45  ;;  %7325 = vmatprep.subr.bf16.mxu1 %v12936_v16  ;;  %v13328_v26 = vld [vmem:[#allocation27_spill] sm:$0xff] }
 0x428   :  { %3669 = vmatprep.mubr.f32.mxu0 %v13323_v32 }
 0x429   :  { %5492 = vmatmul.mubr.f32.gmra.mrb[86].mxu1 %v13114_v41  ;;  %v13331_v41 = vld [vmem:[#allocation245_spill] sm:$0xff] }
 0x42a   :  { %7327 = vmatpush1.bf16.msra.mxu1 %v13324_v52  ;;  %5497 = vmatprep.mubr.f32.mxu1 %v13116_v29  ;;  %v13332_v52 = vld [vmem:[#allocation92_spill] sm:$0xff]  ;;  %v13333_v29 = vld [vmem:[#allocation26_spill] sm:$0xff] }
 0x42b   :  { %3671 = vmatmul.mubr.f32.gmra.mrb[120].mxu0 %v13325_v46  ;;  %7328 = vmatprep.subr.bf16.mxu1 %v12936_v16  ;;  %v13335_v46 = vld [vmem:[#allocation246_spill] sm:$0xff] }
 0x42c   :  { %3676 = vmatprep.mubr.f32.mxu0 %v13326_v8  ;;  %v13340_v8 = vld [vmem:[#allocation248_spill] sm:$0xff] }
 0x42d   :  { %5499 = vmatmul.mubr.f32.gmra.mrb[88].mxu1 %v13327_v27  ;;  %v13336_v27 = vld [vmem:[#allocation247_spill] sm:$0xff] }
 0x42e   :  { %7330 = vmatpush1.bf16.msra.mxu1 %v13328_v26  ;;  %5504 = vmatprep.mubr.f32.mxu1 %v13329_v17  ;;  %v13337_v26 = vld [vmem:[#allocation98_spill] sm:$0xff]  ;;  %v13338_v17 = vld [vmem:[#allocation32_spill] sm:$0xff] }
 0x42f   :  { %3678 = vmatmul.mubr.f32.gmra.mrb[122].mxu0 %v13330_v23  ;;  %7331 = vmatprep.subr.bf16.mxu1 %v12936_v16  ;;  %v13339_v23 = vld [vmem:[#allocation100_spill] sm:$0xff] }
 0x430   :  { %3683 = vmatprep.mubr.f32.mxu0 %v13331_v41  ;;  %v13345_v41 = vld [vmem:[#allocation250_spill] sm:$0xff] }
 0x431   :  { %5506 = vmatmul.mubr.f32.gmra.mrb[90].mxu1 %v13332_v52  ;;  %v13341_v52 = vld [vmem:[#allocation249_spill] sm:$0xff] }
 0x432   :  { %7333 = vmatpush1.bf16.msra.mxu1 %v13333_v29  ;;  %5511 = vmatprep.mubr.f32.mxu1 %v13334_v61  ;;  %v13342_v29 = vld [vmem:[#allocation106_spill] sm:$0xff] }
 0x433   :  { %3685 = vmatmul.mubr.f32.gmra.mrb[124].mxu0 %v13335_v46  ;;  %7334 = vmatprep.subr.bf16.mxu1 %v12936_v16  ;;  %v13343_v61 = vld [vmem:[#allocation38_spill] sm:$0xff]  ;;  %v13344_v46 = vld [vmem:[#allocation108_spill] sm:$0xff] }
 0x434   :  { %3690 = vmatprep.mubr.f32.mxu0 %v13336_v27  ;;  %v13350_v27 = vld [vmem:[#allocation252_spill] sm:$0xff] }
 0x435   :  { %5513 = vmatmul.mubr.f32.gmra.mrb[92].mxu1 %v13337_v26  ;;  %v13346_v26 = vld [vmem:[#allocation251_spill] sm:$0xff] }
 0x436   :  { %7336 = vmatpush1.bf16.msra.mxu1 %v13338_v17  ;;  %5518 = vmatprep.mubr.f32.mxu1 %v13339_v23  ;;  %v13347_v17 = vld [vmem:[#allocation113_spill] sm:$0xff]  ;;  %v13348_v23 = vld [vmem:[#allocation44_spill] sm:$0xff] }
 0x437   :  { %3692 = vmatmul.mubr.f32.gmra.mrb[126].mxu0 %v13340_v8  ;;  %7337 = vmatprep.subr.bf16.mxu1 %v12936_v16  ;;  %v13349_v8 = vld [vmem:[#allocation115_spill] sm:$0xff] }
 0x438   :  { %3697 = vmatprep.mubr.f32.mxu0 %v13341_v52  ;;  %v13355_v52 = vld [vmem:[#allocation254_spill] sm:$0xff] }
 0x439   :  { %5520 = vmatmul.mubr.f32.gmra.mrb[94].mxu1 %v13342_v29  ;;  %v13351_v29 = vld [vmem:[#allocation253_spill] sm:$0xff] }
 0x43a   :  { %7339 = vmatpush1.bf16.msra.mxu1 %v13343_v61  ;;  %5525 = vmatprep.mubr.f32.mxu1 %v13344_v46  ;;  %v13352_v61 = vld [vmem:[#allocation122_spill] sm:$0xff]  ;;  %v13353_v46 = vld [vmem:[#allocation49_spill] sm:$0xff] }
 0x43b   :  { %3699 = vmatmul.mubr.f32.gmra.mrb[128].mxu0 %v13345_v41  ;;  %7340 = vmatprep.subr.bf16.mxu1 %v12936_v16  ;;  %v13354_v41 = vld [vmem:[#allocation124_spill] sm:$0xff] }
 0x43c   :  { %3704 = vmatprep.mubr.f32.mxu0 %v13346_v26  ;;  %v13360_v26 = vld [vmem:[#allocation256_spill] sm:$0xff] }
 0x43d   :  { %5527 = vmatmul.mubr.f32.gmra.mrb[96].mxu1 %v13347_v17  ;;  %v13356_v17 = vld [vmem:[#allocation255_spill] sm:$0xff] }
 0x43e   :  { %7342 = vmatpush1.bf16.msra.mxu1 %v13348_v23  ;;  %5532 = vmatprep.mubr.f32.mxu1 %v13349_v8  ;;  %v13357_v23 = vld [vmem:[#allocation130_spill] sm:$0xff]  ;;  %v13358_v8 = vld [vmem:[#allocation55_spill] sm:$0xff] }
 0x43f   :  { %3706 = vmatmul.mubr.f32.gmra.mrb[130].mxu0 %v13350_v27  ;;  %7343 = vmatprep.subr.bf16.mxu1 %v12936_v16  ;;  %v13359_v27 = vld [vmem:[#allocation132_spill] sm:$0xff] }
 0x440   :  { %3711 = vmatprep.mubr.f32.mxu0 %v13351_v29  ;;  %v13365_v29 = vld [vmem:[#allocation258_spill] sm:$0xff] }
 0x441   :  { %5534 = vmatmul.mubr.f32.gmra.mrb[98].mxu1 %v13352_v61  ;;  %v13361_v61 = vld [vmem:[#allocation257_spill] sm:$0xff] }
 0x442   :  { %7345 = vmatpush1.bf16.msra.mxu1 %v13353_v46  ;;  %5539 = vmatprep.mubr.f32.mxu1 %v13354_v41  ;;  %v13362_v46 = vld [vmem:[#allocation138_spill] sm:$0xff]  ;;  %v13363_v41 = vld [vmem:[#allocation61_spill] sm:$0xff] }
 0x443   :  { %3713 = vmatmul.mubr.f32.gmra.mrb[132].mxu0 %v13355_v52  ;;  %7346 = vmatprep.subr.bf16.mxu1 %v12936_v16  ;;  %v13364_v52 = vld [vmem:[#allocation140_spill] sm:$0xff] }
 0x444   :  { %3718 = vmatprep.mubr.f32.mxu0 %v13356_v17  ;;  %v13370_v17 = vld [vmem:[#allocation260_spill] sm:$0xff] }
 0x445   :  { %5541 = vmatmul.mubr.f32.gmra.mrb[100].mxu1 %v13357_v23  ;;  %v13366_v23 = vld [vmem:[#allocation259_spill] sm:$0xff] }
 0x446   :  { %7348 = vmatpush1.bf16.msra.mxu1 %v13358_v8  ;;  %5546 = vmatprep.mubr.f32.mxu1 %v13359_v27  ;;  %v13367_v8 = vld [vmem:[#allocation146_spill] sm:$0xff] }
 0x447   :  { %3720 = vmatmul.mubr.f32.gmra.mrb[134].mxu0 %v13360_v26  ;;  %7349 = vmatprep.subr.bf16.mxu1 %v12936_v16  ;;  %v13368_v27 = vld [vmem:[#allocation66_spill] sm:$0xff]  ;;  %v13369_v26 = vld [vmem:[#allocation148_spill] sm:$0xff] }
 0x448   :  { %3725 = vmatprep.mubr.f32.mxu0 %v13361_v61  ;;  %v13375_v61 = vld [vmem:[#allocation262_spill] sm:$0xff] }
 0x449   :  { %5548 = vmatmul.mubr.f32.gmra.mrb[102].mxu1 %v13362_v46  ;;  %v13371_v46 = vld [vmem:[#allocation261_spill] sm:$0xff] }
 0x44a   :  { %7351 = vmatpush1.bf16.msra.mxu1 %v13363_v41  ;;  %5553 = vmatprep.mubr.f32.mxu1 %v13364_v52  ;;  %v13372_v41 = vld [vmem:[#allocation153_spill] sm:$0xff]  ;;  %v13373_v52 = vld [vmem:[#allocation72_spill] sm:$0xff] }
 0x44b   :  { %3727 = vmatmul.mubr.f32.gmra.mrb[136].mxu0 %v13365_v29  ;;  %7352 = vmatprep.subr.bf16.mxu1 %v12936_v16  ;;  %v13374_v29 = vld [vmem:[#allocation155_spill] sm:$0xff] }
 0x44c   :  { %3732 = vmatprep.mubr.f32.mxu0 %v13366_v23  ;;  %v13380_v23 = vld [vmem:[#allocation264_spill] sm:$0xff] }
 0x44d   :  { %5555 = vmatmul.mubr.f32.gmra.mrb[104].mxu1 %v13367_v8  ;;  %v13376_v8 = vld [vmem:[#allocation263_spill] sm:$0xff] }
 0x44e   :  { %7354 = vmatpush1.bf16.msra.mxu1 %v13368_v27  ;;  %5560 = vmatprep.mubr.f32.mxu1 %v13369_v26  ;;  %v13377_v27 = vld [vmem:[#allocation162_spill] sm:$0xff]  ;;  %v13378_v26 = vld [vmem:[#allocation77_spill] sm:$0xff] }
 0x44f   :  { %3734 = vmatmul.mubr.f32.gmra.mrb[138].mxu0 %v13370_v17  ;;  %7355 = vmatprep.subr.bf16.mxu1 %v12936_v16  ;;  %v13379_v17 = vld [vmem:[#allocation164_spill] sm:$0xff] }
 0x450   :  { %3739 = vmatprep.mubr.f32.mxu0 %v13371_v46  ;;  %v13385_v46 = vld [vmem:[#allocation266_spill] sm:$0xff] }
 0x451   :  { %5562 = vmatmul.mubr.f32.gmra.mrb[106].mxu1 %v13372_v41  ;;  %v13381_v41 = vld [vmem:[#allocation265_spill] sm:$0xff] }
 0x452   :  { %7357 = vmatpush1.bf16.msra.mxu1 %v13373_v52  ;;  %5567 = vmatprep.mubr.f32.mxu1 %v13374_v29  ;;  %v13382_v52 = vld [vmem:[#allocation170_spill] sm:$0xff]  ;;  %v13383_v29 = vld [vmem:[#allocation83_spill] sm:$0xff] }
 0x453   :  { %3741 = vmatmul.mubr.f32.gmra.mrb[140].mxu0 %v13375_v61  ;;  %7358 = vmatprep.subr.bf16.mxu1 %v12936_v16  ;;  %v13384_v61 = vld [vmem:[#allocation172_spill] sm:$0xff] }
 0x454   :  { %3746 = vmatprep.mubr.f32.mxu0 %v13376_v8 }
 0x455   :  { %5569 = vmatmul.mubr.f32.gmra.mrb[108].mxu1 %v13377_v27  ;;  %v13386_v27 = vld [vmem:[#allocation267_spill] sm:$0xff] }
 0x456   :  { %7360 = vmatpush1.bf16.msra.mxu1 %v13378_v26  ;;  %5574 = vmatprep.mubr.f32.mxu1 %v13379_v17  ;;  %v13387_v26 = vld [vmem:[#allocation178_spill] sm:$0xff]  ;;  %v13388_v17 = vld [vmem:[#allocation89_spill] sm:$0xff] }
 0x457   :  { %3748 = vmatmul.mubr.f32.gmra.mrb[142].mxu0 %v13380_v23  ;;  %7361 = vmatprep.subr.bf16.mxu1 %v12936_v16  ;;  %v13389_v23 = vld [vmem:[#allocation268_spill] sm:$0xff] }
 0x458   :  { %3753 = vmatprep.mubr.f32.mxu0 %v13381_v41  ;;  %v13390_v41 = vld [vmem:[#allocation269_spill] sm:$0xff] }
 0x459   :  { %5576 = vmatmul.mubr.f32.gmra.mrb[110].mxu1 %v13382_v52  ;;  %v13397_v52 = vld [vmem:[#allocation204_spill] sm:$0xff] }
 0x45a   :  { %7363 = vmatpush1.bf16.msra.mxu1 %v13383_v29  ;;  %5581 = vmatprep.mubr.f32.mxu1 %v13384_v61  ;;  %v13391_v29 = vld [vmem:[#allocation270_spill] sm:$0xff]  ;;  %v13392_v61 = vld [vmem:[#allocation271_spill] sm:$0xff] }
 0x45b   :  { %3755 = vmatmul.mubr.f32.gmra.mrb[144].mxu0 %v13385_v46  ;;  %7364 = vmatprep.subr.bf16.mxu1 %v12936_v16  ;;  %v13393_v16 = vld [vmem:[#allocation195_spill] sm:$0xff] }
 0x45c   :  { %3760 = vmatprep.mubr.f32.mxu0 %v13386_v27 }
 0x45d   :  { %5583 = vmatmul.mubr.f32.gmra.mrb[112].mxu1 %v13387_v26  ;;  %v13394_v26 = vld [vmem:[#allocation272_spill] sm:$0xff] }
 0x45e   :  { %7366 = vmatpush1.bf16.msra.mxu1 %v13388_v17  ;;  %5588 = vmatprep.mubr.f32.mxu1 %v13207_v56  ;;  %v13395_v17 = vld [vmem:[#allocation273_spill] sm:$0xff]  ;;  %v13396_v56 = vld [vmem:[#allocation202_spill] sm:$0xff] }
 0x45f   :  { %3762 = vmatmul.mubr.f32.gmra.mrb[146].mxu0 %v13389_v23 }
 0x460   :  { %3767 = vmatprep.mubr.f32.mxu0 %v13390_v41  ;;  %v13398_v41 = vld [vmem:[#allocation274_spill] sm:$0xff] }
 0x461   :  { %5590 = vmatmul.mubr.f32.gmra.mrb[114].mxu1 %v13212_v59  ;;  %v13399_v59 = vld [vmem:[#allocation275_spill] sm:$0xff] }
 0x462   :  { %5595 = vmatprep.mubr.f32.mxu1 %v13213_v1  ;;  %v13400_v1 = vld [vmem:[#allocation212_spill] sm:$0xff] }
 0x463   :  { %3769 = vmatmul.mubr.f32.gmra.mrb[148].mxu0 %v13391_v29 }
 0x464   :  { %3774 = vmatprep.mubr.f32.mxu0 %v13392_v61  ;;  %v13401_v61 = vld [vmem:[#allocation276_spill] sm:$0xff] }
 0x465   :  { %5597 = vmatmul.mubr.f32.gmra.mrb[116].mxu1 %v13217_v48  ;;  %v13402_v48 = vld [vmem:[#allocation277_spill] sm:$0xff] }
 0x466   :  { %5602 = vmatprep.mubr.f32.mxu1 %v13393_v16  ;;  %v13403_v16 = vld [vmem:[#allocation278_spill] sm:$0xff] }
 0x467   :  { %3776 = vmatmul.mubr.f32.gmra.mrb[150].mxu0 %v13394_v26 }
 0x468   :  { %3781 = vmatprep.mubr.f32.mxu0 %v13395_v17 }
 0x469   :  { %5604 = vmatmul.mubr.f32.gmra.mrb[118].mxu1 %v13396_v56  ;;  %v13404_v56 = vld [vmem:[#allocation279_spill] sm:$0xff] }
 0x46a   :  { %5609 = vmatprep.mubr.f32.mxu1 %v13397_v52  ;;  %v13405_v52 = vld [vmem:[#allocation280_spill] sm:$0xff] }
 0x46b   :  { %3783 = vmatmul.mubr.f32.gmra.mrb[152].mxu0 %v13398_v41 }
 0x46c   :  { %3788 = vmatprep.mubr.f32.mxu0 %v13399_v59 }
 0x46d   :  { %5611 = vmatmul.mubr.f32.gmra.mrb[120].mxu1 %v13225_v36  ;;  %v13406_v36 = vld [vmem:[#allocation6_spill] sm:$0xff] }
 0x46e   :  { %5616 = vmatprep.mubr.f32.mxu1 %v13400_v1  ;;  %v13407_v1 = vld [vmem:[#allocation31_spill] sm:$0xff] }
 0x46f   :  { %3790 = vmatmul.mubr.f32.gmra.mrb[154].mxu0 %v13401_v61 }
 0x470   :  { %3795 = vmatprep.mubr.f32.mxu0 %v13402_v48 }
 0x471   :  { %5618 = vmatmul.mubr.f32.gmra.mrb[122].mxu1 %v13231_v10  ;;  %v13408_v10 = vld [vmem:[#allocation40_spill] sm:$0xff] }
 0x472   :  { %5623 = vmatprep.mubr.f32.mxu1 %v13232_v15  ;;  %v13409_v15 = vld [vmem:[#allocation43_spill] sm:$0xff] }
 0x473   :  { %3797 = vmatmul.mubr.f32.gmra.mrb[156].mxu0 %v13403_v16 }
 0x474   :  { %3802 = vmatprep.mubr.f32.mxu0 %v13404_v56 }
 0x475   :  { %5625 = vmatmul.mubr.f32.gmra.mrb[124].mxu1 %v13236_v9  ;;  %v13410_v9 = vld [vmem:[#allocation60_spill] sm:$0xff] }
 0x476   :  { %5630 = vmatprep.mubr.f32.mxu1 %v13237_v38 }
 0x477   :  { %3804 = vmatmul.mubr.f32.gmra.mrb[158].mxu0 %v13405_v52 }
 0x478   :  { %3939 = vmatprep.mubr.f32.mxu0 %v13406_v36  ;;  %v13411_v36 = vld [vmem:[#allocation65_spill] sm:$0xff] }
 0x479   :  { %5632 = vmatmul.mubr.f32.gmra.mrb[126].mxu1 %v13241_v50  ;;  %v13412_v50 = vld [vmem:[#allocation82_spill] sm:$0xff] }
 0x47a   :  { %5637 = vmatprep.mubr.f32.mxu1 %v13242_v57 }
 0x47b   :  { %3942 = vmatmul.mubr.f32.vlgmr.msra.gmra.mrb[32].mxu0 %v13407_v1  ;;  %v13413_v1 = vld [vmem:[#allocation88_spill] sm:$0xff] }
 0x47c   :  { %3948 = vmatprep.mubr.f32.mxu0 %v13408_v10  ;;  %v13414_v10 = vld [vmem:[#allocation91_spill] sm:$0xff] }
 0x47d   :  { %5639 = vmatmul.mubr.f32.gmra.mrb[0].mxu1 %v13245_v22 }
 0x47e   :  { %5644 = vmatprep.mubr.f32.mxu1 %v13246_v5 }
 0x47f   :  { %3951 = vmatmul.mubr.f32.gmra.mrb[34].mxu0 %v13409_v15  ;;  %v13415_v15 = vld [vmem:[#allocation97_spill] sm:$0xff] }
 0x480   :  { %3957 = vmatprep.mubr.f32.mxu0 %v13410_v9  ;;  %v13416_v9 = vld [vmem:[#allocation99_spill] sm:$0xff] }
 0x481   :  { %5646 = vmatmul.mubr.f32.gmra.mrb[2].mxu1 %v13249_v53 }
 0x482   :  { %5651 = vmatprep.mubr.f32.mxu1 %v13250_v54 }
 0x483   :  { %3960 = vmatmul.mubr.f32.gmra.mrb[36].mxu0 %v13411_v36  ;;  %v13418_v36 = vld [vmem:[#allocation107_spill] sm:$0xff] }
 0x484   :  { %3966 = vmatprep.mubr.f32.mxu0 %v13412_v50  ;;  %v13417_v50 = vld [vmem:[#allocation105_spill] sm:$0xff] }
 0x485   :  { %5653 = vmatmul.mubr.f32.gmra.mrb[4].mxu1 %v13253_v42 }
 0x486   :  { %5658 = vmatprep.mubr.f32.mxu1 %v13254_v34 }
 0x487   :  { %3969 = vmatmul.mubr.f32.gmra.mrb[38].mxu0 %v13413_v1  ;;  %v13419_v1 = vld [vmem:[#allocation114_spill] sm:$0xff] }
 0x488   :  { %3975 = vmatprep.mubr.f32.mxu0 %v13414_v10  ;;  %v13420_v10 = vld [vmem:[#allocation116_spill] sm:$0xff] }
 0x489   :  { %5660 = vmatmul.mubr.f32.gmra.mrb[6].mxu1 %v13257_v51 }
 0x48a   :  { %5665 = vmatprep.mubr.f32.mxu1 %v13258_v6 }
 0x48b   :  { %3978 = vmatmul.mubr.f32.gmra.mrb[40].mxu0 %v13415_v15  ;;  %v13421_v15 = vld [vmem:[#allocation121_spill] sm:$0xff] }
 0x48c   :  { %3984 = vmatprep.mubr.f32.mxu0 %v13416_v9  ;;  %v13422_v9 = vld [vmem:[#allocation123_spill] sm:$0xff] }
 0x48d   :  { %5667 = vmatmul.mubr.f32.gmra.mrb[8].mxu1 %v13261_v12 }
 0x48e   :  { %5672 = vmatprep.mubr.f32.mxu1 %v13262_v37 }
 0x48f   :  { %3987 = vmatmul.mubr.f32.gmra.mrb[42].mxu0 %v13417_v50  ;;  %v13423_v50 = vld [vmem:[#allocation129_spill] sm:$0xff] }
 0x490   :  { %3993 = vmatprep.mubr.f32.mxu0 %v13418_v36  ;;  %v13424_v36 = vld [vmem:[#allocation131_spill] sm:$0xff] }
 0x491   :  { %5674 = vmatmul.mubr.f32.gmra.mrb[10].mxu1 %v13265_v3 }
 0x492   :  { %5679 = vmatprep.mubr.f32.mxu1 %v13266_v30 }
 0x493   :  { %3996 = vmatmul.mubr.f32.gmra.mrb[44].mxu0 %v13419_v1  ;;  %v13425_v1 = vld [vmem:[#allocation137_spill] sm:$0xff] }
 0x494   :  { %4002 = vmatprep.mubr.f32.mxu0 %v13420_v10  ;;  %v13426_v10 = vld [vmem:[#allocation139_spill] sm:$0xff] }
 0x495   :  { %5681 = vmatmul.mubr.f32.gmra.mrb[12].mxu1 %v13269_v39 }
 0x496   :  { %5686 = vmatprep.mubr.f32.mxu1 %v13270_v43 }
 0x497   :  { %4005 = vmatmul.mubr.f32.gmra.mrb[46].mxu0 %v13421_v15  ;;  %v13427_v15 = vld [vmem:[#allocation145_spill] sm:$0xff] }
 0x498   :  { %4011 = vmatprep.mubr.f32.mxu0 %v13422_v9  ;;  %v13428_v9 = vld [vmem:[#allocation147_spill] sm:$0xff] }
 0x499   :  { %5688 = vmatmul.mubr.f32.gmra.mrb[14].mxu1 %v13273_v31 }
 0x49a   :  { %5693 = vmatprep.mubr.f32.mxu1 %v13274_v25 }
 0x49b   :  { %4014 = vmatmul.mubr.f32.gmra.mrb[48].mxu0 %v13423_v50  ;;  %v13429_v50 = vld [vmem:[#allocation154_spill] sm:$0xff] }
 0x49c   :  { %4020 = vmatprep.mubr.f32.mxu0 %v13424_v36  ;;  %v13430_v36 = vld [vmem:[#allocation156_spill] sm:$0xff] }
 0x49d   :  { %5695 = vmatmul.mubr.f32.gmra.mrb[16].mxu1 %v13277_v55 }
 0x49e   :  { %5700 = vmatprep.mubr.f32.mxu1 %v13278_v24 }
 0x49f   :  { %4023 = vmatmul.mubr.f32.gmra.mrb[50].mxu0 %v13425_v1 }
 0x4a0   :  { %4029 = vmatprep.mubr.f32.mxu0 %v13426_v10  ;;  %v13432_v10 = vld [vmem:[#allocation161_spill] sm:$0xff] }
 0x4a1   :  { %5702 = vmatmul.mubr.f32.gmra.mrb[18].mxu1 %v13281_v60 }
 0x4a2   :  { %5707 = vmatprep.mubr.f32.mxu1 %v13282_v13 }
 0x4a3   :  { %4032 = vmatmul.mubr.f32.gmra.mrb[52].mxu0 %v13427_v15  ;;  %v13433_v15 = vld [vmem:[#allocation163_spill] sm:$0xff] }
 0x4a4   :  { %4038 = vmatprep.mubr.f32.mxu0 %v13428_v9 }
 0x4a5   :  { %5709 = vmatmul.mubr.f32.gmra.mrb[20].mxu1 %v13285_v14 }
 0x4a6   :  { %5714 = vmatprep.mubr.f32.mxu1 %v13286_v19  ;;  %v13436_v19 = vld [vmem:[#allocation171_spill] sm:$0xff] }
 0x4a7   :  { %4041 = vmatmul.mubr.f32.gmra.mrb[54].mxu0 %v13429_v50  ;;  %v13435_v50 = vld [vmem:[#allocation169_spill] sm:$0xff] }
 0x4a8   :  { %4047 = vmatprep.mubr.f32.mxu0 %v13430_v36 }
 0x4a9   :  { %5716 = vmatmul.mubr.f32.gmra.mrb[22].mxu1 %v13289_v7 }
 0x4aa   :  { %5721 = vmatprep.mubr.f32.mxu1 %v13290_v40  ;;  %v11179_v1 = vpop.f32.mrb[78].mxu0 }
 0x4ab   :  { %13431 = vst [vmem:[#allocation11_spill] sm:$0xff] %v11179_v1  ;;  %4050 = vmatmul.mubr.f32.gmra.mrb[56].mxu0 %v13432_v10  ;;  %v3527_v13 = vpop.f32.mrb[79].mxu0 }
 0x4ac   :  { %4056 = vmatprep.mubr.f32.mxu0 %v13433_v15  ;;  %v13438_v13 = vld [vmem:[#allocation177_spill] sm:$0xff]  ;;  %v13439_v15 = vld [vmem:[#allocation179_spill] sm:$0xff] }
 0x4ad   :  { %5723 = vmatmul.mubr.f32.gmra.mrb[24].mxu1 %v13293_v28 }
 0x4ae   :  { %5728 = vmatprep.mubr.f32.mxu1 %v13294_v63  ;;  %v11185_v9 = vpop.f32.mrb[80].mxu0 }
 0x4af   :  { %13434 = vst [vmem:[#allocation9_spill] sm:$0xff] %v11185_v9  ;;  %4059 = vmatmul.mubr.f32.gmra.mrb[58].mxu0 %v13435_v50  ;;  %v3534_v36 = vpop.f32.mrb[81].mxu0  ;;  %v13441_v50 = vld [vmem:[#allocation185_spill] sm:$0xff] }
 0x4b0   :  { %4065 = vmatprep.mubr.f32.mxu0 %v13436_v19  ;;  %v13442_v36 = vld [vmem:[#allocation187_spill] sm:$0xff] }
 0x4b1   :  { %5730 = vmatmul.mubr.f32.gmra.mrb[26].mxu1 %v13297_v44 }
 0x4b2   :  { %5735 = vmatprep.mubr.f32.mxu1 %v13298_v21  ;;  %v11191_v1 = vpop.f32.mrb[82].mxu0 }
 0x4b3   :  { %13437 = vst [vmem:[#allocation15_spill] sm:$0xff] %v11191_v1  ;;  %4068 = vmatmul.mubr.f32.gmra.mrb[60].mxu0 %v13438_v13  ;;  %v3541_v10 = vpop.f32.mrb[83].mxu0  ;;  %v13444_v13 = vld [vmem:[#allocation194_spill] sm:$0xff] }
 0x4b4   :  { %4074 = vmatprep.mubr.f32.mxu0 %v13439_v15  ;;  %v13445_v15 = vld [vmem:[#allocation196_spill] sm:$0xff] }
 0x4b5   :  { %5737 = vmatmul.mubr.f32.gmra.mrb[28].mxu1 %v13301_v18 }
 0x4b6   :  { %5742 = vmatprep.mubr.f32.mxu1 %v13302_v4  ;;  %v11197_v9 = vpop.f32.mrb[84].mxu0 }
 0x4b7   :  { %13440 = vst [vmem:[#allocation13_spill] sm:$0xff] %v11197_v9  ;;  %4077 = vmatmul.mubr.f32.gmra.mrb[62].mxu0 %v13441_v50  ;;  %v3548_v19 = vpop.f32.mrb[85].mxu0  ;;  %v13447_v50 = vld [vmem:[#allocation201_spill] sm:$0xff] }
 0x4b8   :  { %4083 = vmatprep.mubr.f32.mxu0 %v13442_v36  ;;  %v13448_v36 = vld [vmem:[#allocation203_spill] sm:$0xff] }
 0x4b9   :  { %5744 = vmatmul.mubr.f32.gmra.mrb[30].mxu1 %v13305_v0 }
 0x4ba   :  { %5749 = vmatprep.mubr.f32.mxu1 %v13306_v11  ;;  %v11203_v1 = vpop.f32.mrb[86].mxu0 }
 0x4bb   :  { %13443 = vst [vmem:[#allocation20_spill] sm:$0xff] %v11203_v1  ;;  %4086 = vmatmul.mubr.f32.gmra.mrb[64].mxu0 %v13444_v13  ;;  %v3555_v10 = vpop.f32.mrb[87].mxu0  ;;  %v13450_v13 = vld [vmem:[#allocation209_spill] sm:$0xff] }
 0x4bc   :  { %4092 = vmatprep.mubr.f32.mxu0 %v13445_v15  ;;  %v13451_v15 = vld [vmem:[#allocation211_spill] sm:$0xff] }
 0x4bd   :  { %5751 = vmatmul.mubr.f32.gmra.mrb[32].mxu1 %v13309_v2 }
 0x4be   :  { %5756 = vmatprep.mubr.f32.mxu1 %v13310_v47  ;;  %v11209_v9 = vpop.f32.mrb[88].mxu0 }
 0x4bf   :  { %13446 = vst [vmem:[#allocation17_spill] sm:$0xff] %v11209_v9  ;;  %4095 = vmatmul.mubr.f32.gmra.mrb[66].mxu0 %v13447_v50  ;;  %v3562_v19 = vpop.f32.mrb[89].mxu0  ;;  %v13453_v50 = vld [vmem:[#allocation217_spill] sm:$0xff] }
 0x4c0   :  { %4101 = vmatprep.mubr.f32.mxu0 %v13448_v36  ;;  %v13454_v36 = vld [vmem:[#allocation219_spill] sm:$0xff] }
 0x4c1   :  { %5758 = vmatmul.mubr.f32.gmra.mrb[34].mxu1 %v13313_v58 }
 0x4c2   :  { %5763 = vmatprep.mubr.f32.mxu1 %v13314_v33  ;;  %v11215_v1 = vpop.f32.mrb[90].mxu0 }
 0x4c3   :  { %13449 = vst [vmem:[#allocation19_spill] sm:$0xff] %v11215_v1  ;;  %4104 = vmatmul.mubr.f32.gmra.mrb[68].mxu0 %v13450_v13  ;;  %v3569_v10 = vpop.f32.mrb[91].mxu0  ;;  %v13456_v13 = vld [vmem:[#allocation224_spill] sm:$0xff] }
 0x4c4   :  { %4110 = vmatprep.mubr.f32.mxu0 %v13451_v15  ;;  %v13457_v15 = vld [vmem:[#allocation226_spill] sm:$0xff] }
 0x4c5   :  { %5765 = vmatmul.mubr.f32.gmra.mrb[36].mxu1 %v13316_v35 }
 0x4c6   :  { %5770 = vmatprep.mubr.f32.mxu1 %v13317_v62  ;;  %v11221_v9 = vpop.f32.mrb[92].mxu0 }
 0x4c7   :  { %13452 = vst [vmem:[#allocation24_spill] sm:$0xff] %v11221_v9  ;;  %4113 = vmatmul.mubr.f32.gmra.mrb[70].mxu0 %v13453_v50  ;;  %v3576_v19 = vpop.f32.mrb[93].mxu0  ;;  %v13459_v50 = vld [vmem:[#allocation230_spill] sm:$0xff] }
 0x4c8   :  { %4119 = vmatprep.mubr.f32.mxu0 %v13454_v36  ;;  %v13460_v36 = vld [vmem:[#allocation232_spill] sm:$0xff] }
 0x4c9   :  { %5772 = vmatmul.mubr.f32.gmra.mrb[38].mxu1 %v13319_v49  ;;  %v13461_v49 = vld [vmem:[#allocation241_spill] sm:$0xff] }
 0x4ca   :  { %5777 = vmatprep.mubr.f32.mxu1 %v13320_v20  ;;  %v11227_v1 = vpop.f32.mrb[94].mxu0  ;;  %v13462_v20 = vld [vmem:[#allocation242_spill] sm:$0xff] }
 0x4cb   :  { %13455 = vst [vmem:[#allocation28_spill] sm:$0xff] %v11227_v1  ;;  %4122 = vmatmul.mubr.f32.gmra.mrb[72].mxu0 %v13456_v13  ;;  %v3583_v10 = vpop.f32.mrb[95].mxu0  ;;  %v13464_v13 = vld [vmem:[#allocation235_spill] sm:$0xff] }
 0x4cc   :  { %4128 = vmatprep.mubr.f32.mxu0 %v13457_v15  ;;  %v13465_v15 = vld [vmem:[#allocation244_spill] sm:$0xff] }
 0x4cd   :  { %5779 = vmatmul.mubr.f32.gmra.mrb[40].mxu1 %v13322_v45  ;;  %v13466_v45 = vld [vmem:[#allocation245_spill] sm:$0xff] }
 0x4ce   :  { %5784 = vmatprep.mubr.f32.mxu1 %v13323_v32  ;;  %v11233_v9 = vpop.f32.mrb[96].mxu0 }
 0x4cf   :  { %13458 = vst [vmem:[#allocation23_spill] sm:$0xff] %v11233_v9  ;;  %4131 = vmatmul.mubr.f32.gmra.mrb[74].mxu0 %v13459_v50  ;;  %v3590_v19 = vpop.f32.mrb[97].mxu0  ;;  %v13468_v50 = vld [vmem:[#allocation246_spill] sm:$0xff] }
 0x4d0   :  { %4137 = vmatprep.mubr.f32.mxu0 %v13460_v36  ;;  %v13469_v19 = vld [vmem:[#allocation247_spill] sm:$0xff] }
 0x4d1   :  { %5786 = vmatmul.mubr.f32.gmra.mrb[42].mxu1 %v13461_v49 }
 0x4d2   :  { %5791 = vmatprep.mubr.f32.mxu1 %v13462_v20  ;;  %v11239_v1 = vpop.f32.mrb[98].mxu0  ;;  %v13471_v20 = vld [vmem:[#allocation248_spill] sm:$0xff] }
 0x4d3   :  { %13463 = vst [vmem:[#allocation33_spill] sm:$0xff] %v11239_v1  ;;  %4140 = vmatmul.mubr.f32.gmra.mrb[76].mxu0 %v13464_v13  ;;  %v3597_v10 = vpop.f32.mrb[99].mxu0  ;;  %v13472_v1 = vld [vmem:[#allocation249_spill] sm:$0xff] }
 0x4d5   :  { %5793 = vmatmul.mubr.f32.gmra.mrb[44].mxu1 %v13465_v15  ;;  %v13474_v15 = vld [vmem:[#allocation250_spill] sm:$0xff] }
 0x4d6   :  { %5798 = vmatprep.mubr.f32.mxu1 %v13466_v45  ;;  %v11244_v32 = vpop.f32.mrb[100].mxu0  ;;  %v13475_v45 = vld [vmem:[#allocation251_spill] sm:$0xff] }
 0x4d7   :  { %13467 = vst [vmem:[#allocation30_spill] sm:$0xff] %v11244_v32  ;;  %v3604_v9 = vpop.f32.mrb[101].mxu0 }
 0x4d9   :  { %5800 = vmatmul.mubr.f32.gmra.mrb[46].mxu1 %v13468_v50  ;;  %v13477_v50 = vld [vmem:[#allocation252_spill] sm:$0xff] }
 0x4da   :  { %5805 = vmatprep.mubr.f32.mxu1 %v13469_v19  ;;  %v11248_v36 = vpop.f32.mrb[102].mxu0  ;;  %v13478_v19 = vld [vmem:[#allocation253_spill] sm:$0xff] }
 0x4db   :  { %13470 = vst [vmem:[#allocation39_spill] sm:$0xff] %v11248_v36  ;;  %v3611_v49 = vpop.f32.mrb[103].mxu0 }
 0x4dd   :  { %5807 = vmatmul.mubr.f32.gmra.mrb[48].mxu1 %v13471_v20  ;;  %v13480_v20 = vld [vmem:[#allocation254_spill] sm:$0xff] }
 0x4de   :  { %5812 = vmatprep.mubr.f32.mxu1 %v13472_v1  ;;  %v11252_v13 = vpop.f32.mrb[104].mxu0  ;;  %v13481_v1 = vld [vmem:[#allocation255_spill] sm:$0xff] }
 0x4df   :  { %13473 = vst [vmem:[#allocation36_spill] sm:$0xff] %v11252_v13  ;;  %v3618_v10 = vpop.f32.mrb[105].mxu0 }
 0x4e1   :  { %5814 = vmatmul.mubr.f32.gmra.mrb[50].mxu1 %v13474_v15  ;;  %v13483_v15 = vld [vmem:[#allocation256_spill] sm:$0xff] }
 0x4e2   :  { %5819 = vmatprep.mubr.f32.mxu1 %v13475_v45  ;;  %v11256_v32 = vpop.f32.mrb[106].mxu0  ;;  %v13484_v45 = vld [vmem:[#allocation257_spill] sm:$0xff] }
 0x4e3   :  { %13476 = vst [vmem:[#allocation45_spill] sm:$0xff] %v11256_v32  ;;  %v3625_v9 = vpop.f32.mrb[107].mxu0 }
 0x4e5   :  { %5821 = vmatmul.mubr.f32.gmra.mrb[52].mxu1 %v13477_v50  ;;  %v13486_v50 = vld [vmem:[#allocation258_spill] sm:$0xff] }
 0x4e6   :  { %5826 = vmatprep.mubr.f32.mxu1 %v13478_v19  ;;  %v11260_v36 = vpop.f32.mrb[108].mxu0  ;;  %v13487_v19 = vld [vmem:[#allocation259_spill] sm:$0xff] }
 0x4e7   :  { %13479 = vst [vmem:[#allocation42_spill] sm:$0xff] %v11260_v36  ;;  %v3632_v49 = vpop.f32.mrb[109].mxu0 }
 0x4e9   :  { %5828 = vmatmul.mubr.f32.gmra.mrb[54].mxu1 %v13480_v20  ;;  %v13489_v20 = vld [vmem:[#allocation260_spill] sm:$0xff] }
 0x4ea   :  { %5833 = vmatprep.mubr.f32.mxu1 %v13481_v1  ;;  %v11264_v13 = vpop.f32.mrb[110].mxu0  ;;  %v13490_v1 = vld [vmem:[#allocation261_spill] sm:$0xff] }
 0x4eb   :  { %13482 = vst [vmem:[#allocation50_spill] sm:$0xff] %v11264_v13  ;;  %v3639_v10 = vpop.f32.mrb[111].mxu0 }
 0x4ed   :  { %5835 = vmatmul.mubr.f32.gmra.mrb[56].mxu1 %v13483_v15  ;;  %v13492_v15 = vld [vmem:[#allocation262_spill] sm:$0xff] }
 0x4ee   :  { %5840 = vmatprep.mubr.f32.mxu1 %v13484_v45  ;;  %v11268_v32 = vpop.f32.mrb[112].mxu0 }
 0x4ef   :  { %13485 = vst [vmem:[#allocation47_spill] sm:$0xff] %v11268_v32  ;;  %v3646_v9 = vpop.f32.mrb[113].mxu0 }
 0x4f1   :  { %5842 = vmatmul.mubr.f32.gmra.mrb[58].mxu1 %v13486_v50  ;;  %v13494_v50 = vld [vmem:[#allocation264_spill] sm:$0xff] }
 0x4f2   :  { %5847 = vmatprep.mubr.f32.mxu1 %v13487_v19  ;;  %v11272_v36 = vpop.f32.mrb[114].mxu0  ;;  %v13495_v19 = vld [vmem:[#allocation265_spill] sm:$0xff] }
 0x4f3   :  { %13488 = vst [vmem:[#allocation56_spill] sm:$0xff] %v11272_v36  ;;  %v3653_v49 = vpop.f32.mrb[115].mxu0 }
 0x4f5   :  { %5849 = vmatmul.mubr.f32.gmra.mrb[60].mxu1 %v13489_v20 }
 0x4f6   :  { %5854 = vmatprep.mubr.f32.mxu1 %v13490_v1  ;;  %v11276_v13 = vpop.f32.mrb[116].mxu0 }
 0x4f7   :  { %13491 = vst [vmem:[#allocation53_spill] sm:$0xff] %v11276_v13  ;;  %v3660_v10 = vpop.f32.mrb[117].mxu0 }
 0x4f9   :  { %5856 = vmatmul.mubr.f32.gmra.mrb[62].mxu1 %v13492_v15 }
 0x4fa   :  { %5861 = vmatprep.mubr.f32.mxu1 %v13376_v8  ;;  %v11280_v32 = vpop.f32.mrb[118].mxu0  ;;  %v13498_v8 = vld [vmem:[#allocation269_spill] sm:$0xff] }
 0x4fb   :  { %13493 = vst [vmem:[#allocation62_spill] sm:$0xff] %v11280_v32  ;;  %v3667_v9 = vpop.f32.mrb[119].mxu0 }
 0x4fd   :  { %5863 = vmatmul.mubr.f32.gmra.mrb[64].mxu1 %v13494_v50 }
 0x4fe   :  { %5868 = vmatprep.mubr.f32.mxu1 %v13495_v19  ;;  %v11284_v36 = vpop.f32.mrb[120].mxu0  ;;  %v13500_v19 = vld [vmem:[#allocation271_spill] sm:$0xff] }
 0x4ff   :  { %13496 = vst [vmem:[#allocation58_spill] sm:$0xff] %v11284_v36  ;;  %v3674_v49 = vpop.f32.mrb[121].mxu0 }
 0x501   :  { %5870 = vmatmul.mubr.f32.gmra.mrb[66].mxu1 %v13385_v46 }
 0x502   :  { %5875 = vmatprep.mubr.f32.mxu1 %v13386_v27  ;;  %v11288_v13 = vpop.f32.mrb[122].mxu0 }
 0x503   :  { %13497 = vst [vmem:[#allocation67_spill] sm:$0xff] %v11288_v13  ;;  %v3681_v10 = vpop.f32.mrb[123].mxu0 }
 0x505   :  { %5877 = vmatmul.mubr.f32.gmra.mrb[68].mxu1 %v13389_v23 }
 0x506   :  { %5882 = vmatprep.mubr.f32.mxu1 %v13498_v8  ;;  %v11292_v32 = vpop.f32.mrb[124].mxu0 }
 0x507   :  { %13499 = vst [vmem:[#allocation64_spill] sm:$0xff] %v11292_v32  ;;  %v3688_v9 = vpop.f32.mrb[125].mxu0 }
 0x509   :  { %5884 = vmatmul.mubr.f32.gmra.mrb[70].mxu1 %v13391_v29 }
 0x50a   :  { %5889 = vmatprep.mubr.f32.mxu1 %v13500_v19  ;;  %v11296_v36 = vpop.f32.mrb[126].mxu0 }
 0x50b   :  { %13501 = vst [vmem:[#allocation73_spill] sm:$0xff] %v11296_v36  ;;  %v3695_v49 = vpop.f32.mrb[127].mxu0 }
 0x50d   :  { %5891 = vmatmul.mubr.f32.gmra.mrb[72].mxu1 %v13394_v26 }
 0x50e   :  { %5896 = vmatprep.mubr.f32.mxu1 %v13395_v17  ;;  %v11300_v13 = vpop.f32.mrb[128].mxu0 }
 0x50f   :  { %13502 = vst [vmem:[#allocation70_spill] sm:$0xff] %v11300_v13  ;;  %v3702_v10 = vpop.f32.mrb[129].mxu0 }
 0x511   :  { %5898 = vmatmul.mubr.f32.gmra.mrb[74].mxu1 %v13398_v41 }
 0x512   :  { %5903 = vmatprep.mubr.f32.mxu1 %v13399_v59  ;;  %v11304_v32 = vpop.f32.mrb[130].mxu0  ;;  %v13506_v59 = vld [vmem:[#allocation5_spill] sm:$0xff] }
 0x513   :  { %13503 = vst [vmem:[#allocation78_spill] sm:$0xff] %v11304_v32  ;;  %v3709_v9 = vpop.f32.mrb[131].mxu0 }
 0x515   :  { %5905 = vmatmul.mubr.f32.gmra.mrb[76].mxu1 %v13401_v61  ;;  %v13508_v61 = vld [vmem:[#allocation25_spill] sm:$0xff] }
 0x516   :  { %5910 = vmatprep.mubr.f32.mxu1 %v13402_v48  ;;  %v11308_v36 = vpop.f32.mrb[132].mxu0  ;;  %v13509_v48 = vld [vmem:[#allocation34_spill] sm:$0xff] }
 0x517   :  { %13504 = vst [vmem:[#allocation75_spill] sm:$0xff] %v11308_v36  ;;  %v3716_v49 = vpop.f32.mrb[133].mxu0 }
 0x519   :  { %5912 = vmatmul.mubr.f32.gmra.mrb[78].mxu1 %v13403_v16  ;;  %v13511_v16 = vld [vmem:[#allocation37_spill] sm:$0xff] }
 0x51a   :  { %5917 = vmatprep.mubr.f32.mxu1 %v13404_v56  ;;  %v11312_v13 = vpop.f32.mrb[134].mxu0  ;;  %v13512_v56 = vld [vmem:[#allocation48_spill] sm:$0xff] }
 0x51b   :  { %13505 = vst [vmem:[#allocation84_spill] sm:$0xff] %v11312_v13  ;;  %v3723_v10 = vpop.f32.mrb[135].mxu0 }
 0x51d   :  { %5919 = vmatmul.mubr.f32.gmra.mrb[80].mxu1 %v13405_v52  ;;  %v13514_v52 = vld [vmem:[#allocation54_spill] sm:$0xff] }
 0x51e   :  { %6021 = vmatprep.mubr.f32.mxu1 %v13506_v59  ;;  %v11316_v32 = vpop.f32.mrb[136].mxu0  ;;  %v13515_v59 = vld [vmem:[#allocation71_spill] sm:$0xff] }
 0x51f   :  { %13507 = vst [vmem:[#allocation81_spill] sm:$0xff] %v11316_v32  ;;  %v3730_v9 = vpop.f32.mrb[137].mxu0 }
 0x521   :  { %6023 = vmatmul.mubr.f32.vlgmr.msra.gmra.mrb[82].mxu1 %v13508_v61  ;;  %v13517_v61 = vld [vmem:[#allocation79_spill] sm:$0xff] }
 0x522   :  { %6028 = vmatprep.mubr.f32.mxu1 %v13509_v48  ;;  %v11320_v36 = vpop.f32.mrb[138].mxu0  ;;  %v13518_v48 = vld [vmem:[#allocation85_spill] sm:$0xff] }
 0x523   :  { %13510 = vst [vmem:[#allocation90_spill] sm:$0xff] %v11320_v36  ;;  %v3737_v49 = vpop.f32.mrb[139].mxu0 }
 0x525   :  { %6030 = vmatmul.mubr.f32.gmra.mrb[84].mxu1 %v13511_v16  ;;  %v13520_v16 = vld [vmem:[#allocation92_spill] sm:$0xff] }
 0x526   :  { %6035 = vmatprep.mubr.f32.mxu1 %v13512_v56  ;;  %v11324_v13 = vpop.f32.mrb[140].mxu0  ;;  %v13521_v56 = vld [vmem:[#allocation94_spill] sm:$0xff] }
 0x527   :  { %13513 = vst [vmem:[#allocation87_spill] sm:$0xff] %v11324_v13  ;;  %v3744_v10 = vpop.f32.mrb[141].mxu0 }
 0x529   :  { %6037 = vmatmul.mubr.f32.gmra.mrb[86].mxu1 %v13514_v52  ;;  %v13523_v52 = vld [vmem:[#allocation98_spill] sm:$0xff] }
 0x52a   :  { %6042 = vmatprep.mubr.f32.mxu1 %v13515_v59  ;;  %v11328_v32 = vpop.f32.mrb[142].mxu0  ;;  %v13524_v59 = vld [vmem:[#allocation100_spill] sm:$0xff] }
 0x52b   :  { %13516 = vst [vmem:[#allocation8_spill] sm:$0xff] %v11328_v32  ;;  %v3751_v9 = vpop.f32.mrb[143].mxu0 }
 0x52d   :  { %6044 = vmatmul.mubr.f32.gmra.mrb[88].mxu1 %v13517_v61  ;;  %v13526_v61 = vld [vmem:[#allocation106_spill] sm:$0xff] }
 0x52e   :  { %6049 = vmatprep.mubr.f32.mxu1 %v13518_v48  ;;  %v11332_v36 = vpop.f32.mrb[144].mxu0  ;;  %v13527_v48 = vld [vmem:[#allocation108_spill] sm:$0xff] }
 0x52f   :  { %13519 = vst [vmem:[#allocation12_spill] sm:$0xff] %v11332_v36  ;;  %v3758_v49 = vpop.f32.mrb[145].mxu0 }
 0x531   :  { %6051 = vmatmul.mubr.f32.gmra.mrb[90].mxu1 %v13520_v16  ;;  %v13529_v16 = vld [vmem:[#allocation113_spill] sm:$0xff] }
 0x532   :  { %6056 = vmatprep.mubr.f32.mxu1 %v13521_v56  ;;  %v11336_v13 = vpop.f32.mrb[146].mxu0  ;;  %v13530_v56 = vld [vmem:[#allocation115_spill] sm:$0xff] }
 0x533   :  { %13522 = vst [vmem:[#allocation59_spill] sm:$0xff] %v11336_v13  ;;  %v3765_v10 = vpop.f32.mrb[147].mxu0 }
 0x535   :  { %6058 = vmatmul.mubr.f32.gmra.mrb[92].mxu1 %v13523_v52  ;;  %v13532_v52 = vld [vmem:[#allocation122_spill] sm:$0xff] }
 0x536   :  { %6063 = vmatprep.mubr.f32.mxu1 %v13524_v59  ;;  %v11340_v32 = vpop.f32.mrb[148].mxu0  ;;  %v13533_v59 = vld [vmem:[#allocation124_spill] sm:$0xff] }
 0x537   :  { %13525 = vst [vmem:[#allocation95_spill] sm:$0xff] %v11340_v32  ;;  %v3772_v9 = vpop.f32.mrb[149].mxu0 }
 0x539   :  { %6065 = vmatmul.mubr.f32.gmra.mrb[94].mxu1 %v13526_v61  ;;  %v13535_v61 = vld [vmem:[#allocation130_spill] sm:$0xff] }
 0x53a   :  { %6070 = vmatprep.mubr.f32.mxu1 %v13527_v48  ;;  %v11344_v36 = vpop.f32.mrb[150].mxu0  ;;  %v13536_v48 = vld [vmem:[#allocation132_spill] sm:$0xff] }
 0x53b   :  { %13528 = vst [vmem:[#allocation16_spill] sm:$0xff] %v11344_v36  ;;  %v3779_v49 = vpop.f32.mrb[151].mxu0 }
 0x53d   :  { %6072 = vmatmul.mubr.f32.gmra.mrb[96].mxu1 %v13529_v16  ;;  %v13538_v16 = vld [vmem:[#allocation138_spill] sm:$0xff] }
 0x53e   :  { %6077 = vmatprep.mubr.f32.mxu1 %v13530_v56  ;;  %v11348_v13 = vpop.f32.mrb[152].mxu0 }
 0x53f   :  { %13531 = vst [vmem:[#allocation101_spill] sm:$0xff] %v11348_v13  ;;  %v3786_v10 = vpop.f32.mrb[153].mxu0  ;;  %v13540_v13 = vld [vmem:[#allocation140_spill] sm:$0xff] }
 0x541   :  { %6079 = vmatmul.mubr.f32.gmra.mrb[98].mxu1 %v13532_v52  ;;  %v13541_v52 = vld [vmem:[#allocation146_spill] sm:$0xff] }
 0x542   :  { %6084 = vmatprep.mubr.f32.mxu1 %v13533_v59  ;;  %v11352_v32 = vpop.f32.mrb[154].mxu0 }
 0x543   :  { %13534 = vst [vmem:[#allocation103_spill] sm:$0xff] %v11352_v32  ;;  %v3793_v9 = vpop.f32.mrb[155].mxu0  ;;  %v13542_v32 = vld [vmem:[#allocation148_spill] sm:$0xff] }
 0x545   :  { %6086 = vmatmul.mubr.f32.gmra.mrb[100].mxu1 %v13535_v61  ;;  %v13543_v61 = vld [vmem:[#allocation153_spill] sm:$0xff] }
 0x546   :  { %6091 = vmatprep.mubr.f32.mxu1 %v13536_v48  ;;  %v11356_v36 = vpop.f32.mrb[156].mxu0 }
 0x547   :  { %13537 = vst [vmem:[#allocation22_spill] sm:$0xff] %v11356_v36  ;;  %v3800_v49 = vpop.f32.mrb[157].mxu0  ;;  %v13544_v36 = vld [vmem:[#allocation155_spill] sm:$0xff] }
 0x549   :  { %6093 = vmatmul.mubr.f32.gmra.mrb[102].mxu1 %v13538_v16  ;;  %v13545_v16 = vld [vmem:[#allocation162_spill] sm:$0xff] }
 0x54a   :  { %v11359_v56 = vpop.f32.mrb[158].mxu0  ;;  %6098 = vmatprep.mubr.f32.mxu1 %v13540_v13  ;;  %v13546_v13 = vld [vmem:[#allocation164_spill] sm:$0xff] }
 0x54b   :  { %13539 = vst [vmem:[#allocation109_spill] sm:$0xff] %v11359_v56  ;;  %v3807_v10 = vpop.f32.mrb[159].mxu0 }
 0x54d   :  { %6100 = vmatmul.mubr.f32.gmra.mrb[104].mxu1 %v13541_v52  ;;  %v13547_v52 = vld [vmem:[#allocation170_spill] sm:$0xff] }
 0x54e   :  { %v11363_v59 = vpop.f32.mrb[32].mxu0  ;;  %6105 = vmatprep.mubr.f32.mxu1 %v13542_v32  ;;  %v13548_v32 = vld [vmem:[#allocation172_spill] sm:$0xff] }
 0x54f   :  { %v3945_v9 = vpop.f32.mrb[33].mxu0 }
 0x551   :  { %6107 = vmatmul.mubr.f32.gmra.mrb[106].mxu1 %v13543_v61  ;;  %v13549_v61 = vld [vmem:[#allocation178_spill] sm:$0xff] }
 0x552   :  { %v11367_v48 = vpop.f32.mrb[34].mxu0  ;;  %6112 = vmatprep.mubr.f32.mxu1 %v13544_v36  ;;  %v13550_v36 = vld [vmem:[#allocation180_spill] sm:$0xff] }
 0x553   :  { %v3954_v49 = vpop.f32.mrb[35].mxu0 }
 0x555   :  { %6114 = vmatmul.mubr.f32.gmra.mrb[108].mxu1 %v13545_v16  ;;  %v13551_v16 = vld [vmem:[#allocation186_spill] sm:$0xff] }
 0x556   :  { %v11371_v56 = vpop.f32.mrb[36].mxu0  ;;  %6119 = vmatprep.mubr.f32.mxu1 %v13546_v13  ;;  %v13553_v13 = vld [vmem:[#allocation188_spill] sm:$0xff] }
 0x557   :  { %v3963_v10 = vpop.f32.mrb[37].mxu0 }
 0x559   :  { %6121 = vmatmul.mubr.f32.gmra.mrb[110].mxu1 %v13547_v52  ;;  %v13554_v52 = vld [vmem:[#allocation193_spill] sm:$0xff] }
 0x55a   :  { %v11375_v41 = vpop.f32.mrb[38].mxu0  ;;  %6126 = vmatprep.mubr.f32.mxu1 %v13548_v32  ;;  %v13556_v32 = vld [vmem:[#allocation195_spill] sm:$0xff] }
 0x55b   :  { %v3972_v9 = vpop.f32.mrb[39].mxu0 }
 0x55d   :  { %6128 = vmatmul.mubr.f32.gmra.mrb[112].mxu1 %v13549_v61  ;;  %v13557_v61 = vld [vmem:[#allocation202_spill] sm:$0xff] }
 0x55e   :  { %v11379_v17 = vpop.f32.mrb[40].mxu0  ;;  %6133 = vmatprep.mubr.f32.mxu1 %v13550_v36  ;;  %v13559_v36 = vld [vmem:[#allocation204_spill] sm:$0xff] }
 0x55f   :  { %v3981_v49 = vpop.f32.mrb[41].mxu0 }
 0x561   :  { %6135 = vmatmul.mubr.f32.gmra.mrb[114].mxu1 %v13551_v16  ;;  %v13560_v16 = vld [vmem:[#allocation210_spill] sm:$0xff] }
 0x562   :  { %v11383_v26 = vpop.f32.mrb[42].mxu0  ;;  %6140 = vmatprep.mubr.f32.mxu1 %v13553_v13  ;;  %v13561_v13 = vld [vmem:[#allocation212_spill] sm:$0xff] }
 0x563   :  { %13552 = vst [vmem:[#allocation111_spill] sm:$0xff] %v11383_v26  ;;  %v3990_v10 = vpop.f32.mrb[43].mxu0 }
 0x565   :  { %6142 = vmatmul.mubr.f32.gmra.mrb[116].mxu1 %v13554_v52  ;;  %v13562_v52 = vld [vmem:[#allocation218_spill] sm:$0xff] }
 0x566   :  { %v11387_v19 = vpop.f32.mrb[44].mxu0  ;;  %6147 = vmatprep.mubr.f32.mxu1 %v13556_v32  ;;  %v13563_v32 = vld [vmem:[#allocation220_spill] sm:$0xff] }
 0x567   :  { %13555 = vst [vmem:[#allocation21_spill] sm:$0xff] %v11387_v19  ;;  %v3999_v9 = vpop.f32.mrb[45].mxu0 }
 0x569   :  { %6149 = vmatmul.mubr.f32.gmra.mrb[118].mxu1 %v13557_v61  ;;  %v13564_v61 = vld [vmem:[#allocation225_spill] sm:$0xff] }
 0x56a   :  { %v11391_v29 = vpop.f32.mrb[46].mxu0  ;;  %6154 = vmatprep.mubr.f32.mxu1 %v13559_v36 }
 0x56b   :  { %13558 = vst [vmem:[#allocation117_spill] sm:$0xff] %v11391_v29  ;;  %v4008_v49 = vpop.f32.mrb[47].mxu0 }
 0x56c   :  { %v13565_v49 = vld [vmem:[#allocation231_spill] sm:$0xff] }
 0x56d   :  { %6156 = vmatmul.mubr.f32.gmra.mrb[120].mxu1 %v13560_v16 }
 0x56e   :  { %v11395_v26 = vpop.f32.mrb[48].mxu0  ;;  %6161 = vmatprep.mubr.f32.mxu1 %v13561_v13 }
 0x56f   :  { %v4017_v10 = vpop.f32.mrb[49].mxu0 }
 0x571   :  { %6163 = vmatmul.mubr.f32.gmra.mrb[122].mxu1 %v13562_v52 }
 0x572   :  { %v11399_v19 = vpop.f32.mrb[50].mxu0  ;;  %6168 = vmatprep.mubr.f32.mxu1 %v13563_v32 }
 0x573   :  { %v4026_v9 = vpop.f32.mrb[51].mxu0 }
 0x575   :  { %6170 = vmatmul.mubr.f32.gmra.mrb[124].mxu1 %v13564_v61 }
 0x576   :  { %v11403_v29 = vpop.f32.mrb[52].mxu0  ;;  %6175 = vmatprep.mubr.f32.mxu1 %v13237_v38 }
 0x577   :  { %v4035_v36 = vpop.f32.mrb[53].mxu0 }
 0x579   :  { %6177 = vmatmul.mubr.f32.gmra.mrb[126].mxu1 %v13565_v49  ;;  %v13588_v49 = vld [vmem:[#allocation259_spill] sm:$0xff] }
 0x57a   :  { %v11407_v16 = vpop.f32.mrb[54].mxu0  ;;  %6182 = vmatprep.mubr.f32.mxu1 %v13242_v57 }
 0x57b   :  { %v4044_v13 = vpop.f32.mrb[55].mxu0 }
 0x57d   :  { %6184 = vmatmul.mubr.f32.gmra.mrb[0].mxu1 %v13245_v22 }
 0x57e   :  { %v11411_v10 = vpop.f32.mrb[56].mxu0  ;;  %6189 = vmatprep.mubr.f32.mxu1 %v13246_v5 }
 0x57f   :  { %v4053_v52 = vpop.f32.mrb[57].mxu0 }
 0x581   :  { %6191 = vmatmul.mubr.f32.gmra.mrb[2].mxu1 %v13249_v53 }
 0x582   :  { %v11415_v32 = vpop.f32.mrb[58].mxu0  ;;  %6196 = vmatprep.mubr.f32.mxu1 %v13250_v54 }
 0x583   :  { %v4062_v38 = vpop.f32.mrb[59].mxu0 }
 0x585   :  { %6198 = vmatmul.mubr.f32.gmra.mrb[4].mxu1 %v13253_v42 }
 0x586   :  { %v11419_v9 = vpop.f32.mrb[60].mxu0  ;;  %6203 = vmatprep.mubr.f32.mxu1 %v13254_v34 }
 0x587   :  { %v4071_v57 = vpop.f32.mrb[61].mxu0 }
 0x589   :  { %6205 = vmatmul.mubr.f32.gmra.mrb[6].mxu1 %v13257_v51 }
 0x58a   :  { %v11423_v22 = vpop.f32.mrb[62].mxu0  ;;  %6210 = vmatprep.mubr.f32.mxu1 %v13258_v6 }
 0x58b   :  { %v4080_v5 = vpop.f32.mrb[63].mxu0 }
 0x58d   :  { %6212 = vmatmul.mubr.f32.gmra.mrb[8].mxu1 %v13261_v12 }
 0x58e   :  { %v11427_v53 = vpop.f32.mrb[64].mxu0  ;;  %6217 = vmatprep.mubr.f32.mxu1 %v13262_v37 }
 0x58f   :  { %v4089_v54 = vpop.f32.mrb[65].mxu0 }
 0x590   :  { %v13589_v54 = vld [vmem:[#allocation263_spill] sm:$0xff] }
 0x591   :  { %6219 = vmatmul.mubr.f32.gmra.mrb[10].mxu1 %v13265_v3 }
 0x592   :  { %v11431_v42 = vpop.f32.mrb[66].mxu0  ;;  %6224 = vmatprep.mubr.f32.mxu1 %v13266_v30 }
 0x593   :  { %v4098_v34 = vpop.f32.mrb[67].mxu0 }
 0x594   :  { %v13590_v34 = vld [vmem:[#allocation265_spill] sm:$0xff] }
 0x595   :  { %6226 = vmatmul.mubr.f32.gmra.mrb[12].mxu1 %v13269_v39 }
 0x596   :  { %v11435_v51 = vpop.f32.mrb[68].mxu0  ;;  %6231 = vmatprep.mubr.f32.mxu1 %v13270_v43  ;;  %v13566_v43 = vld [vmem:[#allocation160_spill] sm:$0xff] }
 0x597   :  { %v4107_v6 = vpop.f32.mrb[69].mxu0 }
 0x599   :  { %6233 = vmatmul.mubr.f32.gmra.mrb[14].mxu1 %v13273_v31 }
 0x59a   :  { %v11439_v12 = vpop.f32.mrb[70].mxu0  ;;  %6238 = vmatprep.mubr.f32.mxu1 %v13274_v25  ;;  %v13567_v25 = vld [vmem:[#allocation168_spill] sm:$0xff] }
 0x59b   :  { %v4116_v37 = vpop.f32.mrb[71].mxu0 }
 0x59d   :  { %6240 = vmatmul.mubr.f32.gmra.mrb[16].mxu1 %v13277_v55  ;;  %v13568_v55 = vld [vmem:[#allocation233_spill] sm:$0xff] }
 0x59e   :  { %v11443_v3 = vpop.f32.mrb[72].mxu0  ;;  %6245 = vmatprep.mubr.f32.mxu1 %v13278_v24  ;;  %v13569_v24 = vld [vmem:[#allocation234_spill] sm:$0xff] }
 0x59f   :  { %v4125_v30 = vpop.f32.mrb[73].mxu0 }
 0x5a1   :  { %6247 = vmatmul.mubr.f32.gmra.mrb[18].mxu1 %v13281_v60  ;;  %v13570_v60 = vld [vmem:[#allocation237_spill] sm:$0xff] }
 0x5a2   :  { %v11447_v39 = vpop.f32.mrb[74].mxu0  ;;  %6252 = vmatprep.mubr.f32.mxu1 %v13566_v43  ;;  %v13592_v43 = vld [vmem:[#allocation270_spill] sm:$0xff] }
 0x5a3   :  { %v4134_v61 = vpop.f32.mrb[75].mxu0 }
 0x5a4   :  { %v13593_v61 = vld [vmem:[#allocation271_spill] sm:$0xff] }
 0x5a5   :  { %6254 = vmatmul.mubr.f32.gmra.mrb[20].mxu1 %v13285_v14  ;;  %v13571_v14 = vld [vmem:[#allocation239_spill] sm:$0xff] }
 0x5a6   :  { %v11451_v31 = vpop.f32.mrb[76].mxu0  ;;  %6259 = vmatprep.mubr.f32.mxu1 %v13567_v25 }
 0x5a7   :  { %v4143_v36 = vpop.f32.mrb[77].mxu0 }
 0x5a8   :  { %v13595_v36 = vld [vmem:[#allocation272_spill] sm:$0xff] }
 0x5a9   :  { %6261 = vmatmul.mubr.f32.gmra.mrb[22].mxu1 %v13289_v7  ;;  %v13572_v7 = vld [vmem:[#allocation241_spill] sm:$0xff] }
 0x5aa   :  { %6266 = vmatprep.mubr.f32.mxu1 %v13290_v40  ;;  %v13573_v40 = vld [vmem:[#allocation242_spill] sm:$0xff] }
 0x5ad   :  { %6268 = vmatmul.mubr.f32.gmra.mrb[24].mxu1 %v13293_v28  ;;  %v13574_v28 = vld [vmem:[#allocation244_spill] sm:$0xff] }
 0x5ae   :  { %6273 = vmatprep.mubr.f32.mxu1 %v13294_v63  ;;  %v13575_v63 = vld [vmem:[#allocation245_spill] sm:$0xff] }
 0x5b1   :  { %6275 = vmatmul.mubr.f32.gmra.mrb[26].mxu1 %v13297_v44  ;;  %v13576_v44 = vld [vmem:[#allocation246_spill] sm:$0xff] }
 0x5b2   :  { %6280 = vmatprep.mubr.f32.mxu1 %v13298_v21  ;;  %v13577_v21 = vld [vmem:[#allocation247_spill] sm:$0xff] }
 0x5b5   :  { %6282 = vmatmul.mubr.f32.gmra.mrb[28].mxu1 %v13301_v18  ;;  %v13578_v18 = vld [vmem:[#allocation248_spill] sm:$0xff] }
 0x5b6   :  { %6287 = vmatprep.mubr.f32.mxu1 %v13302_v4  ;;  %v13579_v4 = vld [vmem:[#allocation249_spill] sm:$0xff] }
 0x5b9   :  { %6289 = vmatmul.mubr.f32.gmra.mrb[30].mxu1 %v13305_v0  ;;  %v13580_v0 = vld [vmem:[#allocation250_spill] sm:$0xff] }
 0x5ba   :  { %6294 = vmatprep.mubr.f32.mxu1 %v13306_v11  ;;  %v13581_v11 = vld [vmem:[#allocation251_spill] sm:$0xff] }
 0x5bd   :  { %6296 = vmatmul.mubr.f32.gmra.mrb[32].mxu1 %v13309_v2  ;;  %v13582_v2 = vld [vmem:[#allocation252_spill] sm:$0xff] }
 0x5be   :  { %6301 = vmatprep.mubr.f32.mxu1 %v13310_v47  ;;  %v13583_v47 = vld [vmem:[#allocation253_spill] sm:$0xff] }
 0x5c1   :  { %6303 = vmatmul.mubr.f32.gmra.mrb[34].mxu1 %v13313_v58  ;;  %v13584_v58 = vld [vmem:[#allocation254_spill] sm:$0xff] }
 0x5c2   :  { %6308 = vmatprep.mubr.f32.mxu1 %v13314_v33  ;;  %v13585_v33 = vld [vmem:[#allocation255_spill] sm:$0xff] }
 0x5c5   :  { %6310 = vmatmul.mubr.f32.gmra.mrb[36].mxu1 %v13316_v35  ;;  %v13586_v35 = vld [vmem:[#allocation256_spill] sm:$0xff] }
 0x5c6   :  { %6315 = vmatprep.mubr.f32.mxu1 %v13317_v62  ;;  %v13587_v62 = vld [vmem:[#allocation258_spill] sm:$0xff] }
 0x5c9   :  { %6317 = vmatmul.mubr.f32.gmra.mrb[38].mxu1 %v13568_v55  ;;  %v13596_v55 = vld [vmem:[#allocation273_spill] sm:$0xff] }
 0x5ca   :  { %6322 = vmatprep.mubr.f32.mxu1 %v13569_v24 }
 0x5cd   :  { %6324 = vmatmul.mubr.f32.gmra.mrb[40].mxu1 %v13570_v60  ;;  %v13597_v60 = vld [vmem:[#allocation117_spill] sm:$0xff] }
 0x5ce   :  { %6329 = vmatprep.mubr.f32.mxu1 %v13571_v14 }
 0x5d1   :  { %6331 = vmatmul.mubr.f32.gmra.mrb[42].mxu1 %v13572_v7 }
 0x5d2   :  { %6336 = vmatprep.mubr.f32.mxu1 %v13573_v40  ;;  %v13598_v40 = vld [vmem:[#allocation274_spill] sm:$0xff] }
 0x5d5   :  { %6338 = vmatmul.mubr.f32.gmra.mrb[44].mxu1 %v13574_v28  ;;  %v13599_v28 = vld [vmem:[#allocation275_spill] sm:$0xff] }
 0x5d6   :  { %6343 = vmatprep.mubr.f32.mxu1 %v13575_v63 }
 0x5d9   :  { %6345 = vmatmul.mubr.f32.gmra.mrb[46].mxu1 %v13576_v44 }
 0x5da   :  { %6350 = vmatprep.mubr.f32.mxu1 %v13577_v21 }
 0x5dd   :  { %6352 = vmatmul.mubr.f32.gmra.mrb[48].mxu1 %v13578_v18  ;;  %v13600_v18 = vld [vmem:[#allocation276_spill] sm:$0xff] }
 0x5de   :  { %6357 = vmatprep.mubr.f32.mxu1 %v13579_v4  ;;  %v13601_v4 = vld [vmem:[#allocation277_spill] sm:$0xff] }
 0x5e1   :  { %6359 = vmatmul.mubr.f32.gmra.mrb[50].mxu1 %v13580_v0 }
 0x5e2   :  { %6364 = vmatprep.mubr.f32.mxu1 %v13581_v11 }
 0x5e5   :  { %6366 = vmatmul.mubr.f32.gmra.mrb[52].mxu1 %v13582_v2 }
 0x5e6   :  { %6371 = vmatprep.mubr.f32.mxu1 %v13583_v47  ;;  %v13602_v47 = vld [vmem:[#allocation278_spill] sm:$0xff] }
 0x5e9   :  { %6373 = vmatmul.mubr.f32.gmra.mrb[54].mxu1 %v13584_v58  ;;  %v13603_v58 = vld [vmem:[#allocation279_spill] sm:$0xff] }
 0x5ea   :  { %6378 = vmatprep.mubr.f32.mxu1 %v13585_v33 }
 0x5ed   :  { %6380 = vmatmul.mubr.f32.gmra.mrb[56].mxu1 %v13586_v35 }
 0x5ee   :  { %6385 = vmatprep.mubr.f32.mxu1 %v13484_v45 }
 0x5f1   :  { %6387 = vmatmul.mubr.f32.gmra.mrb[58].mxu1 %v13587_v62  ;;  %v13604_v62 = vld [vmem:[#allocation280_spill] sm:$0xff] }
 0x5f2   :  { %6392 = vmatprep.mubr.f32.mxu1 %v13588_v49 }
 0x5f4   :  { %v6024_v13 = vpop.f32.mrb[82].mxu1 }
 0x5f5   :  { %v7399_v52 = vadd.f32 %v6024_v13, %v11363_v59  ;;  %v6026_v38 = vpop.f32.mrb[83].mxu1  ;;  %6394 = vmatmul.mubr.f32.gmra.mrb[60].mxu1 %v13489_v20 }
 0x5f6   :  { %6399 = vmatprep.mubr.f32.mxu1 %v13490_v1 }
 0x5f7   :  { %6470 = vst.msk [vmem:[%s11836_s3] sm:$0xff] %vm6469_vm1, %v7399_v52 }
 0x5f8   :  { %v6031_v57 = vpop.f32.mrb[84].mxu1 }
 0x5f9   :  { %v7400_v45 = vadd.f32 %v6031_v57, %v11367_v48  ;;  %v6033_v5 = vpop.f32.mrb[85].mxu1  ;;  %6401 = vmatmul.mubr.f32.gmra.mrb[62].mxu1 %v13492_v15 }
 0x5fa   :  { %6406 = vmatprep.mubr.f32.mxu1 %v13589_v54 }
 0x5fb   :  { %6471 = vst.msk [vmem:[%s11836_s3 + $0x8] sm:$0xff] %vm6469_vm1, %v7400_v45 }
 0x5fc   :  { %v6038_v20 = vpop.f32.mrb[86].mxu1 }
 0x5fd   :  { %v7401_v1 = vadd.f32 %v6038_v20, %v11371_v56  ;;  %v6040_v59 = vpop.f32.mrb[87].mxu1  ;;  %6408 = vmatmul.mubr.f32.gmra.mrb[64].mxu1 %v13494_v50 }
 0x5fe   :  { %6413 = vmatprep.mubr.f32.mxu1 %v13590_v34 }
 0x5ff   :  { %6472 = vst.msk [vmem:[%s11836_s3 + $0x10] sm:$0xff] %vm6469_vm1, %v7401_v1 }
 0x600   :  { %v6045_v15 = vpop.f32.mrb[88].mxu1 }
 0x601   :  { %v7402_v48 = vadd.f32 %v6045_v15, %v11375_v41  ;;  %v6047_v6 = vpop.f32.mrb[89].mxu1  ;;  %6415 = vmatmul.mubr.f32.gmra.mrb[66].mxu1 %v13385_v46  ;;  %v13591_v41 = vld [vmem:[#allocation111_spill] sm:$0xff] }
 0x602   :  { %6420 = vmatprep.mubr.f32.mxu1 %v13386_v27 }
 0x603   :  { %6473 = vst.msk [vmem:[%s11836_s3 + $0x18] sm:$0xff] %vm6469_vm1, %v7402_v48 }
 0x604   :  { %v6052_v50 = vpop.f32.mrb[90].mxu1 }
 0x605   :  { %v7403_v56 = vadd.f32 %v6052_v50, %v11379_v17  ;;  %v6054_v37 = vpop.f32.mrb[91].mxu1  ;;  %6422 = vmatmul.mubr.f32.gmra.mrb[68].mxu1 %v13389_v23 }
 0x606   :  { %6427 = vmatprep.mubr.f32.mxu1 %v13498_v8  ;;  %v13594_v8 = vld [vmem:[#allocation21_spill] sm:$0xff] }
 0x607   :  { %6474 = vst.msk [vmem:[%s11836_s3 + $0x20] sm:$0xff] %vm6469_vm1, %v7403_v56 }
 0x608   :  { %v6059_v46 = vpop.f32.mrb[92].mxu1 }
 0x609   :  { %v7404_v27 = vadd.f32 %v6059_v46, %v13591_v41  ;;  %v6061_v30 = vpop.f32.mrb[93].mxu1  ;;  %6429 = vmatmul.mubr.f32.gmra.mrb[70].mxu1 %v13592_v43 }
 0x60a   :  { %6434 = vmatprep.mubr.f32.mxu1 %v13593_v61 }
 0x60b   :  { %6475 = vst.msk [vmem:[%s11836_s3 + $0x28] sm:$0xff] %vm6469_vm1, %v7404_v27 }
 0x60c   :  { %v6066_v23 = vpop.f32.mrb[94].mxu1 }
 0x60d   :  { %v7405_v17 = vadd.f32 %v6066_v23, %v13594_v8  ;;  %v6068_v25 = vpop.f32.mrb[95].mxu1  ;;  %6436 = vmatmul.mubr.f32.gmra.mrb[72].mxu1 %v13595_v36  ;;  %v13605_v8 = vld [vmem:[#allocation11_spill] sm:$0xff]  ;;  %v13606_v36 = vld [vmem:[#allocation9_spill] sm:$0xff] }
 0x60e   :  { %6441 = vmatprep.mubr.f32.mxu1 %v13596_v55 }
 0x60f   :  { %6476 = vst.msk [vmem:[%s11836_s3 + $0x30] sm:$0xff] %vm6469_vm1, %v7405_v17 }
 0x610   :  { %v6073_v24 = vpop.f32.mrb[96].mxu1 }
 0x611   :  { %v7406_v14 = vadd.f32 %v6073_v24, %v13597_v60  ;;  %v6075_v7 = vpop.f32.mrb[97].mxu1  ;;  %6443 = vmatmul.mubr.f32.gmra.mrb[74].mxu1 %v13598_v40  ;;  %v13607_v60 = vld [vmem:[#allocation15_spill] sm:$0xff] }
 0x612   :  { %6448 = vmatprep.mubr.f32.mxu1 %v13599_v28  ;;  %v13608_v28 = vld [vmem:[#allocation13_spill] sm:$0xff] }
 0x613   :  { %6477 = vst.msk [vmem:[%s11836_s3 + $0x38] sm:$0xff] %vm6469_vm1, %v7406_v14 }
 0x614   :  { %v6080_v63 = vpop.f32.mrb[98].mxu1 }
 0x615   :  { %v7407_v44 = vadd.f32 %v6080_v63, %v11395_v26  ;;  %v6082_v21 = vpop.f32.mrb[99].mxu1  ;;  %6450 = vmatmul.mubr.f32.gmra.mrb[76].mxu1 %v13600_v18  ;;  %v13609_v18 = vld [vmem:[#allocation20_spill] sm:$0xff] }
 0x616   :  { %6455 = vmatprep.mubr.f32.mxu1 %v13601_v4 }
 0x617   :  { %6478 = vst.msk [vmem:[%s11836_s3 + $0x40] sm:$0xff] %vm6469_vm1, %v7407_v44 }
 0x618   :  { %v6087_v0 = vpop.f32.mrb[100].mxu1 }
 0x619   :  { %v7408_v11 = vadd.f32 %v6087_v0, %v11399_v19  ;;  %v6089_v2 = vpop.f32.mrb[101].mxu1  ;;  %6457 = vmatmul.mubr.f32.gmra.mrb[78].mxu1 %v13602_v47 }
 0x61a   :  { %6462 = vmatprep.mubr.f32.mxu1 %v13603_v58  ;;  %v13610_v2 = vld [vmem:[#allocation17_spill] sm:$0xff] }
 0x61b   :  { %6479 = vst.msk [vmem:[%s11836_s3 + $0x48] sm:$0xff] %vm6469_vm1, %v7408_v11 }
 0x61c   :  { %v6094_v26 = vpop.f32.mrb[102].mxu1 }
 0x61d   :  { %v7409_v33 = vadd.f32 %v6094_v26, %v11403_v29  ;;  %v6096_v35 = vpop.f32.mrb[103].mxu1  ;;  %6464 = vmatmul.mubr.f32.gmra.mrb[80].mxu1 %v13604_v62 }
 0x61f   :  { %6480 = vst.msk [vmem:[%s11836_s3 + $0x50] sm:$0xff] %vm6469_vm1, %v7409_v33  ;;  %v13611_v33 = vld [vmem:[#allocation19_spill] sm:$0xff] }
 0x620   :  { %v6101_v19 = vpop.f32.mrb[104].mxu1 }
 0x621   :  { %v7410_v49 = vadd.f32 %v6101_v19, %v11407_v16  ;;  %v6103_v13 = vpop.f32.mrb[105].mxu1 }
 0x623   :  { %6481 = vst.msk [vmem:[%s11836_s3 + $0x58] sm:$0xff] %vm6469_vm1, %v7410_v49  ;;  %v13612_v49 = vld [vmem:[#allocation24_spill] sm:$0xff] }
 0x624   :  { %v6108_v52 = vpop.f32.mrb[106].mxu1 }
 0x625   :  { %v7411_v29 = vadd.f32 %v6108_v52, %v11411_v10  ;;  %v6110_v38 = vpop.f32.mrb[107].mxu1 }
 0x626   :  { %v13613_v38 = vld [vmem:[#allocation28_spill] sm:$0xff] }
 0x627   :  { %6482 = vst.msk [vmem:[%s11836_s3 + $0x60] sm:$0xff] %vm6469_vm1, %v7411_v29 }
 0x628   :  { %v6115_v57 = vpop.f32.mrb[108].mxu1 }
 0x629   :  { %v7412_v45 = vadd.f32 %v6115_v57, %v11415_v32  ;;  %v6117_v5 = vpop.f32.mrb[109].mxu1 }
 0x62b   :  { %6483 = vst.msk [vmem:[%s11836_s3 + $0x68] sm:$0xff] %vm6469_vm1, %v7412_v45 }
 0x62c   :  { %v6122_v16 = vpop.f32.mrb[110].mxu1 }
 0x62d   :  { %v7413_v54 = vadd.f32 %v6122_v16, %v11419_v9  ;;  %v6124_v20 = vpop.f32.mrb[111].mxu1  ;;  %v13614_v16 = vld [vmem:[#allocation23_spill] sm:$0xff] }
 0x62f   :  { %6484 = vst.msk [vmem:[%s11836_s3 + $0x70] sm:$0xff] %vm6469_vm1, %v7413_v54 }
 0x630   :  { %v6129_v10 = vpop.f32.mrb[112].mxu1 }
 0x631   :  { %v7414_v1 = vadd.f32 %v6129_v10, %v11423_v22  ;;  %v6131_v59 = vpop.f32.mrb[113].mxu1 }
 0x633   :  { %6485 = vst.msk [vmem:[%s11836_s3 + $0x78] sm:$0xff] %vm6469_vm1, %v7414_v1  ;;  %v13615_v1 = vld [vmem:[#allocation33_spill] sm:$0xff] }
 0x634   :  { %v6136_v32 = vpop.f32.mrb[114].mxu1 }
 0x635   :  { %v7415_v34 = vadd.f32 %v6136_v32, %v11427_v53  ;;  %v6138_v15 = vpop.f32.mrb[115].mxu1 }
 0x636   :  { %v13616_v15 = vld [vmem:[#allocation30_spill] sm:$0xff] }
 0x637   :  { %6486 = vst.msk [vmem:[%s11836_s3 + $0x80] sm:$0xff] %vm6469_vm1, %v7415_v34 }
 0x638   :  { %v6143_v9 = vpop.f32.mrb[116].mxu1 }
 0x639   :  { %v7416_v48 = vadd.f32 %v6143_v9, %v11431_v42  ;;  %v6145_v6 = vpop.f32.mrb[117].mxu1 }
 0x63b   :  { %6487 = vst.msk [vmem:[%s11836_s3 + $0x88] sm:$0xff] %vm6469_vm1, %v7416_v48 }
 0x63c   :  { %v6150_v22 = vpop.f32.mrb[118].mxu1 }
 0x63d   :  { %v7417_v50 = vadd.f32 %v6150_v22, %v11435_v51  ;;  %v6152_v56 = vpop.f32.mrb[119].mxu1  ;;  %v13617_v22 = vld [vmem:[#allocation39_spill] sm:$0xff] }
 0x63f   :  { %6488 = vst.msk [vmem:[%s11836_s3 + $0x90] sm:$0xff] %vm6469_vm1, %v7417_v50 }
 0x640   :  { %v6157_v53 = vpop.f32.mrb[120].mxu1 }
 0x641   :  { %v7418_v37 = vadd.f32 %v6157_v53, %v11439_v12  ;;  %v6159_v46 = vpop.f32.mrb[121].mxu1 }
 0x643   :  { %6489 = vst.msk [vmem:[%s11836_s3 + $0x98] sm:$0xff] %vm6469_vm1, %v7418_v37  ;;  %v13618_v37 = vld [vmem:[#allocation36_spill] sm:$0xff] }
 0x644   :  { %v6164_v42 = vpop.f32.mrb[122].mxu1 }
 0x645   :  { %v7419_v41 = vadd.f32 %v6164_v42, %v11443_v3  ;;  %v6166_v27 = vpop.f32.mrb[123].mxu1 }
 0x646   :  { %v13619_v27 = vld [vmem:[#allocation45_spill] sm:$0xff] }
 0x647   :  { %6490 = vst.msk [vmem:[%s11836_s3 + $0xa0] sm:$0xff] %vm6469_vm1, %v7419_v41 }
 0x648   :  { %v6171_v51 = vpop.f32.mrb[124].mxu1 }
 0x649   :  { %v7420_v30 = vadd.f32 %v6171_v51, %v11447_v39  ;;  %v6173_v43 = vpop.f32.mrb[125].mxu1 }
 0x64b   :  { %6491 = vst.msk [vmem:[%s11836_s3 + $0xa8] sm:$0xff] %vm6469_vm1, %v7420_v30 }
 0x64c   :  { %v6178_v12 = vpop.f32.mrb[126].mxu1 }
 0x64d   :  { %v7421_v61 = vadd.f32 %v6178_v12, %v11451_v31  ;;  %v6180_v23 = vpop.f32.mrb[127].mxu1  ;;  %v13620_v12 = vld [vmem:[#allocation42_spill] sm:$0xff] }
 0x64f   :  { %6492 = vst.msk [vmem:[%s11836_s3 + $0xb0] sm:$0xff] %vm6469_vm1, %v7421_v61 }
 0x650   :  { %v6185_v3 = vpop.f32.mrb[0].mxu1 }
 0x651   :  { %v7422_v17 = vadd.f32 %v6185_v3, %v13605_v8  ;;  %v6187_v25 = vpop.f32.mrb[1].mxu1  ;;  %v13621_v8 = vld [vmem:[#allocation50_spill] sm:$0xff] }
 0x653   :  { %6493 = vst.msk [vmem:[%s11836_s3 + $0xb8] sm:$0xff] %vm6469_vm1, %v7422_v17 }
 0x654   :  { %v6192_v39 = vpop.f32.mrb[2].mxu1 }
 0x655   :  { %v7423_v55 = vadd.f32 %v6192_v39, %v13606_v36  ;;  %v6194_v24 = vpop.f32.mrb[3].mxu1  ;;  %v13622_v36 = vld [vmem:[#allocation47_spill] sm:$0xff] }
 0x657   :  { %6494 = vst.msk [vmem:[%s11836_s3 + $0xc0] sm:$0xff] %vm6469_vm1, %v7423_v55 }
 0x658   :  { %v6199_v31 = vpop.f32.mrb[4].mxu1 }
 0x659   :  { %v7424_v14 = vadd.f32 %v6199_v31, %v13607_v60  ;;  %v6201_v7 = vpop.f32.mrb[5].mxu1  ;;  %v13623_v60 = vld [vmem:[#allocation56_spill] sm:$0xff] }
 0x65b   :  { %6495 = vst.msk [vmem:[%s11836_s3 + $0xc8] sm:$0xff] %vm6469_vm1, %v7424_v14 }
 0x65c   :  { %v6206_v40 = vpop.f32.mrb[6].mxu1 }
 0x65d   :  { %v7425_v63 = vadd.f32 %v6206_v40, %v13608_v28  ;;  %v6208_v44 = vpop.f32.mrb[7].mxu1  ;;  %v13624_v28 = vld [vmem:[#allocation53_spill] sm:$0xff] }
 0x65f   :  { %6496 = vst.msk [vmem:[%s11836_s3 + $0xd0] sm:$0xff] %vm6469_vm1, %v7425_v63 }
 0x660   :  { %v6213_v21 = vpop.f32.mrb[8].mxu1 }
 0x661   :  { %v7426_v4 = vadd.f32 %v6213_v21, %v13609_v18  ;;  %v6215_v0 = vpop.f32.mrb[9].mxu1  ;;  %v13625_v18 = vld [vmem:[#allocation62_spill] sm:$0xff] }
 0x663   :  { %6497 = vst.msk [vmem:[%s11836_s3 + $0xd8] sm:$0xff] %vm6469_vm1, %v7426_v4 }
 0x664   :  { %v6220_v11 = vpop.f32.mrb[10].mxu1 }
 0x665   :  { %v7427_v47 = vadd.f32 %v6220_v11, %v13610_v2  ;;  %v6222_v58 = vpop.f32.mrb[11].mxu1  ;;  %v13626_v2 = vld [vmem:[#allocation58_spill] sm:$0xff] }
 0x667   :  { %6498 = vst.msk [vmem:[%s11836_s3 + $0xe0] sm:$0xff] %vm6469_vm1, %v7427_v47 }
 0x668   :  { %v6227_v26 = vpop.f32.mrb[12].mxu1 }
 0x669   :  { %v7428_v35 = vadd.f32 %v6227_v26, %v13611_v33  ;;  %v6229_v62 = vpop.f32.mrb[13].mxu1  ;;  %v13627_v33 = vld [vmem:[#allocation67_spill] sm:$0xff] }
 0x66b   :  { %6499 = vst.msk [vmem:[%s11836_s3 + $0xe8] sm:$0xff] %vm6469_vm1, %v7428_v35 }
 0x66c   :  { %v6234_v19 = vpop.f32.mrb[14].mxu1 }
 0x66d   :  { %v7429_v13 = vadd.f32 %v6234_v19, %v13612_v49  ;;  %v6236_v52 = vpop.f32.mrb[15].mxu1  ;;  %v13628_v49 = vld [vmem:[#allocation64_spill] sm:$0xff] }
 0x66f   :  { %6500 = vst.msk [vmem:[%s11836_s3 + $0xf0] sm:$0xff] %vm6469_vm1, %v7429_v13 }
 0x670   :  { %v6241_v29 = vpop.f32.mrb[16].mxu1 }
 0x671   :  { %v7430_v57 = vadd.f32 %v6241_v29, %v13613_v38  ;;  %v6243_v45 = vpop.f32.mrb[17].mxu1  ;;  %v13629_v38 = vld [vmem:[#allocation73_spill] sm:$0xff] }
 0x673   :  { %6501 = vst.msk [vmem:[%s11836_s3 + $0xf8] sm:$0xff] %vm6469_vm1, %v7430_v57 }
 0x674   :  { %v6248_v5 = vpop.f32.mrb[18].mxu1 }
 0x675   :  { %v7431_v54 = vadd.f32 %v6248_v5, %v13614_v16  ;;  %v6250_v20 = vpop.f32.mrb[19].mxu1  ;;  %v13630_v16 = vld [vmem:[#allocation70_spill] sm:$0xff] }
 0x677   :  { %6502 = vst.msk [vmem:[%s11836_s3 + $0x100] sm:$0xff] %vm6469_vm1, %v7431_v54 }
 0x678   :  { %v6255_v10 = vpop.f32.mrb[20].mxu1 }
 0x679   :  { %v7432_v59 = vadd.f32 %v6255_v10, %v13615_v1  ;;  %v6257_v32 = vpop.f32.mrb[21].mxu1  ;;  %v13631_v1 = vld [vmem:[#allocation78_spill] sm:$0xff] }
 0x67b   :  { %6503 = vst.msk [vmem:[%s11836_s3 + $0x108] sm:$0xff] %vm6469_vm1, %v7432_v59 }
 0x67c   :  { %v6262_v34 = vpop.f32.mrb[22].mxu1 }
 0x67d   :  { %v7433_v9 = vadd.f32 %v6262_v34, %v13616_v15  ;;  %v6264_v48 = vpop.f32.mrb[23].mxu1  ;;  %v13632_v15 = vld [vmem:[#allocation75_spill] sm:$0xff] }
 0x67f   :  { %6504 = vst.msk [vmem:[%s11836_s3 + $0x110] sm:$0xff] %vm6469_vm1, %v7433_v9 }
 0x680   :  { %v6269_v6 = vpop.f32.mrb[24].mxu1 }
 0x681   :  { %v7434_v50 = vadd.f32 %v6269_v6, %v13617_v22  ;;  %v6271_v56 = vpop.f32.mrb[25].mxu1  ;;  %v13633_v22 = vld [vmem:[#allocation84_spill] sm:$0xff] }
 0x683   :  { %6505 = vst.msk [vmem:[%s11836_s3 + $0x118] sm:$0xff] %vm6469_vm1, %v7434_v50 }
 0x684   :  { %v6276_v53 = vpop.f32.mrb[26].mxu1 }
 0x685   :  { %v7435_v46 = vadd.f32 %v6276_v53, %v13618_v37  ;;  %v6278_v42 = vpop.f32.mrb[27].mxu1  ;;  %v13634_v37 = vld [vmem:[#allocation81_spill] sm:$0xff] }
 0x687   :  { %6506 = vst.msk [vmem:[%s11836_s3 + $0x120] sm:$0xff] %vm6469_vm1, %v7435_v46 }
 0x688   :  { %v6283_v41 = vpop.f32.mrb[28].mxu1 }
 0x689   :  { %v7436_v51 = vadd.f32 %v6283_v41, %v13619_v27  ;;  %v6285_v30 = vpop.f32.mrb[29].mxu1  ;;  %v13635_v27 = vld [vmem:[#allocation90_spill] sm:$0xff] }
 0x68b   :  { %6507 = vst.msk [vmem:[%s11836_s3 + $0x128] sm:$0xff] %vm6469_vm1, %v7436_v51 }
 0x68c   :  { %v6290_v43 = vpop.f32.mrb[30].mxu1 }
 0x68d   :  { %v7437_v61 = vadd.f32 %v6290_v43, %v13620_v12  ;;  %v6292_v23 = vpop.f32.mrb[31].mxu1  ;;  %v13636_v12 = vld [vmem:[#allocation87_spill] sm:$0xff] }
 0x68f   :  { %6508 = vst.msk [vmem:[%s11836_s3 + $0x130] sm:$0xff] %vm6469_vm1, %v7437_v61 }
 0x690   :  { %v6297_v3 = vpop.f32.mrb[32].mxu1 }
 0x691   :  { %v7438_v17 = vadd.f32 %v6297_v3, %v13621_v8  ;;  %v6299_v25 = vpop.f32.mrb[33].mxu1  ;;  %v13637_v8 = vld [vmem:[#allocation8_spill] sm:$0xff] }
 0x693   :  { %6509 = vst.msk [vmem:[%s11836_s3 + $0x138] sm:$0xff] %vm6469_vm1, %v7438_v17 }
 0x694   :  { %v6304_v39 = vpop.f32.mrb[34].mxu1 }
 0x695   :  { %v7439_v55 = vadd.f32 %v6304_v39, %v13622_v36  ;;  %v6306_v24 = vpop.f32.mrb[35].mxu1  ;;  %v13638_v36 = vld [vmem:[#allocation12_spill] sm:$0xff] }
 0x697   :  { %6510 = vst.msk [vmem:[%s11836_s3 + $0x140] sm:$0xff] %vm6469_vm1, %v7439_v55 }
 0x698   :  { %v6311_v31 = vpop.f32.mrb[36].mxu1 }
 0x699   :  { %v7440_v14 = vadd.f32 %v6311_v31, %v13623_v60  ;;  %v6313_v7 = vpop.f32.mrb[37].mxu1  ;;  %v13639_v60 = vld [vmem:[#allocation59_spill] sm:$0xff] }
 0x69b   :  { %6511 = vst.msk [vmem:[%s11836_s3 + $0x148] sm:$0xff] %vm6469_vm1, %v7440_v14 }
 0x69c   :  { %v6318_v40 = vpop.f32.mrb[38].mxu1 }
 0x69d   :  { %v7441_v63 = vadd.f32 %v6318_v40, %v13624_v28  ;;  %v6320_v44 = vpop.f32.mrb[39].mxu1  ;;  %v13640_v28 = vld [vmem:[#allocation95_spill] sm:$0xff] }
 0x69f   :  { %6512 = vst.msk [vmem:[%s11836_s3 + $0x150] sm:$0xff] %vm6469_vm1, %v7441_v63 }
 0x6a0   :  { %v6325_v21 = vpop.f32.mrb[40].mxu1 }
 0x6a1   :  { %v7442_v4 = vadd.f32 %v6325_v21, %v13625_v18  ;;  %v6327_v0 = vpop.f32.mrb[41].mxu1  ;;  %v13641_v18 = vld [vmem:[#allocation16_spill] sm:$0xff] }
 0x6a3   :  { %6513 = vst.msk [vmem:[%s11836_s3 + $0x158] sm:$0xff] %vm6469_vm1, %v7442_v4 }
 0x6a4   :  { %v6332_v11 = vpop.f32.mrb[42].mxu1 }
 0x6a5   :  { %v7443_v47 = vadd.f32 %v6332_v11, %v13626_v2  ;;  %v6334_v58 = vpop.f32.mrb[43].mxu1  ;;  %v13642_v2 = vld [vmem:[#allocation101_spill] sm:$0xff] }
 0x6a7   :  { %6514 = vst.msk [vmem:[%s11836_s3 + $0x160] sm:$0xff] %vm6469_vm1, %v7443_v47 }
 0x6a8   :  { %v6339_v26 = vpop.f32.mrb[44].mxu1 }
 0x6a9   :  { %v7444_v35 = vadd.f32 %v6339_v26, %v13627_v33  ;;  %v6341_v62 = vpop.f32.mrb[45].mxu1  ;;  %v13643_v33 = vld [vmem:[#allocation103_spill] sm:$0xff] }
 0x6ab   :  { %6515 = vst.msk [vmem:[%s11836_s3 + $0x168] sm:$0xff] %vm6469_vm1, %v7444_v35 }
 0x6ac   :  { %v6346_v19 = vpop.f32.mrb[46].mxu1 }
 0x6ad   :  { %v7445_v13 = vadd.f32 %v6346_v19, %v13628_v49  ;;  %v6348_v52 = vpop.f32.mrb[47].mxu1  ;;  %v13644_v49 = vld [vmem:[#allocation22_spill] sm:$0xff] }
 0x6af   :  { %6516 = vst.msk [vmem:[%s11836_s3 + $0x170] sm:$0xff] %vm6469_vm1, %v7445_v13 }
 0x6b0   :  { %v6353_v29 = vpop.f32.mrb[48].mxu1 }
 0x6b1   :  { %v7446_v57 = vadd.f32 %v6353_v29, %v13629_v38  ;;  %v6355_v45 = vpop.f32.mrb[49].mxu1  ;;  %v13645_v38 = vld [vmem:[#allocation109_spill] sm:$0xff] }
 0x6b3   :  { %6517 = vst.msk [vmem:[%s11836_s3 + $0x178] sm:$0xff] %vm6469_vm1, %v7446_v57 }
 0x6b4   :  { %v6360_v5 = vpop.f32.mrb[50].mxu1 }
 0x6b5   :  { %v7447_v54 = vadd.f32 %v6360_v5, %v13630_v16  ;;  %v6362_v20 = vpop.f32.mrb[51].mxu1 }
 0x6b7   :  { %6518 = vst.msk [vmem:[%s11836_s3 + $0x180] sm:$0xff] %vm6469_vm1, %v7447_v54 }
 0x6b8   :  { %v6367_v10 = vpop.f32.mrb[52].mxu1 }
 0x6b9   :  { %v7448_v59 = vadd.f32 %v6367_v10, %v13631_v1  ;;  %v6369_v32 = vpop.f32.mrb[53].mxu1 }
 0x6bb   :  { %6519 = vst.msk [vmem:[%s11836_s3 + $0x188] sm:$0xff] %vm6469_vm1, %v7448_v59 }
 0x6bc   :  { %v6374_v34 = vpop.f32.mrb[54].mxu1 }
 0x6bd   :  { %v7449_v9 = vadd.f32 %v6374_v34, %v13632_v15  ;;  %v6376_v48 = vpop.f32.mrb[55].mxu1 }
 0x6bf   :  { %6520 = vst.msk [vmem:[%s11836_s3 + $0x190] sm:$0xff] %vm6469_vm1, %v7449_v9 }
 0x6c0   :  { %v6381_v6 = vpop.f32.mrb[56].mxu1 }
 0x6c1   :  { %v7450_v50 = vadd.f32 %v6381_v6, %v13633_v22  ;;  %v6383_v56 = vpop.f32.mrb[57].mxu1 }
 0x6c3   :  { %6521 = vst.msk [vmem:[%s11836_s3 + $0x198] sm:$0xff] %vm6469_vm1, %v7450_v50 }
 0x6c4   :  { %v6388_v53 = vpop.f32.mrb[58].mxu1 }
 0x6c5   :  { %v7451_v46 = vadd.f32 %v6388_v53, %v13634_v37  ;;  %v6390_v42 = vpop.f32.mrb[59].mxu1 }
 0x6c7   :  { %6522 = vst.msk [vmem:[%s11836_s3 + $0x1a0] sm:$0xff] %vm6469_vm1, %v7451_v46 }
 0x6c8   :  { %v6395_v41 = vpop.f32.mrb[60].mxu1 }
 0x6c9   :  { %v7452_v51 = vadd.f32 %v6395_v41, %v13635_v27  ;;  %v6397_v30 = vpop.f32.mrb[61].mxu1 }
 0x6cb   :  { %6523 = vst.msk [vmem:[%s11836_s3 + $0x1a8] sm:$0xff] %vm6469_vm1, %v7452_v51 }
 0x6cc   :  { %v6402_v43 = vpop.f32.mrb[62].mxu1 }
 0x6cd   :  { %v7453_v61 = vadd.f32 %v6402_v43, %v13636_v12  ;;  %v6404_v23 = vpop.f32.mrb[63].mxu1 }
 0x6cf   :  { %6524 = vst.msk [vmem:[%s11836_s3 + $0x1b0] sm:$0xff] %vm6469_vm1, %v7453_v61 }
 0x6d0   :  { %v6409_v3 = vpop.f32.mrb[64].mxu1 }
 0x6d1   :  { %v7454_v17 = vadd.f32 %v6409_v3, %v13637_v8  ;;  %v6411_v25 = vpop.f32.mrb[65].mxu1 }
 0x6d3   :  { %6525 = vst.msk [vmem:[%s11836_s3 + $0x1b8] sm:$0xff] %vm6469_vm1, %v7454_v17 }
 0x6d4   :  { %v6416_v39 = vpop.f32.mrb[66].mxu1 }
 0x6d5   :  { %v7455_v55 = vadd.f32 %v6416_v39, %v13638_v36  ;;  %v6418_v24 = vpop.f32.mrb[67].mxu1 }
 0x6d7   :  { %6526 = vst.msk [vmem:[%s11836_s3 + $0x1c0] sm:$0xff] %vm6469_vm1, %v7455_v55 }
 0x6d8   :  { %v6423_v31 = vpop.f32.mrb[68].mxu1 }
 0x6d9   :  { %v7456_v14 = vadd.f32 %v6423_v31, %v13639_v60  ;;  %v6425_v7 = vpop.f32.mrb[69].mxu1 }
 0x6db   :  { %6527 = vst.msk [vmem:[%s11836_s3 + $0x1c8] sm:$0xff] %vm6469_vm1, %v7456_v14 }
 0x6dc   :  { %v6430_v40 = vpop.f32.mrb[70].mxu1 }
 0x6dd   :  { %v7457_v63 = vadd.f32 %v6430_v40, %v13640_v28  ;;  %v6432_v44 = vpop.f32.mrb[71].mxu1 }
 0x6df   :  { %6528 = vst.msk [vmem:[%s11836_s3 + $0x1d0] sm:$0xff] %vm6469_vm1, %v7457_v63 }
 0x6e0   :  { %v6437_v21 = vpop.f32.mrb[72].mxu1 }
 0x6e1   :  { %v7458_v4 = vadd.f32 %v6437_v21, %v13641_v18  ;;  %v6439_v0 = vpop.f32.mrb[73].mxu1 }
 0x6e3   :  { %6529 = vst.msk [vmem:[%s11836_s3 + $0x1d8] sm:$0xff] %vm6469_vm1, %v7458_v4 }
 0x6e4   :  { %v6444_v11 = vpop.f32.mrb[74].mxu1 }
 0x6e5   :  { %v7459_v47 = vadd.f32 %v6444_v11, %v13642_v2  ;;  %v6446_v58 = vpop.f32.mrb[75].mxu1 }
 0x6e7   :  { %6530 = vst.msk [vmem:[%s11836_s3 + $0x1e0] sm:$0xff] %vm6469_vm1, %v7459_v47 }
 0x6e8   :  { %v6451_v26 = vpop.f32.mrb[76].mxu1 }
 0x6e9   :  { %v7460_v35 = vadd.f32 %v6451_v26, %v13643_v33  ;;  %v6453_v62 = vpop.f32.mrb[77].mxu1 }
 0x6eb   :  { %6531 = vst.msk [vmem:[%s11836_s3 + $0x1e8] sm:$0xff] %vm6469_vm1, %v7460_v35 }
 0x6ec   :  { %v6458_v19 = vpop.f32.mrb[78].mxu1 }
 0x6ed   :  { %v7461_v13 = vadd.f32 %v6458_v19, %v13644_v49  ;;  %v6460_v52 = vpop.f32.mrb[79].mxu1 }
 0x6ef   :  { %6532 = vst.msk [vmem:[%s11836_s3 + $0x1f0] sm:$0xff] %vm6469_vm1, %v7461_v13 }
 0x6f0   :  { %v6465_v29 = vpop.f32.mrb[80].mxu1 }
 0x6f1   :  { %v7462_v57 = vadd.f32 %v6465_v29, %v13645_v38  ;;  %v6467_v45 = vpop.f32.mrb[81].mxu1 }
 0x6f3   :  { %6533 = vst.msk [vmem:[%s11836_s3 + $0x1f8] sm:$0xff] %vm6469_vm1, %v7462_v57 }
 0x6f4   :  { %6538 = vsyncpa [#allocation3], 1 }

</bundles_post_ra>
